<compile_context>
chip_gen: v6e
topology: v6e:2x2x1
jax: 0.10.0
libtpu: 0.0.40
codegen_flags: <defaults>
</compile_context>

<pallas_src>
import jax
import jax.numpy as jnp
from jax import lax
from jax.experimental import pallas as pl
from jax.experimental.pallas import tpu as pltpu

NHIDDEN = 128       # fixed by the PyTorch module (nhidden = 128)
EPS = 1e-5          # nn.InstanceNorm2d default eps


def spade_kernel(x_ref, segcol_ref, w1_ref, b1_ref, wgb_ref, bgb_ref, out_ref):
    # x_ref      : (1, H, W, Cp)      input feature map (channels padded to Cp), f32
    # segcol_ref : (1, H*W, K1p)      pre-built im2col of the resized segmap, bf16
    # w1_ref     : (K1p, NHIDDEN)     im2col-reshaped mlp_shared weight, bf16
    # b1_ref     : (1, NHIDDEN)       f32
    # wgb_ref    : (9*NHIDDEN, 2*Cp)  merged gamma|beta weight (im2col rows), bf16
    #                                 (gamma in lanes [0,Cp), beta in [Cp,2Cp))
    # bgb_ref    : (1, 2*Cp)          merged bias, f32; '+1' already folded into gamma half
    # out_ref    : (1, H, W, Cp)      f32
    _, H, W, Cp = x_ref.shape
    NH = w1_ref.shape[1]
    HW = H * W

    # ---- 1. instance-norm statistics, single pass (normalization fused in 4) --
    x = x_ref[0].astype(jnp.float32)                              # (H, W, Cp)
    inv_hw = 1.0 / float(HW)
    mean = jnp.sum(x, axis=(0, 1), keepdims=True) * inv_hw        # (1, 1, Cp)
    ex2 = jnp.sum(x * x, axis=(0, 1), keepdims=True) * inv_hw
    var = ex2 - mean * mean
    rstd = lax.rsqrt(var + EPS)

    # ---- 2. mlp_shared: 3x3 SAME conv + ReLU as ONE bf16 im2col matmul --------
    hidden = jnp.dot(segcol_ref[0], w1_ref[...],
                     preferred_element_type=jnp.float32)          # (HW, NH) f32
    hidden = jnp.maximum(hidden + b1_ref[...], 0.0)
    hid = hidden.astype(jnp.bfloat16).reshape(H, W, NH)

    # ---- 3. merged mlp_gamma/mlp_beta 3x3 SAME conv as ONE K=9*NH matmul ------
    # Zero-pad the hidden activation as a value, then im2col: 3 sublane (dx)
    # shifts; the dy offsets are free leading-dim slices.
    zrow = jnp.zeros((1, W, NH), jnp.bfloat16)
    zcol = jnp.zeros((H + 2, 1, NH), jnp.bfloat16)
    hp = jnp.concatenate([zrow, hid, zrow], axis=0)               # (H+2, W, NH)
    hp = jnp.concatenate([zcol, hp, zcol], axis=1)                # (H+2, W+2, NH)
    sx = [hp[:, dx:dx + W, :] for dx in range(3)]                 # 3 dx-shifted copies
    taps = [sx[dx][dy:dy + H].reshape(HW, NH)
            for dy in range(3) for dx in range(3)]                # (dy, dx) order
    col = jnp.concatenate(taps, axis=1)                           # (HW, 9*NH) bf16
    gb = jnp.dot(col, wgb_ref[...],
                 preferred_element_type=jnp.float32) + bgb_ref[...]  # (HW, 2*Cp)
    gamma1 = gb[:, :Cp].reshape(H, W, Cp)    # this is already (1 + gamma)
    beta = gb[:, Cp:].reshape(H, W, Cp)

    # ---- 4. fused instance norm + SPADE modulation ----------------------------
    out_ref[0] = ((x - mean) * rstd * gamma1 + beta).astype(out_ref.dtype)


@jax.jit
def spade_pallas(x_nchw, seg_nchw, params):
    """x_nchw: (N, norm_nc, H, W); seg_nchw: (N, label_nc, sh, sw). Returns NCHW f32."""
    N, C, H, W = x_nchw.shape
    Lc = seg_nchw.shape[1]
    NH = NHIDDEN

    Cp = max(128, ((C + 127) // 128) * 128)          # lane-dense channel padding
    K1 = 9 * Lc
    K1p = max(128, ((K1 + 127) // 128) * 128)        # lane-dense K for mlp_shared

    # glue: NCHW -> NHWC
    x = jnp.transpose(x_nchw, (0, 2, 3, 1)).astype(jnp.float32)
    seg = jnp.transpose(seg_nchw, (0, 2, 3, 1)).astype(jnp.float32)

    # glue: F.interpolate(mode='nearest'): src_idx = floor(dst_idx * in / out)
    sh, sw = seg.shape[1], seg.shape[2]
    ih = (jnp.arange(H) * sh) // H
    iw = (jnp.arange(W) * sw) // W
    seg = seg[:, ih, :, :][:, :, iw, :]                              # (N, H, W, Lc)

    # glue: pre-built bf16 im2col of the segmap (SAME 3x3), K padded to K1p lanes
    seg_sp = jnp.pad(seg, ((0, 0), (1, 1), (1, 1), (0, 0)))
    taps = [seg_sp[:, dy:dy + H, dx:dx + W, :]
            for dy in range(3) for dx in range(3)]                   # (dy, dx) order
    seg_col = jnp.concatenate(taps, axis=-1).reshape(N, H * W, K1)
    seg_col = jnp.pad(seg_col, ((0, 0), (0, 0), (0, K1p - K1))).astype(jnp.bfloat16)

    # glue: pad x channels to Cp (zero pads normalize to exactly 0, sliced off later)
    x_p = jnp.zeros((N, H, W, Cp), jnp.float32).at[..., :C].set(x)

    # weights: im2col-reshape mlp_shared weight -> (K1p, NH), bf16
    w1 = params['w1'].reshape(K1, NH)
    w1 = jnp.pad(w1, ((0, K1p - K1), (0, 0))).astype(jnp.bfloat16)
    b1 = params['b1'].reshape(1, NH).astype(jnp.float32)

    # weights: merge gamma/beta convs into one (9*NH, 2*Cp) im2col weight, bf16;
    # '+1' of (1+gamma) folded into the gamma half of the merged bias.
    wgb = jnp.zeros((3, 3, NH, 2 * Cp), jnp.float32)
    wgb = wgb.at[:, :, :, :C].set(params['wg'])
    wgb = wgb.at[:, :, :, Cp:Cp + C].set(params['wb'])
    wgb = wgb.reshape(9 * NH, 2 * Cp).astype(jnp.bfloat16)
    bgb = jnp.zeros((1, 2 * Cp), jnp.float32)
    bgb = bgb.at[0, :C].set(params['bg'] + 1.0)
    bgb = bgb.at[0, Cp:Cp + C].set(params['bb'])

    grid_spec = pltpu.PrefetchScalarGridSpec(
        num_scalar_prefetch=0,
        grid=(N,),
        in_specs=[
            pl.BlockSpec((1, H, W, Cp), lambda n: (n, 0, 0, 0)),
            pl.BlockSpec((1, H * W, K1p), lambda n: (n, 0, 0)),
            # constant-index weight/bias specs: single-buffered (halves their VMEM)
            pl.BlockSpec((K1p, NH), lambda n: (0, 0),
                         pipeline_mode=pl.Buffered(1)),
            pl.BlockSpec((1, NH), lambda n: (0, 0),
                         pipeline_mode=pl.Buffered(1)),
            pl.BlockSpec((9 * NH, 2 * Cp), lambda n: (0, 0),
                         pipeline_mode=pl.Buffered(1)),
            pl.BlockSpec((1, 2 * Cp), lambda n: (0, 0),
                         pipeline_mode=pl.Buffered(1)),
        ],
        out_specs=pl.BlockSpec((1, H, W, Cp), lambda n: (n, 0, 0, 0)),
        scratch_shapes=[],
    )

    out_nhwc = pl.pallas_call(
        spade_kernel,
        out_shape=jax.ShapeDtypeStruct((N, H, W, Cp), jnp.float32),
        grid_spec=grid_spec,
        compiler_params=pltpu.CompilerParams(
            # No persistent scratch state -> batch axis is safely parallel
            # (uses both TensorCores on v7x).
            dimension_semantics=("parallel",),
            # Explicit scoped-VMEM budget: blocks + single-buffered weights fit
            # comfortably; capped below v7x's 64 MiB physical VMEM.
            vmem_limit_bytes=48 * 1024 * 1024,
        ),
    )(x_p, seg_col, w1, b1, wgb, bgb)

    return jnp.transpose(out_nhwc[..., :C], (0, 3, 1, 2))


def spade_reference(x_nchw, seg_nchw, params):
    """Pure-JAX f32 reference mirroring the PyTorch forward (sanity check)."""
    N, C, H, W = x_nchw.shape
    mean = jnp.mean(x_nchw, axis=(2, 3), keepdims=True)
    var = jnp.mean((x_nchw - mean) ** 2, axis=(2, 3), keepdims=True)
    normalized = (x_nchw - mean) / jnp.sqrt(var + EPS)

    sh, sw = seg_nchw.shape[2:]
    ih = (jnp.arange(H) * sh) // H
    iw = (jnp.arange(W) * sw) // W
    seg = seg_nchw[:, :, ih, :][:, :, :, iw]

    def conv(inp, w, b):
        y = lax.conv_general_dilated(inp, w, (1, 1), 'SAME',
                                     dimension_numbers=('NCHW', 'HWIO', 'NCHW'))
        return y + b[None, :, None, None]

    actv = jax.nn.relu(conv(seg, params['w1'], params['b1']))
    gamma = conv(actv, params['wg'], params['bg'])
    beta = conv(actv, params['wb'], params['bb'])
    return normalized * (1.0 + gamma) + beta


if __name__ == "__main__":
    # config_text = 'spadeinstance3x3' -> instance norm, ks=3, pw=1
    N, norm_nc, H, W = 2, 4, 16, 16
    label_nc, sh, sw = 3, 8, 8

    key = jax.random.PRNGKey(0)
    ks = jax.random.split(key, 8)
    params = {
        'w1': jax.random.normal(ks[0], (3, 3, label_nc, NHIDDEN), jnp.float32) * 0.05,
        'b1': jax.random.normal(ks[1], (NHIDDEN,), jnp.float32) * 0.05,
        'wg': jax.random.normal(ks[2], (3, 3, NHIDDEN, norm_nc), jnp.float32) * 0.05,
        'bg': jax.random.normal(ks[3], (norm_nc,), jnp.float32) * 0.05,
        'wb': jax.random.normal(ks[4], (3, 3, NHIDDEN, norm_nc), jnp.float32) * 0.05,
        'bb': jax.random.normal(ks[5], (norm_nc,), jnp.float32) * 0.05,
    }
    x = jax.random.normal(ks[6], (N, norm_nc, H, W), jnp.float32)
    segmap = jax.random.normal(ks[7], (N, label_nc, sh, sw), jnp.float32)

    out = jax.block_until_ready(spade_pallas(x, segmap, params))
    ref = jax.block_until_ready(spade_reference(x, segmap, params))

    assert out.shape == (N, norm_nc, H, W)
    # bf16 MXU operands introduce ~1e-2-level error vs. the pure-f32 reference.
    err = float(jnp.max(jnp.abs(out - ref)))
    assert jnp.allclose(out, ref, atol=5e-2, rtol=5e-2), err
    print("KERNEL_OK")
</pallas_src>

<mosaic_0001>
module attributes {stable_mosaic.version = 11 : i64} {
  func.func @spade_kernel(%arg0: i32, %arg1: memref<1x16x16x128xf32, #tpu.memory_space<vmem>>, %arg2: memref<1x256x128xbf16, #tpu.memory_space<vmem>>, %arg3: memref<128x128xbf16, #tpu.memory_space<vmem>>, %arg4: memref<1x128xf32, #tpu.memory_space<vmem>>, %arg5: memref<1152x256xbf16, #tpu.memory_space<vmem>>, %arg6: memref<1x256xf32, #tpu.memory_space<vmem>>, %arg7: memref<1x16x16x128xf32, #tpu.memory_space<vmem>>) attributes {dimension_semantics = [#tpu.dimension_semantics<parallel>], iteration_bounds = array<i64: 2>, scalar_prefetch = 0 : i64, scratch_operands = 0 : i64, tpu.core_type = #tpu.core_type<tc>, window_params = [{transform_indices = @transform_0, window_bounds = array<i64: 1, 16, 16, 128>}, {transform_indices = @transform_1, window_bounds = array<i64: 1, 256, 128>}, {pipeline_mode = #tpu.pipeline_mode<synchronous>, transform_indices = @transform_2, window_bounds = array<i64: 128, 128>}, {pipeline_mode = #tpu.pipeline_mode<synchronous>, transform_indices = @transform_3, window_bounds = array<i64: 1, 128>}, {pipeline_mode = #tpu.pipeline_mode<synchronous>, transform_indices = @transform_4, window_bounds = array<i64: 1152, 256>}, {pipeline_mode = #tpu.pipeline_mode<synchronous>, transform_indices = @transform_5, window_bounds = array<i64: 1, 256>}, {transform_indices = @transform_6, window_bounds = array<i64: 1, 16, 16, 128>}]} {
    %c0 = arith.constant 0 : index
    %c0_0 = arith.constant 0 : index
    %c0_1 = arith.constant 0 : index
    %c0_2 = arith.constant 0 : index
    %0 = vector.load %arg1[%c0, %c0_0, %c0_1, %c0_2] : memref<1x16x16x128xf32, #tpu.memory_space<vmem>>, vector<1x16x16x128xf32>
    %1 = vector.shape_cast %0 : vector<1x16x16x128xf32> to vector<16x16x128xf32>
    %cst = arith.constant dense<0.000000e+00> : vector<128xf32>
    %2 = vector.multi_reduction <add>, %1, %cst [0, 1] : vector<16x16x128xf32> to vector<128xf32>
    %3 = vector.shape_cast %2 : vector<128xf32> to vector<1x1x128xf32>
    %cst_3 = arith.constant 3.906250e-03 : f32
    %4 = vector.broadcast %cst_3 : f32 to vector<1x1x128xf32>
    %5 = arith.mulf %3, %4 : vector<1x1x128xf32>
    %6 = arith.mulf %1, %1 : vector<16x16x128xf32>
    %cst_4 = arith.constant dense<0.000000e+00> : vector<128xf32>
    %7 = vector.multi_reduction <add>, %6, %cst_4 [0, 1] : vector<16x16x128xf32> to vector<128xf32>
    %8 = vector.shape_cast %7 : vector<128xf32> to vector<1x1x128xf32>
    %cst_5 = arith.constant 3.906250e-03 : f32
    %9 = vector.broadcast %cst_5 : f32 to vector<1x1x128xf32>
    %10 = arith.mulf %8, %9 : vector<1x1x128xf32>
    %11 = arith.mulf %5, %5 : vector<1x1x128xf32>
    %12 = arith.subf %10, %11 : vector<1x1x128xf32>
    %cst_6 = arith.constant 9.99999974E-6 : f32
    %13 = vector.broadcast %cst_6 : f32 to vector<1x1x128xf32>
    %14 = arith.addf %12, %13 : vector<1x1x128xf32>
    %15 = math.rsqrt %14 : vector<1x1x128xf32>
    %c0_7 = arith.constant 0 : index
    %c0_8 = arith.constant 0 : index
    %c0_9 = arith.constant 0 : index
    %16 = vector.load %arg2[%c0_7, %c0_8, %c0_9] : memref<1x256x128xbf16, #tpu.memory_space<vmem>>, vector<1x256x128xbf16>
    %17 = vector.shape_cast %16 : vector<1x256x128xbf16> to vector<256x128xbf16>
    %c0_10 = arith.constant 0 : index
    %c0_11 = arith.constant 0 : index
    %18 = vector.load %arg3[%c0_10, %c0_11] : memref<128x128xbf16, #tpu.memory_space<vmem>>, vector<128x128xbf16>
    %cst_12 = arith.constant dense<0.000000e+00> : vector<256x128xf32>
    %19 = tpu.matmul %17, %18, %cst_12 {dimension_numbers = #tpu.dot_dimension_numbers<[1], [0], [0], [1], [0, 0, 1, 1], [], []>} : vector<256x128xbf16>, vector<128x128xbf16>, vector<256x128xf32> -> vector<256x128xf32>
    %c0_13 = arith.constant 0 : index
    %c0_14 = arith.constant 0 : index
    %20 = vector.load %arg4[%c0_13, %c0_14] : memref<1x128xf32, #tpu.memory_space<vmem>>, vector<1x128xf32>
    %21 = vector.broadcast %20 : vector<1x128xf32> to vector<256x128xf32>
    %22 = arith.addf %19, %21 : vector<256x128xf32>
    %cst_15 = arith.constant 0.000000e+00 : f32
    %23 = vector.broadcast %cst_15 : f32 to vector<256x128xf32>
    %24 = arith.maximumf %22, %23 : vector<256x128xf32>
    %25 = arith.truncf %24 : vector<256x128xf32> to vector<256x128xbf16>
    %26 = vector.shape_cast %25 : vector<256x128xbf16> to vector<16x16x128xbf16>
    %cst_16 = arith.constant 0.000000e+00 : bf16
    %27 = vector.broadcast %cst_16 : bf16 to vector<1x16x128xbf16>
    %cst_17 = arith.constant 0.000000e+00 : bf16
    %28 = vector.broadcast %cst_17 : bf16 to vector<18x1x128xbf16>
    %29 = tpu.concatenate %27, %26, %27 in 0 : vector<1x16x128xbf16>, vector<16x16x128xbf16>, vector<1x16x128xbf16> -> vector<18x16x128xbf16>
    %30 = tpu.concatenate %28, %29, %28 in 1 : vector<18x1x128xbf16>, vector<18x16x128xbf16>, vector<18x1x128xbf16> -> vector<18x18x128xbf16>
    %31 = vector.extract_strided_slice %30 {offsets = [0, 0, 0], sizes = [18, 16, 128], strides = [1, 1, 1]} : vector<18x18x128xbf16> to vector<18x16x128xbf16>
    %32 = vector.extract_strided_slice %30 {offsets = [0, 1, 0], sizes = [18, 16, 128], strides = [1, 1, 1]} : vector<18x18x128xbf16> to vector<18x16x128xbf16>
    %33 = vector.extract_strided_slice %30 {offsets = [0, 2, 0], sizes = [18, 16, 128], strides = [1, 1, 1]} : vector<18x18x128xbf16> to vector<18x16x128xbf16>
    %34 = vector.extract_strided_slice %31 {offsets = [0, 0, 0], sizes = [16, 16, 128], strides = [1, 1, 1]} : vector<18x16x128xbf16> to vector<16x16x128xbf16>
    %35 = vector.shape_cast %34 : vector<16x16x128xbf16> to vector<256x128xbf16>
    %36 = vector.extract_strided_slice %32 {offsets = [0, 0, 0], sizes = [16, 16, 128], strides = [1, 1, 1]} : vector<18x16x128xbf16> to vector<16x16x128xbf16>
    %37 = vector.shape_cast %36 : vector<16x16x128xbf16> to vector<256x128xbf16>
    %38 = vector.extract_strided_slice %33 {offsets = [0, 0, 0], sizes = [16, 16, 128], strides = [1, 1, 1]} : vector<18x16x128xbf16> to vector<16x16x128xbf16>
    %39 = vector.shape_cast %38 : vector<16x16x128xbf16> to vector<256x128xbf16>
    %40 = vector.extract_strided_slice %31 {offsets = [1, 0, 0], sizes = [16, 16, 128], strides = [1, 1, 1]} : vector<18x16x128xbf16> to vector<16x16x128xbf16>
    %41 = vector.shape_cast %40 : vector<16x16x128xbf16> to vector<256x128xbf16>
    %42 = vector.extract_strided_slice %32 {offsets = [1, 0, 0], sizes = [16, 16, 128], strides = [1, 1, 1]} : vector<18x16x128xbf16> to vector<16x16x128xbf16>
    %43 = vector.shape_cast %42 : vector<16x16x128xbf16> to vector<256x128xbf16>
    %44 = vector.extract_strided_slice %33 {offsets = [1, 0, 0], sizes = [16, 16, 128], strides = [1, 1, 1]} : vector<18x16x128xbf16> to vector<16x16x128xbf16>
    %45 = vector.shape_cast %44 : vector<16x16x128xbf16> to vector<256x128xbf16>
    %46 = vector.extract_strided_slice %31 {offsets = [2, 0, 0], sizes = [16, 16, 128], strides = [1, 1, 1]} : vector<18x16x128xbf16> to vector<16x16x128xbf16>
    %47 = vector.shape_cast %46 : vector<16x16x128xbf16> to vector<256x128xbf16>
    %48 = vector.extract_strided_slice %32 {offsets = [2, 0, 0], sizes = [16, 16, 128], strides = [1, 1, 1]} : vector<18x16x128xbf16> to vector<16x16x128xbf16>
    %49 = vector.shape_cast %48 : vector<16x16x128xbf16> to vector<256x128xbf16>
    %50 = vector.extract_strided_slice %33 {offsets = [2, 0, 0], sizes = [16, 16, 128], strides = [1, 1, 1]} : vector<18x16x128xbf16> to vector<16x16x128xbf16>
    %51 = vector.shape_cast %50 : vector<16x16x128xbf16> to vector<256x128xbf16>
    %52 = tpu.concatenate %35, %37, %39, %41, %43, %45, %47, %49, %51 in 1 : vector<256x128xbf16>, vector<256x128xbf16>, vector<256x128xbf16>, vector<256x128xbf16>, vector<256x128xbf16>, vector<256x128xbf16>, vector<256x128xbf16>, vector<256x128xbf16>, vector<256x128xbf16> -> vector<256x1152xbf16>
    %c0_18 = arith.constant 0 : index
    %c0_19 = arith.constant 0 : index
    %53 = vector.load %arg5[%c0_18, %c0_19] : memref<1152x256xbf16, #tpu.memory_space<vmem>>, vector<1152x256xbf16>
    %cst_20 = arith.constant dense<0.000000e+00> : vector<256x256xf32>
    %54 = tpu.matmul %52, %53, %cst_20 {dimension_numbers = #tpu.dot_dimension_numbers<[1], [0], [0], [1], [0, 0, 1, 1], [], []>} : vector<256x1152xbf16>, vector<1152x256xbf16>, vector<256x256xf32> -> vector<256x256xf32>
    %c0_21 = arith.constant 0 : index
    %c0_22 = arith.constant 0 : index
    %55 = vector.load %arg6[%c0_21, %c0_22] : memref<1x256xf32, #tpu.memory_space<vmem>>, vector<1x256xf32>
    %56 = vector.broadcast %55 : vector<1x256xf32> to vector<256x256xf32>
    %57 = arith.addf %54, %56 : vector<256x256xf32>
    %58 = vector.extract_strided_slice %57 {offsets = [0, 0], sizes = [256, 128], strides = [1, 1]} : vector<256x256xf32> to vector<256x128xf32>
    %59 = vector.shape_cast %58 : vector<256x128xf32> to vector<16x16x128xf32>
    %60 = vector.extract_strided_slice %57 {offsets = [0, 128], sizes = [256, 128], strides = [1, 1]} : vector<256x256xf32> to vector<256x128xf32>
    %61 = vector.shape_cast %60 : vector<256x128xf32> to vector<16x16x128xf32>
    %62 = vector.broadcast %5 : vector<1x1x128xf32> to vector<16x16x128xf32>
    %63 = arith.subf %1, %62 : vector<16x16x128xf32>
    %64 = vector.broadcast %15 : vector<1x1x128xf32> to vector<16x16x128xf32>
    %65 = arith.mulf %63, %64 : vector<16x16x128xf32>
    %66 = arith.mulf %65, %59 : vector<16x16x128xf32>
    %67 = arith.addf %66, %61 : vector<16x16x128xf32>
    %c0_23 = arith.constant 0 : index
    %c0_24 = arith.constant 0 : index
    %c0_25 = arith.constant 0 : index
    %c0_26 = arith.constant 0 : index
    %68 = vector.load %arg7[%c0_23, %c0_24, %c0_25, %c0_26] : memref<1x16x16x128xf32, #tpu.memory_space<vmem>>, vector<1x16x16x128xf32>
    %69 = vector.shape_cast %68 : vector<1x16x16x128xf32> to vector<16x16x128xf32>
    %70 = vector.shape_cast %67 : vector<16x16x128xf32> to vector<1x16x16x128xf32>
    tpu.vector_store %arg7[%c0_23, %c0_24, %c0_25, %c0_26], %70 {strides = array<i32>} : memref<1x16x16x128xf32, #tpu.memory_space<vmem>>, vector<1x16x16x128xf32>,
    return
  }
  func.func @transform_0(%arg0: i32) -> (i32, i32, i32, i32) {
    %c0_i32 = arith.constant 0 : i32
    %c0_i32_0 = arith.constant 0 : i32
    %c0_i32_1 = arith.constant 0 : i32
    %c0_i32_2 = arith.constant 0 : i32
    return %arg0, %c0_i32, %c0_i32_0, %c0_i32_1 : i32, i32, i32, i32
  }
  func.func @transform_1(%arg0: i32) -> (i32, i32, i32) {
    %c0_i32 = arith.constant 0 : i32
    %c0_i32_0 = arith.constant 0 : i32
    %c0_i32_1 = arith.constant 0 : i32
    return %arg0, %c0_i32, %c0_i32_0 : i32, i32, i32
  }
  func.func @transform_2(%arg0: i32) -> (i32, i32) {
    %c0_i32 = arith.constant 0 : i32
    %c0_i32_0 = arith.constant 0 : i32
    %c0_i32_1 = arith.constant 0 : i32
    return %c0_i32, %c0_i32_0 : i32, i32
  }
  func.func @transform_3(%arg0: i32) -> (i32, i32) {
    %c0_i32 = arith.constant 0 : i32
    %c0_i32_0 = arith.constant 0 : i32
    %c0_i32_1 = arith.constant 0 : i32
    return %c0_i32, %c0_i32_0 : i32, i32
  }
  func.func @transform_4(%arg0: i32) -> (i32, i32) {
    %c0_i32 = arith.constant 0 : i32
    %c0_i32_0 = arith.constant 0 : i32
    %c0_i32_1 = arith.constant 0 : i32
    return %c0_i32, %c0_i32_0 : i32, i32
  }
  func.func @transform_5(%arg0: i32) -> (i32, i32) {
    %c0_i32 = arith.constant 0 : i32
    %c0_i32_0 = arith.constant 0 : i32
    %c0_i32_1 = arith.constant 0 : i32
    return %c0_i32, %c0_i32_0 : i32, i32
  }
  func.func @transform_6(%arg0: i32) -> (i32, i32, i32, i32) {
    %c0_i32 = arith.constant 0 : i32
    %c0_i32_0 = arith.constant 0 : i32
    %c0_i32_1 = arith.constant 0 : i32
    %c0_i32_2 = arith.constant 0 : i32
    return %arg0, %c0_i32, %c0_i32_0, %c0_i32_1 : i32, i32, i32, i32
  }
}

</mosaic_0001>

<bundles_post_ra>
// kernel: spade_pallas.1
= control target key start
LH: loop header
LB: loop body
LE: loop exit
PB: predicated region body
PF: predicated region fallthrough
CT: control target
= control target key end

     0   :  { %s3988_s21 = smov 0   ;;  %s5739_s0 = inlined_call_operand.vmem [shape: f32[2,16,16,128], index: 0, kind: input, shape index: {}]   ;;  %s5740_s1 = inlined_call_operand.vmem [shape: bf16[2,256,128], index: 1, kind: input, shape index: {}]   ;;  %s5741_s2 = inlined_call_operand.vmem [shape: bf16[128,128], index: 2, kind: input, shape index: {}]   ;;  %s5742_s3 = inlined_call_operand.vmem [shape: f32[1,128], index: 3, kind: input, shape index: {}]   ;;  %s5743_s4 = inlined_call_operand.vmem [shape: bf16[1152,256], index: 4, kind: input, shape index: {}]   ;;  %s5744_s5 = inlined_call_operand.vmem [shape: f32[1,256], index: 5, kind: input, shape index: {}]   ;;  %s5745_s6 = inlined_call_operand.vmem [shape: f32[2,16,16,128], index: 6, kind: output, shape index: {}]  }
   0x1 LB: > { %s3408_s22 = sadd.s32 4294967295, %s3950_s21   ;;  %p3412_p0 = scmp.ge.s32.totalorder %s3950_s21, 1  ;;  %s3950_s21 = sphi %s3988_s21, %s16_s21  }
   0x2   : > { %p222_p1 = scmp.lt.s32.totalorder %s3950_s21, 3 }
   0x4   : > { %p223_p2 = pnand %p3412_p0, %p222_p1 }
   0x6   : > { %226 = sbr.rel (%p223_p2) target bundleno = 788 (0x314), region = 44 }
   0xb   : > { %v3690_v0 = vld [vmem:[%s5741_s2 + $0x38] sm:$0xff]   ;;  %p257_p3 = scmp.lt.s32.totalorder %s3408_s22, 1  ;;  %v3691_v1 = vld [vmem:[%s5741_s2 + $0x30] sm:$0xff]   ;;  %v3692_v2 = vld [vmem:[%s5741_s2 + $0x28] sm:$0xff]   ;;  %vm978_vm0 = vcmask 1040384   ;;  %vm1256_vm4 = vcmask 1046528  }
   0xc   : > { %3617 = vmatprep.subr.bf16.mxu0 %v3690_v0  ;;  %v3693_v3 = vld [vmem:[%s5741_s2 + $0x20] sm:$0xff]   ;;  %v3694_v5 = vld [vmem:[%s5741_s2 + $0x18] sm:$0xff]   ;;  %v3695_v6 = vld [vmem:[%s5741_s2 + $0x10] sm:$0xff]   ;;  %vm979_vm1 = vsmask.f32 256 }
   0xd   : > { %s5890_s22 = smov (!%p257_p3, %s3408_s22), 1  ;;  %3618 = vmatpush3.bf16.msra.mxu0 %v3690_v0  ;;  %v3696_v7 = vld [vmem:[%s5741_s2 + $0x8] sm:$0xff]   ;;  %v3697_v8 = vld [vmem:[%s5741_s2] sm:$0xff]   ;;  %v3714_v9 = vld [vmem:[%s5743_s4 + $0x74] ss:$8 sps:$4 sm:$0xff]  }
   0xe   : > { %3619 = vmatprep.subr.bf16.mxu0 %v3691_v1  ;;  %s3591_s29 = sshll.u32 %s5890_s22, 7  ;;  %v3716_v10 = vld [vmem:[%s5743_s4 + $0x70] ss:$8 sps:$4 sm:$0xff]   ;;  %2216 = vmatprep.subr.bf16.mxu1 %v3714_v9  ;;  %v3717_v11 = vld [vmem:[%s5743_s4 + $0x64] ss:$8 sps:$4 sm:$0xff]   ;;  %vm4204_vm2 = vmand %vm978_vm0, %vm979_vm1  ;;  %s3590_s7 = sshll.u32 %s5890_s22, 8 }
   0xf   : > { %s4011_s8 = scalar_lea.vmem %s5740_s1, %s3591_s29  ;;  %2217 = vmatpush1.bf16.msra.mxu1 %v3716_v10  ;;  %v3719_v12 = vld [vmem:[%s5743_s4 + $0x60] ss:$8 sps:$4 sm:$0xff]   ;;  %v3722_v13 = vld [vmem:[%s5743_s4 + $0x174] ss:$8 sps:$4 sm:$0xff]   ;;  %v3720_v17 = vld [vmem:[%s5743_s4 + $0x170] ss:$8 sps:$4 sm:$0xff]   ;;  %s5085_s11 = scalar_lea.vmem %s5739_s0, %s3590_s7 }
  0x10   : > { %v3698_v4 = vld [vmem:[%s4011_s8] sm:$0xff]   ;;  %2218 = vmatprep.subr.bf16.mxu1 %v3717_v11  ;;  %v3723_v14 = vld [vmem:[%s5743_s4 + $0x54] ss:$8 sps:$4 sm:$0xff]   ;;  %v3699_v15 = vld [vmem:[%s4011_s8 + $0x8] sm:$0xff]   ;;  %vm1015_vm3 = vsmask.f32 7424  ;;  %s5558_s14 = scalar_lea.vmem %s5745_s6, %s3590_s7 }
  0x11   : > { %3620 = vmatpush3.bf16.msra.mxu0 %v3691_v1  ;;  %3633 = vmatprep.mubr.bf16.mxu0 %v3698_v4  ;;  %v3700_v16 = vld [vmem:[%s4011_s8 + $0x10] sm:$0xff]   ;;  %v3728_v19 = vld [vmem:[%s5743_s4 + $0x164] ss:$8 sps:$4 sm:$0xff]   ;;  %v3726_v21 = vld [vmem:[%s5743_s4 + $0x160] ss:$8 sps:$4 sm:$0xff]  }
  0x12   : > { %3621 = vmatprep.subr.bf16.mxu0 %v3692_v2  ;;  %v3725_v18 = vld [vmem:[%s5743_s4 + $0x50] ss:$8 sps:$4 sm:$0xff]   ;;  %v3729_v20 = vld [vmem:[%s5743_s4 + $0x44] ss:$8 sps:$4 sm:$0xff]   ;;  %v3731_v22 = vld [vmem:[%s5743_s4 + $0x40] ss:$8 sps:$4 sm:$0xff]  }
  0x13   : > { %2219 = vmatpush1.bf16.msra.mxu1 %v3719_v12  ;;  %v3734_v23 = vld [vmem:[%s5743_s4 + $0x154] ss:$8 sps:$4 sm:$0xff]   ;;  %v3702_v26 = vld [vmem:[%s4011_s8 + $0x20] sm:$0xff]   ;;  %v3732_v27 = vld [vmem:[%s5743_s4 + $0x150] ss:$8 sps:$4 sm:$0xff]  }
  0x14   : > { %2220 = vmatprep.subr.bf16.mxu1 %v3723_v14  ;;  %v3735_v24 = vld [vmem:[%s5743_s4 + $0x34] ss:$8 sps:$4 sm:$0xff]   ;;  %v3737_v28 = vld [vmem:[%s5743_s4 + $0x30] ss:$8 sps:$4 sm:$0xff]   ;;  %v3740_v29 = vld [vmem:[%s5743_s4 + $0x144] ss:$8 sps:$4 sm:$0xff]  }
  0x15   : > { %3622 = vmatpush3.bf16.msra.mxu0 %v3692_v2  ;;  %v3701_v25 = vld [vmem:[%s4011_s8 + $0x18] sm:$0xff]   ;;  %v3741_v30 = vld [vmem:[%s5743_s4 + $0x24] ss:$8 sps:$4 sm:$0xff]   ;;  %v3738_v31 = vld [vmem:[%s5743_s4 + $0x140] ss:$8 sps:$4 sm:$0xff]  }
  0x16   : > { %3623 = vmatprep.subr.bf16.mxu0 %v3693_v3  ;;  %v3743_v32 = vld [vmem:[%s5743_s4 + $0x20] ss:$8 sps:$4 sm:$0xff]   ;;  %v3746_v33 = vld [vmem:[%s5743_s4 + $0x134] ss:$8 sps:$4 sm:$0xff]   ;;  %v3744_v37 = vld [vmem:[%s5743_s4 + $0x130] ss:$8 sps:$4 sm:$0xff]  }
  0x17   : > { %2221 = vmatpush1.bf16.msra.mxu1 %v3725_v18  ;;  %v3747_v34 = vld [vmem:[%s5743_s4 + $0x14] ss:$8 sps:$4 sm:$0xff]   ;;  %v3703_v35 = vld [vmem:[%s4011_s8 + $0x28] sm:$0xff]   ;;  %v3749_v38 = vld [vmem:[%s5743_s4 + $0x10] ss:$8 sps:$4 sm:$0xff]  }
  0x18   : > { %2222 = vmatprep.subr.bf16.mxu1 %v3729_v20  ;;  %v3704_v36 = vld [vmem:[%s4011_s8 + $0x30] sm:$0xff]   ;;  %v3752_v39 = vld [vmem:[%s5743_s4 + $0x124] ss:$8 sps:$4 sm:$0xff]   ;;  %v3750_v41 = vld [vmem:[%s5743_s4 + $0x120] ss:$8 sps:$4 sm:$0xff]  }
  0x19   : > { %3624 = vmatpush3.bf16.msra.mxu0 %v3693_v3  ;;  %v3753_v40 = vld [vmem:[%s5743_s4 + $0x4] ss:$8 sps:$4 sm:$0xff]   ;;  %v3755_v42 = vld [vmem:[%s5743_s4] ss:$8 sps:$4 sm:$0xff]   ;;  %v3705_v43 = vld [vmem:[%s4011_s8 + $0x38] sm:$0xff]  }
  0x1a   : > { %3625 = vmatprep.subr.bf16.mxu0 %v3694_v5  ;;  %v3758_v44 = vld [vmem:[%s5743_s4 + $0x114] ss:$8 sps:$4 sm:$0xff]   ;;  %v3706_v45 = vld [vmem:[%s4011_s8 + $0x40] sm:$0xff]   ;;  %v3756_v47 = vld [vmem:[%s5743_s4 + $0x110] ss:$8 sps:$4 sm:$0xff]  }
  0x1b   : > { %2223 = vmatpush1.bf16.msra.mxu1 %v3731_v22  ;;  %v3759_v46 = vld [vmem:[%s5743_s4 + $0xf4] ss:$8 sps:$4 sm:$0xff]   ;;  %v3761_v48 = vld [vmem:[%s5743_s4 + $0xf0] ss:$8 sps:$4 sm:$0xff]   ;;  %v3764_v49 = vld [vmem:[%s5743_s4 + $0x104] ss:$8 sps:$4 sm:$0xff]  }
  0x1c   : > { %2224 = vmatprep.subr.bf16.mxu1 %v3735_v24  ;;  %v3765_v50 = vld [vmem:[%s5743_s4 + $0xe4] ss:$8 sps:$4 sm:$0xff]   ;;  %v3762_v51 = vld [vmem:[%s5743_s4 + $0x100] ss:$8 sps:$4 sm:$0xff]   ;;  %v3770_v53 = vld [vmem:[%s5743_s4 + $0x1f4] ss:$8 sps:$4 sm:$0xff]  }
  0x1d   : > { %3626 = vmatpush3.bf16.msra.mxu0 %v3694_v5  ;;  %v3767_v52 = vld [vmem:[%s5743_s4 + $0xe0] ss:$8 sps:$4 sm:$0xff]   ;;  %v3771_v54 = vld [vmem:[%s5743_s4 + $0xd4] ss:$8 sps:$4 sm:$0xff]   ;;  %v3768_v57 = vld [vmem:[%s5743_s4 + $0x1f0] ss:$8 sps:$4 sm:$0xff]  }
  0x1e   : > { %3627 = vmatprep.subr.bf16.mxu0 %v3695_v6  ;;  %v3707_v55 = vld [vmem:[%s4011_s8 + $0x48] sm:$0xff]   ;;  %v3708_v56 = vld [vmem:[%s4011_s8 + $0x50] sm:$0xff]   ;;  %v3709_v1 = vld [vmem:[%s4011_s8 + $0x58] sm:$0xff]  }
  0x1f   : > { %2225 = vmatpush1.bf16.msra.mxu1 %v3737_v28  ;;  %v3773_v58 = vld [vmem:[%s5743_s4 + $0xd0] ss:$8 sps:$4 sm:$0xff]   ;;  %v3776_v59 = vld [vmem:[%s5743_s4 + $0x1e4] ss:$8 sps:$4 sm:$0xff]   ;;  %v3774_v61 = vld [vmem:[%s5743_s4 + $0x1e0] ss:$8 sps:$4 sm:$0xff]  }
  0x20   : > { %2226 = vmatprep.subr.bf16.mxu1 %v3741_v30  ;;  %v3777_v60 = vld [vmem:[%s5743_s4 + $0xc4] ss:$8 sps:$4 sm:$0xff]   ;;  %v3779_v62 = vld [vmem:[%s5743_s4 + $0xc0] ss:$8 sps:$4 sm:$0xff]   ;;  %v3782_v63 = vld [vmem:[%s5743_s4 + $0x1d4] ss:$8 sps:$4 sm:$0xff]  }
  0x21   : > { %3628 = vmatpush3.bf16.msra.mxu0 %v3695_v6  ;;  %v3783_v0 = vld [vmem:[%s5743_s4 + $0xb4] ss:$8 sps:$4 sm:$0xff]   ;;  %v3710_v2 = vld [vmem:[%s4011_s8 + $0x60] sm:$0xff]   ;;  %v3780_v3 = vld [vmem:[%s5743_s4 + $0x1d0] ss:$8 sps:$4 sm:$0xff]  }
  0x22   : > { %3629 = vmatprep.subr.bf16.mxu0 %v3696_v7  ;;  %v3785_v4 = vld [vmem:[%s5743_s4 + $0xb0] ss:$8 sps:$4 sm:$0xff]   ;;  %v3711_v5 = vld [vmem:[%s4011_s8 + $0x68] sm:$0xff]   ;;  %v3794_v12 = vld [vmem:[%s5743_s4 + $0x1b4] ss:$8 sps:$4 sm:$0xff]  }
  0x23   : > { %2227 = vmatpush1.bf16.msra.mxu1 %v3743_v32  ;;  %v3712_v6 = vld [vmem:[%s4011_s8 + $0x70] sm:$0xff]   ;;  %v3786_v9 = vld [vmem:[%s5743_s4 + $0x1c0] ss:$8 sps:$4 sm:$0xff]   ;;  %v3789_v10 = vld [vmem:[%s5743_s4 + $0xa4] ss:$8 sps:$4 sm:$0xff]  }
  0x24   : > { %2228 = vmatprep.subr.bf16.mxu1 %v3747_v34  ;;  %v3791_v11 = vld [vmem:[%s5743_s4 + $0xa0] ss:$8 sps:$4 sm:$0xff]   ;;  %v3797_v18 = vld [vmem:[%s5743_s4 + $0x90] ss:$8 sps:$4 sm:$0xff]   ;;  %v3801_v24 = vld [vmem:[%s5743_s4 + $0x84] ss:$8 sps:$4 sm:$0xff]  }
  0x25   : > { %3630 = vmatpush3.bf16.msra.mxu0 %v3696_v7  ;;  %v3713_v7 = vld [vmem:[%s4011_s8 + $0x78] sm:$0xff]   ;;  %v3809_v34 = vld [vmem:[%s5743_s4 + $0x184] ss:$8 sps:$4 sm:$0xff]  }
  0x26   : > { %3631 = vmatprep.subr.bf16.mxu0 %v3697_v8  ;;  %v3804_v32 = vld [vmem:[%s5743_s4 + $0x190] ss:$8 sps:$4 sm:$0xff]  }
  0x27   : > { %2229 = vmatpush1.bf16.msra.mxu1 %v3749_v38  ;;  %v3813_v38 = vld [vmem:[%s5743_s4 + $0x260] ss:$8 sps:$4 sm:$0xff]  }
  0x28   : > { %2230 = vmatprep.subr.bf16.mxu1 %v3753_v40  ;;  %v3816_v40 = vld [vmem:[%s5743_s4 + $0x250] ss:$8 sps:$4 sm:$0xff]  }
  0x29   : > { %3632 = vmatpush3.bf16.msra.mxu0 %v3697_v8  ;;  %v3788_v8 = vld [vmem:[%s5743_s4 + $0x1c4] ss:$8 sps:$4 sm:$0xff]  }
  0x2a   : > { %2409 = vmatprep.subr.bf16.mxu0 %v3722_v13  ;;  %v5746_v13 = vmov 0  }
  0x2b   : > { %2231 = vmatpush1.bf16.msra.mxu1 %v3755_v42  ;;  %v828_v14 = vrot.slane %v5746_v13, 7  ;;  %v3819_v42 = vld [vmem:[%s5743_s4 + $0x240] ss:$8 sps:$4 sm:$0xff]  }
  0x2c   : > { %3634 = vmatmul.mubr.bf16.vlgmr.msra.gmra.mxu0 %v3699_v15  ;;  %2232 = vmatprep.subr.bf16.mxu1 %v3759_v46  ;;  %v3827_v46 = vld [vmem:[%s5743_s4 + $0x374] ss:$8 sps:$4 sm:$0xff]  }
  0x2d   : > { %3637 = vmatprep.mubr.bf16.mxu0 %v3700_v16  ;;  %2410 = vmatpush1.bf16.msra.mxu0 %v3720_v17  ;;  %v3792_v16 = vld [vmem:[%s5743_s4 + $0x1b0] ss:$8 sps:$4 sm:$0xff]   ;;  %v3795_v17 = vld [vmem:[%s5743_s4 + $0x94] ss:$8 sps:$4 sm:$0xff]   ;;  %v4227_v22 = vsel %vm4204_vm2, %v828_v14, 0 }
  0x2e   : > { %2411 = vmatprep.subr.bf16.mxu0 %v3728_v19  ;;  %v4219_v19 = vsel %vm4204_vm2, 0, %v828_v14  ;;  %v1024_v28 = vshll.u32 %v4227_v22, 16 }
  0x2f   : > { %2233 = vmatpush2.bf16.msra.mxu1 %v3761_v48  ;;  %v1019_v20 = vshll.u32 %v4219_v19, 16  ;;  %v3830_v48 = vld [vmem:[%s5743_s4 + $0x224] ss:$8 sps:$4 sm:$0xff]  }
  0x30   : > { %2234 = vmatprep.subr.bf16.mxu1 %v3765_v50  ;;  %v1026_v30 = vrot.slane %v1024_v28, 1  ;;  %v3836_v50 = vld [vmem:[%s5743_s4 + $0x214] ss:$8 sps:$4 sm:$0xff]  }
  0x31   : > { %2412 = vmatpush1.bf16.msra.mxu0 %v3726_v21  ;;  %v3800_v21 = vld [vmem:[%s5743_s4 + $0x1a4] ss:$8 sps:$4 sm:$0xff]  }
  0x32   : > { %2413 = vmatprep.subr.bf16.mxu0 %v3734_v23  ;;  %v3798_v23 = vld [vmem:[%s5743_s4 + $0x1a0] ss:$8 sps:$4 sm:$0xff]  }
  0x33   : > { %2235 = vmatpush2.bf16.msra.mxu1 %v3767_v52  ;;  %v3842_v52 = vld [vmem:[%s5743_s4 + $0x204] ss:$8 sps:$4 sm:$0xff]  }
  0x34   : > { %3638 = vmatmul.mubr.bf16.gmra.mxu0 %v3701_v25  ;;  %2236 = vmatprep.subr.bf16.mxu1 %v3771_v54  ;;  %v1017_v25 = vshrl.u32 %v4219_v19, 16  ;;  %v3848_v54 = vld [vmem:[%s5743_s4 + $0x2f4] ss:$8 sps:$4 sm:$0xff]  }
  0x35   : > { %3641 = vmatprep.mubr.bf16.mxu0 %v3702_v26  ;;  %2414 = vmatpush1.bf16.msra.mxu0 %v3732_v27  ;;  %v1021_v26 = vrot.slane %v1019_v20, 1  ;;  %v3803_v27 = vld [vmem:[%s5743_s4 + $0x80] ss:$8 sps:$4 sm:$0xff]  }
  0x36   : > { %2415 = vmatprep.subr.bf16.mxu0 %v3740_v29 }
  0x37   : > { %2237 = vmatpush2.bf16.msra.mxu1 %v3773_v58  ;;  %v1022_v29 = vor.u32 %v1021_v26, %v1017_v25  ;;  %v3860_v58 = vld [vmem:[%s5743_s4 + $0x2d4] ss:$8 sps:$4 sm:$0xff]  }
  0x38   : > { %2238 = vmatprep.subr.bf16.mxu1 %v3777_v60  ;;  %v3866_v60 = vld [vmem:[%s5743_s4 + $0x2c4] ss:$8 sps:$4 sm:$0xff]  }
  0x39   : > { %2416 = vmatpush1.bf16.msra.mxu0 %v3738_v31  ;;  %v3806_v31 = vld [vmem:[%s5743_s4 + $0x194] ss:$8 sps:$4 sm:$0xff]  }
  0x3a   : > { %2417 = vmatprep.subr.bf16.mxu0 %v3746_v33  ;;  %v4247_v33 = vsel %vm1015_vm3, %v1022_v29, %v1026_v30 }
  0x3b   : > { %2239 = vmatpush2.bf16.msra.mxu1 %v3779_v62  ;;  %2248 = vmatprep.mubr.bf16.mxu1 %v4247_v33  ;;  %v3872_v62 = vld [vmem:[%s5743_s4 + $0x2b4] ss:$8 sps:$4 sm:$0xff]  }
  0x3c   : > { %3642 = vmatmul.mubr.bf16.gmra.mxu0 %v3703_v35  ;;  %2240 = vmatprep.subr.bf16.mxu1 %v3783_v0  ;;  %v3807_v35 = vld [vmem:[%s5743_s4 + $0x180] ss:$8 sps:$4 sm:$0xff]   ;;  %v3881_v0 = vld [vmem:[%s5743_s4 + $0x2a4] ss:$8 sps:$4 sm:$0xff]  }
  0x3d   : > { %3645 = vmatprep.mubr.bf16.mxu0 %v3704_v36  ;;  %2418 = vmatpush1.bf16.msra.mxu0 %v3744_v37  ;;  %v3810_v36 = vld [vmem:[%s5743_s4 + $0x270] ss:$8 sps:$4 sm:$0xff]   ;;  %v3812_v37 = vld [vmem:[%s5743_s4 + $0x274] ss:$8 sps:$4 sm:$0xff]  }
  0x3e   : > { %2419 = vmatprep.subr.bf16.mxu0 %v3752_v39  ;;  %v3815_v39 = vld [vmem:[%s5743_s4 + $0x264] ss:$8 sps:$4 sm:$0xff]  }
  0x3f   : > { %2241 = vmatpush2.bf16.msra.mxu1 %v3785_v4  ;;  %v4353_v4 = vld [vmem:[%s5742_s3] ss:$0 sm:$0xff] }
  0x40   : > { %2242 = vmatprep.subr.bf16.mxu1 %v3789_v10 }
  0x41   : > { %2420 = vmatpush1.bf16.msra.mxu0 %v3750_v41  ;;  %v3818_v41 = vld [vmem:[%s5743_s4 + $0x254] ss:$8 sps:$4 sm:$0xff]  }
  0x42   : > { %2421 = vmatprep.subr.bf16.mxu0 %v3758_v44  ;;  %v3822_v44 = vld [vmem:[%s5743_s4 + $0x230] ss:$8 sps:$4 sm:$0xff]  }
  0x43   : > { %2243 = vmatpush2.bf16.msra.mxu1 %v3791_v11  ;;  %v3897_v11 = vld [vmem:[%s5743_s4 + $0x280] ss:$8 sps:$4 sm:$0xff]  }
  0x44   : > { %3646 = vmatmul.mubr.bf16.gmra.mxu0 %v3705_v43  ;;  %2244 = vmatprep.subr.bf16.mxu1 %v3795_v17  ;;  %v3821_v43 = vld [vmem:[%s5743_s4 + $0x244] ss:$8 sps:$4 sm:$0xff]  }
  0x45   : > { %3649 = vmatprep.mubr.bf16.mxu0 %v3706_v45  ;;  %2422 = vmatpush1.bf16.msra.mxu0 %v3756_v47  ;;  %v3824_v45 = vld [vmem:[%s5743_s4 + $0x234] ss:$8 sps:$4 sm:$0xff]   ;;  %v3828_v47 = vld [vmem:[%s5743_s4 + $0x220] ss:$8 sps:$4 sm:$0xff]   ;;  %v3899_v17 = vld [vmem:[%s5743_s4 + $0x284] ss:$8 sps:$4 sm:$0xff]  }
  0x46   : > { %2423 = vmatprep.subr.bf16.mxu0 %v3764_v49  ;;  %v3834_v49 = vld [vmem:[%s5743_s4 + $0x210] ss:$8 sps:$4 sm:$0xff]  }
  0x47   : > { %2245 = vmatpush2.bf16.msra.mxu1 %v3797_v18 }
  0x48   : > { %2246 = vmatprep.subr.bf16.mxu1 %v3801_v24 }
  0x49   : > { %2424 = vmatpush1.bf16.msra.mxu0 %v3762_v51  ;;  %v3840_v51 = vld [vmem:[%s5743_s4 + $0x200] ss:$8 sps:$4 sm:$0xff]  }
  0x4a   : > { %2425 = vmatprep.subr.bf16.mxu0 %v3770_v53  ;;  %v3846_v53 = vld [vmem:[%s5743_s4 + $0x2f0] ss:$8 sps:$4 sm:$0xff]  }
  0x4b   : > { %2247 = vmatpush2.bf16.msra.mxu1 %v3803_v27 }
  0x4c   : > { %3650 = vmatmul.mubr.bf16.gmra.mxu0 %v3707_v55  ;;  %2602 = vmatprep.subr.bf16.mxu1 %v3812_v37  ;;  %v3852_v55 = vld [vmem:[%s5743_s4 + $0x2e0] ss:$8 sps:$4 sm:$0xff]  }
  0x4d   : > { %3653 = vmatprep.mubr.bf16.mxu0 %v3708_v56  ;;  %2426 = vmatpush2.bf16.msra.mxu0 %v3768_v57  ;;  %v3854_v56 = vld [vmem:[%s5743_s4 + $0x2e4] ss:$8 sps:$4 sm:$0xff]   ;;  %v3858_v57 = vld [vmem:[%s5743_s4 + $0x2d0] ss:$8 sps:$4 sm:$0xff]  }
  0x4e   : > { %2427 = vmatprep.subr.bf16.mxu0 %v3776_v59  ;;  %2249 = vmatmul.mubr.bf16.vlgmr.msra.gmra.mxu1 %v4219_v19  ;;  %v3864_v59 = vld [vmem:[%s5743_s4 + $0x2c0] ss:$8 sps:$4 sm:$0xff]  }
  0x4f   : > { %2603 = vmatpush1.bf16.msra.mxu1 %v3810_v36  ;;  %v1258_v36 = vrot.slane %v4227_v22, 1  ;;  %v4378_v22 = vld [vmem:[%s5743_s4 + $0x474] ss:$8 sps:$4 sm:$0xff]  }
  0x50   : > { %2604 = vmatprep.subr.bf16.mxu1 %v3815_v39 }
  0x51   : > { %2428 = vmatpush2.bf16.msra.mxu0 %v3774_v61  ;;  %v3870_v61 = vld [vmem:[%s5743_s4 + $0x2b0] ss:$8 sps:$4 sm:$0xff]  }
  0x52   : > { %2429 = vmatprep.subr.bf16.mxu0 %v3782_v63  ;;  %v3879_v63 = vld [vmem:[%s5743_s4 + $0x2a0] ss:$8 sps:$4 sm:$0xff]  }
  0x53   : > { %2605 = vmatpush1.bf16.msra.mxu1 %v3813_v38  ;;  %v1257_v38 = vrot.slane %v4219_v19, 1 }
  0x54   : > { %3654 = vmatmul.mubr.bf16.gmra.mxu0 %v3709_v1  ;;  %2606 = vmatprep.subr.bf16.mxu1 %v3818_v41  ;;  %v3888_v1 = vld [vmem:[%s5743_s4 + $0x290] ss:$8 sps:$4 sm:$0xff]  }
  0x55   : > { %3657 = vmatprep.mubr.bf16.mxu0 %v3710_v2  ;;  %2430 = vmatpush2.bf16.msra.mxu0 %v3780_v3  ;;  %v3890_v2 = vld [vmem:[%s5743_s4 + $0x294] ss:$8 sps:$4 sm:$0xff]  }
  0x56   : > { %2431 = vmatprep.subr.bf16.mxu0 %v3788_v8 }
  0x57   : > { %2607 = vmatpush1.bf16.msra.mxu1 %v3816_v40 }
  0x58   : > { %2608 = vmatprep.subr.bf16.mxu1 %v3821_v43 }
  0x59   : > { %2432 = vmatpush2.bf16.msra.mxu0 %v3786_v9 }
  0x5a   : > { %2433 = vmatprep.subr.bf16.mxu0 %v3794_v12 }
  0x5b   : > { %2609 = vmatpush1.bf16.msra.mxu1 %v3819_v42 }
  0x5c   : > { %3658 = vmatmul.mubr.bf16.gmra.mxu0 %v3711_v5  ;;  %2610 = vmatprep.subr.bf16.mxu1 %v3824_v45 }
  0x5d   : > { %3661 = vmatprep.mubr.bf16.mxu0 %v3712_v6  ;;  %2434 = vmatpush2.bf16.msra.mxu0 %v3792_v16 }
  0x5e   : > { %2435 = vmatprep.subr.bf16.mxu0 %v3800_v21 }
  0x5f   : > { %2611 = vmatpush1.bf16.msra.mxu1 %v3822_v44 }
  0x60   : > { %2612 = vmatprep.subr.bf16.mxu1 %v3830_v48 }
  0x61   : > { %2436 = vmatpush2.bf16.msra.mxu0 %v3798_v23 }
  0x62   : > { %2437 = vmatprep.subr.bf16.mxu0 %v3806_v31 }
  0x63   : > { %2613 = vmatpush1.bf16.msra.mxu1 %v3828_v47 }
  0x64   : > { %3662 = vmatmul.mubr.bf16.gmra.mxu0 %v3713_v7  ;;  %2614 = vmatprep.subr.bf16.mxu1 %v3836_v50 }
  0x65   : > { %2438 = vmatpush2.bf16.msra.mxu0 %v3804_v32 }
  0x66   : > { %2439 = vmatprep.subr.bf16.mxu0 %v3809_v34 }
  0x67   : > { %2615 = vmatpush1.bf16.msra.mxu1 %v3834_v49 }
  0x68   : > { %2616 = vmatprep.subr.bf16.mxu1 %v3842_v52 }
  0x69   : > { %2440 = vmatpush2.bf16.msra.mxu0 %v3807_v35 }
  0x6a   : > { %2795 = vmatprep.subr.bf16.mxu0 %v3827_v46 }
  0x6b   : > { %2617 = vmatpush1.bf16.msra.mxu1 %v3840_v51  ;;  %v4385_v51 = vsel %vm1256_vm4, %v1257_v38, %v1258_v36  ;;  %v3837_v36 = vld [vmem:[%s5743_s4 + $0x350] ss:$8 sps:$4 sm:$0xff]  }
  0x6c   : > { %2618 = vmatprep.subr.bf16.mxu1 %v3848_v54 }
  0x6f   : > { %2619 = vmatpush2.bf16.msra.mxu1 %v3846_v53 }
  0x70   : > { %2620 = vmatprep.subr.bf16.mxu1 %v3854_v56 }
  0x73   : > { %2621 = vmatpush2.bf16.msra.mxu1 %v3852_v55  ;;  %v3825_v55 = vld [vmem:[%s5743_s4 + $0x370] ss:$8 sps:$4 sm:$0xff]  }
  0x74   : > { %2622 = vmatprep.subr.bf16.mxu1 %v3860_v58 }
  0x77   : > { %2623 = vmatpush2.bf16.msra.mxu1 %v3858_v57 }
  0x78   : > { %2624 = vmatprep.subr.bf16.mxu1 %v3866_v60 }
  0x7b   : > { %2625 = vmatpush2.bf16.msra.mxu1 %v3864_v59  ;;  %v3833_v59 = vld [vmem:[%s5743_s4 + $0x364] ss:$8 sps:$4 sm:$0xff]  }
  0x7c   : > { %2626 = vmatprep.subr.bf16.mxu1 %v3872_v62 }
  0x7f   : > { %2627 = vmatpush2.bf16.msra.mxu1 %v3870_v61 }
  0x80   : > { %2628 = vmatprep.subr.bf16.mxu1 %v3881_v0 }
  0x83   : > { %2629 = vmatpush2.bf16.msra.mxu1 %v3879_v63 }
  0x84   : > { %2630 = vmatprep.subr.bf16.mxu1 %v3890_v2 }
  0x87   : > { %2631 = vmatpush2.bf16.msra.mxu1 %v3888_v1 }
  0x88   : > { %2632 = vmatprep.subr.bf16.mxu1 %v3899_v17 }
  0x8b   : > { %2633 = vmatpush2.bf16.msra.mxu1 %v3897_v11  ;;  %v3831_v11 = vld [vmem:[%s5743_s4 + $0x360] ss:$8 sps:$4 sm:$0xff]  }
  0x8c   : > { %3665 = vmatprep.subr.bf16.mxu1 %v4378_v22 }
  0xec   : > { %v3635_v3 = vpop.f32.mrf.mxu0 }
  0xed   : > { %v659_v6 = vadd.f32 %v3635_v3, %v4353_v4 }
  0xee   : > { %v650_v5 = vpop.f32.mrf.mxu0 }
  0xef   : > { %v651_v8 = vadd.f32 %v4353_v4, %v650_v5  ;;  %v779_v12 = vmax.f32 %v659_v6, 0.0 }
  0xf0   : > { %v3636_v7 = vpop.f32.mrf.mxu0 }
  0xf1   : > { %v662_v9 = vadd.f32 %v3636_v7, %v4353_v4  ;;  %v777_v20 = vmax.f32 %v651_v8, 0.0 }
  0xf2   : > { %v653_v10 = vpop.f32.mrf.mxu0 }
  0xf3   : > { %v780_v14 = vmax.f32 %v662_v9, 0.0  ;;  %v654_v16 = vadd.f32 %v4353_v4, %v653_v10 }
  0xf4   : > { %v3639_v18 = vpop.f32.mrf.mxu0 }
  0xf5   : > { %v810_v21 = vpack.c.bf16 %v780_v14, %v779_v12  ;;  %v778_v23 = vmax.f32 %v654_v16, 0.0  ;;  %v675_v24 = vadd.f32 %v3639_v18, %v4353_v4  ;;  %v3839_v18 = vld [vmem:[%s5743_s4 + $0x354] ss:$8 sps:$4 sm:$0xff]  }
  0xf6   : > { %v666_v25 = vpop.f32.mrf.mxu0 }
  0xf7   : > { %v840_v26 = vshrl.u32 %v810_v21, 16  ;;  %v809_v27 = vpack.c.bf16 %v778_v23, %v777_v20  ;;  %v843_v28 = vshll.u32 %v810_v21, 16  ;;  %v667_v29 = vadd.f32 %v4353_v4, %v666_v25 }
  0xf8   : > { %v3640_v30 = vpop.f32.mrf.mxu0  ;;  %v783_v34 = vmax.f32 %v675_v24, 0.0 }
  0xf9   : > { %v842_v31 = vrot.slane %v840_v26, 7  ;;  %v833_v32 = vshrl.u32 %v809_v27, 16  ;;  %v678_v35 = vadd.f32 %v3640_v30, %v4353_v4  ;;  %v836_v41 = vshll.u32 %v809_v27, 16 }
  0xfa   : > { %v669_v37 = vpop.f32.mrf.mxu0  ;;  %v781_v44 = vmax.f32 %v667_v29, 0.0 }
  0xfb   : > { %v845_v39 = vor.u32 %v843_v28, %v842_v31  ;;  %v835_v40 = vrot.slane %v833_v32, 7  ;;  %v784_v42 = vmax.f32 %v678_v35, 0.0  ;;  %v4372_v43 = vsel %vm4204_vm2, %v842_v31, 0 }
  0xfc   : > { %v670_v45 = vadd.f32 %v4353_v4, %v669_v37  ;;  %v3643_v46 = vpop.f32.mrf.mxu0  ;;  %v1048_v58 = vshll.u32 %v4372_v43, 16 }
  0xfd   : > { %v812_v47 = vpack.c.bf16 %v784_v42, %v783_v34  ;;  %v838_v48 = vor.u32 %v836_v41, %v835_v40  ;;  %v4382_v49 = vsel %vm4204_vm2, 0, %v845_v39  ;;  %v999_v53 = vsel %vm4204_vm2, %v835_v40, 0  ;;  %v3845_v39 = vld [vmem:[%s5743_s4 + $0x344] ss:$8 sps:$4 sm:$0xff]  }
  0xfe   : > { %v782_v50 = vmax.f32 %v670_v45, 0.0  ;;  %v682_v52 = vpop.f32.mrf.mxu0  ;;  %v1043_v54 = vshll.u32 %v4382_v49, 16  ;;  %v691_v61 = vadd.f32 %v3643_v46, %v4353_v4  ;;  %v1036_v2 = vshll.u32 %v999_v53, 16 }
  0xff   : > { %v854_v56 = vshrl.u32 %v812_v47, 16  ;;  %v982_v57 = vsel %vm4204_vm2, 0, %v838_v48  ;;  %v683_v62 = vadd.f32 %v4353_v4, %v682_v52  ;;  %v1041_v3 = vshrl.u32 %v4382_v49, 16 }
 0x100   : > { %v811_v60 = vpack.c.bf16 %v782_v50, %v781_v44  ;;  %2441 = vmatprep.mubr.bf16.mxu0 %v982_v57  ;;  %v3644_v63 = vpop.f32.mrf.mxu0  ;;  %v1031_v0 = vshll.u32 %v982_v57, 16  ;;  %v1045_v5 = vrot.slane %v1043_v54, 1  ;;  %v1029_v8 = vshrl.u32 %v982_v57, 16  ;;  %v3843_v54 = vld [vmem:[%s5743_s4 + $0x340] ss:$8 sps:$4 sm:$0xff]  }
 0x101   : > { %2442 = vmatmul.mubr.bf16.vlgmr.msra.gmra.mxu0 %v4385_v51  ;;  %v694_v1 = vadd.f32 %v3644_v63, %v4353_v4  ;;  %v856_v12 = vrot.slane %v854_v56, 7  ;;  %v857_v14 = vshll.u32 %v812_v47, 16  ;;  %v785_v16 = vmax.f32 %v683_v62, 0.0 }
 0x102   : > { %v847_v6 = vshrl.u32 %v811_v60, 16  ;;  %v850_v7 = vshll.u32 %v811_v60, 16  ;;  %2451 = vmatprep.mubr.bf16.mxu0 %v4382_v49  ;;  %v1033_v9 = vrot.slane %v1031_v0, 1  ;;  %v685_v10 = vpop.f32.mrf.mxu0  ;;  %2796 = vmatpush1.bf16.msra.mxu0 %v3825_v55  ;;  %v1038_v17 = vrot.slane %v1036_v2, 1 }
 0x103   : > { %2797 = vmatprep.subr.bf16.mxu0 %v3833_v59  ;;  %v686_v23 = vadd.f32 %v4353_v4, %v685_v10  ;;  %v1046_v24 = vor.u32 %v1045_v5, %v1041_v3  ;;  %v787_v26 = vmax.f32 %v691_v61, 0.0  ;;  %v788_v27 = vmax.f32 %v694_v1, 0.0  ;;  %v3851_v59 = vld [vmem:[%s5743_s4 + $0x334] ss:$8 sps:$4 sm:$0xff]  }
 0x104   : > { %v849_v20 = vrot.slane %v847_v6, 7  ;;  %v1034_v21 = vor.u32 %v1033_v9, %v1029_v8  ;;  %v3647_v25 = vpop.f32.mrf.mxu0  ;;  %v1050_v28 = vrot.slane %v1048_v58, 1  ;;  %v1260_v29 = vrot.slane %v982_v57, 1  ;;  %v3849_v9 = vld [vmem:[%s5743_s4 + $0x330] ss:$8 sps:$4 sm:$0xff]  }
 0x105   : > { %v786_v32 = vmax.f32 %v686_v23, 0.0  ;;  %v1261_v34 = vrot.slane %v999_v53, 1  ;;  %v859_v37 = vor.u32 %v857_v14, %v856_v12  ;;  %v4437_v46 = vpack.c.bf16 %v788_v27, %v787_v26 }
 0x106   : > { %v852_v30 = vor.u32 %v850_v7, %v849_v20  ;;  %v4414_v31 = vsel %vm1015_vm3, %v1034_v21, %v1038_v17  ;;  %v698_v35 = vpop.f32.mrf.mxu0  ;;  %2798 = vmatpush1.bf16.msra.mxu0 %v3831_v11  ;;  %v4422_v38 = vsel %vm4204_vm2, %v849_v20, 0  ;;  %v4428_v41 = vsel %vm1015_vm3, %v1046_v24, %v1050_v28  ;;  %v3855_v28 = vld [vmem:[%s5743_s4 + $0x320] ss:$8 sps:$4 sm:$0xff]  }
 0x107   : > { %2258 = vmatprep.mubr.bf16.mxu1 %v4414_v31  ;;  %2799 = vmatprep.subr.bf16.mxu0 %v3839_v18  ;;  %v813_v40 = vpack.c.bf16 %v786_v32, %v785_v16  ;;  %v4431_v42 = vsel %vm1256_vm4, %v1260_v29, %v1261_v34  ;;  %v1060_v52 = vshll.u32 %v4422_v38, 16  ;;  %v1264_v58 = vrot.slane %v4372_v43, 1  ;;  %v3857_v16 = vld [vmem:[%s5743_s4 + $0x324] ss:$8 sps:$4 sm:$0xff]  }
 0x108   : > { %2259 = vmatmul.mubr.bf16.gmra.mxu1 %v982_v57  ;;  %v4435_v44 = vsel %vm4204_vm2, 0, %v852_v30  ;;  %v3648_v45 = vpop.f32.mrf.mxu0  ;;  %v1263_v57 = vrot.slane %v4382_v49, 1  ;;  %v4455_v60 = vsel %vm4204_vm2, %v856_v12, 0  ;;  %v4459_v62 = vsel %vm4204_vm2, 0, %v859_v37 }
 0x109   : > { %2268 = vmatprep.mubr.bf16.mxu1 %v4428_v41  ;;  %2452 = vmatmul.mubr.bf16.gmra.mxu0 %v4431_v42  ;;  %v1055_v47 = vshll.u32 %v4435_v44, 16  ;;  %v861_v48 = vshrl.u32 %v813_v40, 16  ;;  %v864_v50 = vshll.u32 %v813_v40, 16  ;;  %v1053_v55 = vshrl.u32 %v4435_v44, 16 }
 0x10a   : > { %2461 = vmatprep.mubr.bf16.mxu0 %v4435_v44  ;;  %v701_v53 = vpop.f32.mrf.mxu0  ;;  %2800 = vmatpush1.bf16.msra.mxu0 %v3837_v36  ;;  %v699_v63 = vadd.f32 %v4353_v4, %v698_v35  ;;  %v868_v43 = vshrl.u32 %v4437_v46, 16  ;;  %v1067_v3 = vshll.u32 %v4459_v62, 16  ;;  %v1062_v6 = vrot.slane %v1060_v52, 1  ;;  %v3863_v35 = vld [vmem:[%s5743_s4 + $0x314] ss:$8 sps:$4 sm:$0xff]  }
 0x10b   : > { %v1057_v56 = vrot.slane %v1055_v47, 1  ;;  %2801 = vmatprep.subr.bf16.mxu0 %v3845_v39  ;;  %v863_v61 = vrot.slane %v861_v48, 7  ;;  %v702_v2 = vadd.f32 %v4353_v4, %v701_v53  ;;  %v4471_v10 = vsel %vm1256_vm4, %v1263_v57, %v1264_v58  ;;  %v3869_v53 = vld [vmem:[%s5743_s4 + $0x304] ss:$8 sps:$4 sm:$0xff]  }
 0x10c   : > { %v4462_v0 = vpop.f32.mrf.mxu0  ;;  %v789_v7 = vmax.f32 %v699_v63, 0.0  ;;  %v707_v11 = vadd.f32 %v3647_v25, %v4353_v4  ;;  %v710_v12 = vadd.f32 %v3648_v45, %v4353_v4  ;;  %v1065_v18 = vshrl.u32 %v4459_v62, 16 }
 0x10d   : > { %v1058_v1 = vor.u32 %v1057_v56, %v1053_v55  ;;  %v866_v5 = vor.u32 %v864_v50, %v863_v61  ;;  %v790_v14 = vmax.f32 %v702_v2, 0.0  ;;  %v1069_v20 = vrot.slane %v1067_v3, 1 }
 0x10e   : > { %v714_v8 = vpop.f32.mrf.mxu0  ;;  %2802 = vmatpush1.bf16.msra.mxu0 %v3843_v54  ;;  %v1072_v21 = vshll.u32 %v4455_v60, 16  ;;  %v870_v23 = vrot.slane %v868_v43, 7  ;;  %v871_v24 = vshll.u32 %v4437_v46, 16  ;;  %v791_v29 = vmax.f32 %v707_v11, 0.0 }
 0x10f   : > { %2803 = vmatprep.subr.bf16.mxu0 %v3851_v59  ;;  %v4480_v17 = vsel %vm1015_vm3, %v1058_v1, %v1062_v6  ;;  %v815_v25 = vpack.c.bf16 %v790_v14, %v789_v7  ;;  %v4489_v26 = vsel %vm4204_vm2, 0, %v866_v5  ;;  %v792_v30 = vmax.f32 %v710_v12, 0.0  ;;  %v3867_v1 = vld [vmem:[%s5743_s4 + $0x300] ss:$8 sps:$4 sm:$0xff]   ;;  %v3875_v5 = vld [vmem:[%s5743_s4 + $0x3f4] ss:$8 sps:$4 sm:$0xff]  }
 0x110   : > { %2269 = vmatmul.mubr.bf16.gmra.mxu1 %v4382_v49  ;;  %v3652_v27 = vpop.f32.mrf.mxu0  ;;  %v1266_v32 = vrot.slane %v4435_v44, 1  ;;  %v1267_v34 = vrot.slane %v4422_v38, 1  ;;  %v1070_v36 = vor.u32 %v1069_v20, %v1065_v18  ;;  %v1074_v37 = vrot.slane %v1072_v21, 1  ;;  %v3861_v38 = vld [vmem:[%s5743_s4 + $0x310] ss:$8 sps:$4 sm:$0xff]  }
 0x111   : > { %2278 = vmatprep.mubr.bf16.mxu1 %v4480_v17  ;;  %2462 = vmatmul.mubr.bf16.gmra.mxu0 %v4471_v10  ;;  %v1079_v39 = vshll.u32 %v4489_v26, 16  ;;  %v873_v40 = vor.u32 %v871_v24, %v870_v23  ;;  %v875_v45 = vshrl.u32 %v815_v25, 16  ;;  %v4503_v46 = vsel %vm4204_vm2, %v863_v61, 0  ;;  %v3878_v24 = vld [vmem:[%s5743_s4 + $0x3e4] ss:$8 sps:$4 sm:$0xff]  }
 0x112   : > { %2471 = vmatprep.mubr.bf16.mxu0 %v4459_v62  ;;  %2804 = vmatpush1.bf16.msra.mxu0 %v3849_v9  ;;  %v717_v47 = vpop.f32.mrf.mxu0  ;;  %v4508_v48 = vpack.c.bf16 %v792_v30, %v791_v29  ;;  %v4511_v50 = vsel %vm1256_vm4, %v1266_v32, %v1267_v34  ;;  %v1077_v52 = vshrl.u32 %v4489_v26, 16  ;;  %v878_v54 = vshll.u32 %v815_v25, 16 }
 0x113   : > { %2805 = vmatprep.subr.bf16.mxu0 %v3857_v16  ;;  %v4519_v55 = vsel %vm1015_vm3, %v1070_v36, %v1074_v37  ;;  %v1081_v56 = vrot.slane %v1079_v39, 1  ;;  %v1084_v57 = vshll.u32 %v4503_v46, 16  ;;  %v877_v58 = vrot.slane %v875_v45, 7  ;;  %v3876_v36 = vld [vmem:[%s5743_s4 + $0x3e0] ss:$8 sps:$4 sm:$0xff]  }
 0x114   : > { %v4526_v59 = vsel %vm4204_vm2, 0, %v873_v40  ;;  %v715_v61 = vadd.f32 %v4353_v4, %v714_v8  ;;  %v718_v63 = vadd.f32 %v4353_v4, %v717_v47  ;;  %v4531_v43 = vpop.f32.mrf.mxu0  ;;  %v1269_v2 = vrot.slane %v4459_v62, 1  ;;  %v3884_v47 = vld [vmem:[%s5743_s4 + $0x3d4] ss:$8 sps:$4 sm:$0xff]  }
 0x115   : > { %v1270_v3 = vrot.slane %v4455_v60, 1  ;;  %v4543_v6 = vsel %vm4204_vm2, %v870_v23, 0  ;;  %v1082_v7 = vor.u32 %v1081_v56, %v1077_v52  ;;  %v1086_v8 = vrot.slane %v1084_v57, 1  ;;  %v3873_v60 = vld [vmem:[%s5743_s4 + $0x3f0] ss:$8 sps:$4 sm:$0xff]  }
 0x116   : > { %2806 = vmatpush1.bf16.msra.mxu0 %v3855_v28  ;;  %v1091_v9 = vshll.u32 %v4526_v59, 16  ;;  %v882_v11 = vshrl.u32 %v4508_v48, 16  ;;  %v880_v12 = vor.u32 %v878_v54, %v877_v58  ;;  %v793_v14 = vmax.f32 %v715_v61, 0.0  ;;  %v730_v18 = vpop.f32.mrf.mxu0 }
 0x117   : > { %2807 = vmatprep.subr.bf16.mxu0 %v3863_v35  ;;  %v794_v16 = vmax.f32 %v718_v63, 0.0  ;;  %v4551_v20 = vsel %vm1256_vm4, %v1269_v2, %v1270_v3  ;;  %v723_v21 = vadd.f32 %v4462_v0, %v4353_v4  ;;  %v726_v23 = vadd.f32 %v3652_v27, %v4353_v4  ;;  %v3887_v2 = vld [vmem:[%s5743_s4 + $0x3c4] ss:$8 sps:$4 sm:$0xff]  }
 0x118   : > { %2279 = vmatmul.mubr.bf16.gmra.mxu1 %v4435_v44  ;;  %v4561_v25 = vsel %vm1015_vm3, %v1082_v7, %v1086_v8  ;;  %v1089_v28 = vshrl.u32 %v4526_v59, 16  ;;  %v1093_v29 = vrot.slane %v1091_v9, 1  ;;  %v1096_v30 = vshll.u32 %v4543_v6, 16  ;;  %v3656_v35 = vpop.f32.mrf.mxu0 }
 0x119   : > { %2288 = vmatprep.mubr.bf16.mxu1 %v4519_v55  ;;  %2472 = vmatmul.mubr.bf16.gmra.mxu0 %v4511_v50  ;;  %v884_v32 = vrot.slane %v882_v11, 7  ;;  %v885_v0 = vshll.u32 %v4508_v48, 16  ;;  %v817_v27 = vpack.c.bf16 %v794_v16, %v793_v14  ;;  %v4570_v34 = vsel %vm4204_vm2, 0, %v880_v12  ;;  %v3885_v16 = vld [vmem:[%s5743_s4 + $0x3c0] ss:$8 sps:$4 sm:$0xff]  }
 0x11a   : > { %2481 = vmatprep.mubr.bf16.mxu0 %v4489_v26  ;;  %2808 = vmatpush1.bf16.msra.mxu0 %v3861_v38  ;;  %v795_v37 = vmax.f32 %v723_v21, 0.0  ;;  %v796_v39 = vmax.f32 %v726_v23, 0.0  ;;  %v1272_v40 = vrot.slane %v4489_v26, 1  ;;  %v1273_v45 = vrot.slane %v4503_v46, 1  ;;  %v733_v57 = vpop.f32.mrf.mxu0  ;;  %v3882_v46 = vld [vmem:[%s5743_s4 + $0x3d0] ss:$8 sps:$4 sm:$0xff]  }
 0x11b   : > { %2809 = vmatprep.subr.bf16.mxu0 %v3869_v53  ;;  %v1094_v38 = vor.u32 %v1093_v29, %v1089_v28  ;;  %v1098_v48 = vrot.slane %v1096_v30, 1  ;;  %v1103_v52 = vshll.u32 %v4570_v34, 16  ;;  %v887_v53 = vor.u32 %v885_v0, %v884_v32 }
 0x11c   : > { %v889_v54 = vshrl.u32 %v817_v27, 16  ;;  %v4584_v56 = vsel %vm4204_vm2, %v877_v58, 0  ;;  %v4589_v61 = vpack.c.bf16 %v796_v39, %v795_v37  ;;  %v4592_v63 = vsel %vm1256_vm4, %v1272_v40, %v1273_v45  ;;  %v4612_v14 = vpop.f32.mrf.mxu0  ;;  %v3896_v45 = vld [vmem:[%s5743_s4 + $0x3a4] ss:$8 sps:$4 sm:$0xff]  }
 0x11d   : > { %v892_v58 = vshll.u32 %v817_v27, 16  ;;  %v4600_v3 = vsel %vm1015_vm3, %v1094_v38, %v1098_v48  ;;  %v1108_v7 = vshll.u32 %v4584_v56, 16  ;;  %v4607_v9 = vsel %vm4204_vm2, 0, %v887_v53 }
 0x11e   : > { %2810 = vmatpush1.bf16.msra.mxu0 %v3867_v1  ;;  %v1101_v1 = vshrl.u32 %v4570_v34, 16  ;;  %v891_v8 = vrot.slane %v889_v54, 7  ;;  %v731_v11 = vadd.f32 %v4353_v4, %v730_v18  ;;  %v734_v12 = vadd.f32 %v4353_v4, %v733_v57  ;;  %v3893_v18 = vld [vmem:[%s5743_s4 + $0x3b4] ss:$8 sps:$4 sm:$0xff]   ;;  %v746_v37 = vpop.f32.mrf.mxu0 }
 0x11f   : > { %2811 = vmatprep.subr.bf16.mxu0 %v3875_v5  ;;  %v1105_v5 = vrot.slane %v1103_v52, 1  ;;  %v1276_v21 = vrot.slane %v4543_v6, 1  ;;  %v4624_v23 = vsel %vm4204_vm2, %v884_v32, 0  ;;  %v1110_v28 = vrot.slane %v1108_v7, 1  ;;  %v3891_v6 = vld [vmem:[%s5743_s4 + $0x3b0] ss:$8 sps:$4 sm:$0xff]  }
 0x120   : > { %2289 = vmatmul.mubr.bf16.gmra.mxu1 %v4459_v62  ;;  %v1115_v29 = vshll.u32 %v4607_v9, 16  ;;  %v896_v30 = vshrl.u32 %v4589_v61, 16  ;;  %v894_v0 = vor.u32 %v892_v58, %v891_v8  ;;  %v797_v27 = vmax.f32 %v731_v11, 0.0  ;;  %v3660_v57 = vpop.f32.mrf.mxu0 }
 0x121   : > { %2298 = vmatprep.mubr.bf16.mxu1 %v4561_v25  ;;  %2482 = vmatmul.mubr.bf16.gmra.mxu0 %v4551_v20  ;;  %v739_v32 = vadd.f32 %v4531_v43, %v4353_v4  ;;  %v742_v40 = vadd.f32 %v3656_v35, %v4353_v4  ;;  %v1113_v38 = vshrl.u32 %v4607_v9, 16  ;;  %v1120_v52 = vshll.u32 %v4624_v23, 16 }
 0x122   : > { %2491 = vmatprep.mubr.bf16.mxu0 %v4526_v59  ;;  %2812 = vmatpush2.bf16.msra.mxu0 %v3873_v60  ;;  %v1275_v60 = vrot.slane %v4526_v59, 1  ;;  %v1117_v48 = vrot.slane %v1115_v29, 1  ;;  %v898_v53 = vrot.slane %v896_v30, 7  ;;  %v899_v43 = vshll.u32 %v4589_v61, 16  ;;  %v3905_v30 = vld [vmem:[%s5743_s4 + $0x384] ss:$8 sps:$4 sm:$0xff]  }
 0x123   : > { %2813 = vmatprep.subr.bf16.mxu0 %v3878_v24  ;;  %v1106_v24 = vor.u32 %v1105_v5, %v1101_v1  ;;  %v4651_v54 = vsel %vm4204_vm2, 0, %v894_v0  ;;  %v799_v1 = vmax.f32 %v739_v32, 0.0  ;;  %v1278_v61 = vrot.slane %v4570_v34, 1  ;;  %v3902_v5 = vld [vmem:[%s5743_s4 + $0x394] ss:$8 sps:$4 sm:$0xff]  }
 0x124   : > { %v4632_v39 = vsel %vm1256_vm4, %v1275_v60, %v1276_v21  ;;  %v1279_v58 = vrot.slane %v4584_v56, 1  ;;  %v1118_v7 = vor.u32 %v1117_v48, %v1113_v38  ;;  %v1122_v11 = vrot.slane %v1120_v52, 1  ;;  %v3900_v56 = vld [vmem:[%s5743_s4 + $0x390] ss:$8 sps:$4 sm:$0xff]   ;;  %v3903_v48 = vld [vmem:[%s5743_s4 + $0x380] ss:$8 sps:$4 sm:$0xff]  }
 0x125   : > { %v4665_v21 = vsel %vm4204_vm2, %v891_v8, 0  ;;  %v1125_v29 = vshrl.u32 %v4651_v54, 16  ;;  %v1281_v52 = vrot.slane %v4607_v9, 1 }
 0x126   : > { %2814 = vmatpush2.bf16.msra.mxu0 %v3876_v36  ;;  %v798_v36 = vmax.f32 %v734_v12, 0.0  ;;  %v1127_v12 = vshll.u32 %v4651_v54, 16  ;;  %v4679_v8 = vsel %vm1015_vm3, %v1118_v7, %v1122_v11 }
 0x127   : > { %2815 = vmatprep.subr.bf16.mxu0 %v3884_v47  ;;  %v4642_v47 = vsel %vm1015_vm3, %v1106_v24, %v1110_v28  ;;  %v4671_v28 = vsel %vm1256_vm4, %v1278_v61, %v1279_v58 }
 0x128   : > { %2299 = vmatmul.mubr.bf16.gmra.mxu1 %v4489_v26  ;;  %v819_v35 = vpack.c.bf16 %v798_v36, %v797_v27  ;;  %v1129_v27 = vrot.slane %v1127_v12, 1  ;;  %v1132_v36 = vshll.u32 %v4665_v21, 16  ;;  %v758_v12 = vadd.f32 %v3660_v57, %v4353_v4 }
 0x129   : > { %2308 = vmatprep.mubr.bf16.mxu1 %v4600_v3  ;;  %2492 = vmatmul.mubr.bf16.gmra.mxu0 %v4592_v63 }
 0x12a   : > { %2501 = vmatprep.mubr.bf16.mxu0 %v4570_v34  ;;  %2816 = vmatpush2.bf16.msra.mxu0 %v3882_v46  ;;  %v3894_v46 = vld [vmem:[%s5743_s4 + $0x3a0] ss:$8 sps:$4 sm:$0xff]   ;;  %v903_v60 = vshrl.u32 %v819_v35, 16  ;;  %v906_v0 = vshll.u32 %v819_v35, 16  ;;  %v4700_v35 = vsel %vm4204_vm2, %v898_v53, 0 }
 0x12b   : > { %2817 = vmatprep.subr.bf16.mxu0 %v3887_v2  ;;  %v800_v2 = vmax.f32 %v742_v40, 0.0  ;;  %v747_v40 = vadd.f32 %v4353_v4, %v746_v37  ;;  %v1130_v37 = vor.u32 %v1129_v27, %v1125_v29  ;;  %v1284_v27 = vrot.slane %v4651_v54, 1 }
 0x12d   : > { %v820_v24 = vpack.c.bf16 %v800_v2, %v799_v1  ;;  %v801_v58 = vmax.f32 %v747_v40, 0.0 }
 0x12e   : > { %2818 = vmatpush2.bf16.msra.mxu0 %v3885_v16  ;;  %v901_v16 = vor.u32 %v899_v43, %v898_v53  ;;  %v1282_v43 = vrot.slane %v4624_v23, 1  ;;  %v755_v23 = vadd.f32 %v4612_v14, %v4353_v4 }
 0x12f   : > { %2819 = vmatprep.subr.bf16.mxu0 %v3893_v18  ;;  %v749_v18 = vpop.f32.mrf.mxu0  ;;  %v910_v2 = vshrl.u32 %v820_v24, 16  ;;  %v913_v29 = vshll.u32 %v820_v24, 16 }
 0x130   : > { %2309 = vmatmul.mubr.bf16.gmra.mxu1 %v4526_v59  ;;  %v4686_v32 = vsel %vm4204_vm2, 0, %v901_v16  ;;  %v4704_v11 = vsel %vm1256_vm4, %v1281_v52, %v1282_v43 }
 0x131   : > { %2318 = vmatprep.mubr.bf16.mxu1 %v4642_v47  ;;  %2502 = vmatmul.mubr.bf16.gmra.mxu0 %v4632_v39  ;;  %v4691_v38 = vpop.f32.mrf.mxu0  ;;  %v1139_v1 = vshll.u32 %v4686_v32, 16  ;;  %v1137_v16 = vshrl.u32 %v4686_v32, 16 }
 0x132   : > { %2511 = vmatprep.mubr.bf16.mxu0 %v4607_v9  ;;  %2820 = vmatpush2.bf16.msra.mxu0 %v3891_v6  ;;  %v905_v6 = vrot.slane %v903_v60, 7 }
 0x133   : > { %2821 = vmatprep.subr.bf16.mxu0 %v3896_v45  ;;  %v750_v45 = vadd.f32 %v4353_v4, %v749_v18  ;;  %v762_v7 = vpop.f32.mrf.mxu0  ;;  %v1141_v60 = vrot.slane %v1139_v1, 1  ;;  %v1144_v18 = vshll.u32 %v4700_v35, 16 }
 0x134   : > { %v908_v61 = vor.u32 %v906_v0, %v905_v6  ;;  %v804_v0 = vmax.f32 %v758_v12, 0.0  ;;  %v1009_v43 = vsel %vm4204_vm2, %v905_v6, 0  ;;  %v763_v12 = vadd.f32 %v4353_v4, %v762_v7 }
 0x135   : > { %v4723_v57 = vpop.f32.mrf.mxu0  ;;  %v1142_v24 = vor.u32 %v1141_v60, %v1137_v16  ;;  %v1146_v40 = vrot.slane %v1144_v18, 1  ;;  %v1287_v60 = vrot.slane %v4686_v32, 1  ;;  %v1288_v18 = vrot.slane %v4700_v35, 1 }
 0x136   : > { %2822 = vmatpush2.bf16.msra.mxu0 %v3894_v46  ;;  %v1134_v46 = vrot.slane %v1132_v36, 1  ;;  %v1285_v36 = vrot.slane %v4665_v21, 1 }
 0x137   : > { %2823 = vmatprep.subr.bf16.mxu0 %v3902_v5  ;;  %v802_v5 = vmax.f32 %v750_v45, 0.0  ;;  %v4736_v21 = vsel %vm1015_vm3, %v1142_v24, %v1146_v40  ;;  %v805_v24 = vmax.f32 %v763_v12, 0.0  ;;  %v4753_v7 = vsel %vm1256_vm4, %v1287_v60, %v1288_v18 }
 0x138   : > { %2319 = vmatmul.mubr.bf16.gmra.mxu1 %v4570_v34  ;;  %v4712_v53 = vsel %vm1015_vm3, %v1130_v37, %v1134_v46  ;;  %v765_v37 = vpop.f32.mrf.mxu0  ;;  %v4731_v1 = vsel %vm1256_vm4, %v1284_v27, %v1285_v36 }
 0x139   : > { %2328 = vmatprep.mubr.bf16.mxu1 %v4679_v8  ;;  %2512 = vmatmul.mubr.bf16.gmra.mxu0 %v4671_v28  ;;  %v821_v14 = vpack.c.bf16 %v802_v5, %v801_v58  ;;  %v1156_v5 = vshll.u32 %v1009_v43, 16  ;;  %v766_v16 = vadd.f32 %v4353_v4, %v765_v37 }
 0x13a   : > { %2521 = vmatprep.mubr.bf16.mxu0 %v4651_v54  ;;  %2824 = vmatpush2.bf16.msra.mxu0 %v3900_v56  ;;  %v912_v56 = vrot.slane %v910_v2, 7 }
 0x13b   : > { %2825 = vmatprep.subr.bf16.mxu0 %v3905_v30  ;;  %v803_v30 = vmax.f32 %v755_v23, 0.0  ;;  %v917_v52 = vshrl.u32 %v821_v14, 16  ;;  %v806_v40 = vmax.f32 %v766_v16, 0.0 }
 0x13d   : > { %v822_v46 = vpack.c.bf16 %v804_v0, %v803_v30  ;;  %v919_v23 = vrot.slane %v917_v52, 7  ;;  %v1158_v30 = vrot.slane %v1156_v5, 1  ;;  %v1291_v5 = vrot.slane %v1009_v43, 1 }
 0x13e   : > { %2826 = vmatpush2.bf16.msra.mxu0 %v3903_v48  ;;  %v915_v48 = vor.u32 %v913_v29, %v912_v56  ;;  %v1010_v29 = vsel %vm4204_vm2, %v912_v56, 0 }
 0x13f   : > { %2988 = vmatprep.subr.bf16.mxu0 %v4378_v22  ;;  %v4720_v22 = vsel %vm4204_vm2, 0, %v908_v61  ;;  %v920_v61 = vshll.u32 %v821_v14, 16  ;;  %v924_v27 = vshrl.u32 %v822_v46, 16  ;;  %v1168_v56 = vshll.u32 %v1010_v29, 16 }
 0x140   : > { %2329 = vmatmul.mubr.bf16.gmra.mxu1 %v4607_v9  ;;  %v1151_v45 = vshll.u32 %v4720_v22, 16  ;;  %v1149_v2 = vshrl.u32 %v4720_v22, 16  ;;  %v4742_v6 = vsel %vm4204_vm2, 0, %v915_v48  ;;  %v927_v37 = vshll.u32 %v822_v46, 16 }
 0x141   : > { %2338 = vmatprep.mubr.bf16.mxu1 %v4712_v53  ;;  %2522 = vmatmul.mubr.bf16.gmra.mxu0 %v4704_v11  ;;  %v1163_v0 = vshll.u32 %v4742_v6, 16  ;;  %v922_v36 = vor.u32 %v920_v61, %v919_v23  ;;  %v1161_v35 = vshrl.u32 %v4742_v6, 16  ;;  %v926_v52 = vrot.slane %v924_v27, 7 }
 0x142   : > { %2531 = vmatprep.mubr.bf16.mxu0 %v4686_v32  ;;  %v1153_v58 = vrot.slane %v1151_v45, 1  ;;  %v1170_v16 = vrot.slane %v1168_v56, 1  ;;  %v1293_v56 = vrot.slane %v4742_v6, 1 }
 0x143   : > { %v1165_v48 = vrot.slane %v1163_v0, 1  ;;  %v4764_v61 = vsel %vm4204_vm2, 0, %v922_v36  ;;  %v929_v18 = vor.u32 %v927_v37, %v926_v52 }
 0x144   : > { %v1154_v14 = vor.u32 %v1153_v58, %v1149_v2  ;;  %v823_v2 = vpack.c.bf16 %v806_v40, %v805_v24  ;;  %v1290_v58 = vrot.slane %v4720_v22, 1  ;;  %v1175_v60 = vshll.u32 %v4764_v61, 16 }
 0x145   : > { %v1166_v12 = vor.u32 %v1165_v48, %v1161_v35  ;;  %v1173_v43 = vshrl.u32 %v4764_v61, 16  ;;  %v774_v40 = vadd.f32 %v4723_v57, %v4353_v4  ;;  %v1012_v48 = vsel %vm4204_vm2, %v926_v52, 0 }
 0x146   : > { %v4757_v45 = vsel %vm1015_vm3, %v1154_v14, %v1158_v30  ;;  %v931_v46 = vshrl.u32 %v823_v2, 16  ;;  %v1011_v14 = vsel %vm4204_vm2, %v919_v23, 0  ;;  %v771_v30 = vadd.f32 %v4691_v38, %v4353_v4 }
 0x147   : > { %v4774_v0 = vsel %vm1256_vm4, %v1290_v58, %v1291_v5  ;;  %v4778_v27 = vsel %vm1015_vm3, %v1166_v12, %v1170_v16  ;;  %v1177_v36 = vrot.slane %v1175_v60, 1  ;;  %v1180_v24 = vshll.u32 %v1011_v14, 16 }
 0x148   : > { %2339 = vmatmul.mubr.bf16.gmra.mxu1 %v4651_v54  ;;  %v933_v35 = vrot.slane %v931_v46, 7  ;;  %v934_v23 = vshll.u32 %v823_v2, 16  ;;  %v4787_v38 = vsel %vm4204_vm2, 0, %v929_v18  ;;  %v1294_v4 = vrot.slane %v1010_v29, 1 }
 0x149   : > { %2348 = vmatprep.mubr.bf16.mxu1 %v4736_v21  ;;  %2532 = vmatmul.mubr.bf16.gmra.mxu0 %v4731_v1  ;;  %v1178_v37 = vor.u32 %v1177_v36, %v1173_v43  ;;  %v1182_v58 = vrot.slane %v1180_v24, 1  ;;  %v1187_v57 = vshll.u32 %v4787_v38, 16  ;;  %v807_v2 = vmax.f32 %v771_v30, 0.0 }
 0x14a   : > { %2541 = vmatprep.mubr.bf16.mxu0 %v4720_v22  ;;  %v808_v5 = vmax.f32 %v774_v40, 0.0  ;;  %v936_v12 = vor.u32 %v934_v23, %v933_v35  ;;  %v1192_v16 = vshll.u32 %v1012_v48, 16  ;;  %v4799_v18 = vsel %vm1256_vm4, %v1293_v56, %v1294_v4 }
 0x14b   : > { %v4796_v60 = vsel %vm1015_vm3, %v1178_v37, %v1182_v58  ;;  %v1185_v52 = vshrl.u32 %v4787_v38, 16  ;;  %v1189_v46 = vrot.slane %v1187_v57, 1  ;;  %v1296_v30 = vrot.slane %v4764_v61, 1 }
 0x14c   : > { %v824_v43 = vpack.c.bf16 %v808_v5, %v807_v2  ;;  %v4806_v29 = vsel %vm4204_vm2, 0, %v936_v12  ;;  %v1297_v36 = vrot.slane %v1011_v14, 1  ;;  %v1194_v40 = vrot.slane %v1192_v16, 1 }
 0x14d   : > { %v1190_v24 = vor.u32 %v1189_v46, %v1185_v52  ;;  %v1199_v23 = vshll.u32 %v4806_v29, 16  ;;  %v1013_v37 = vsel %vm4204_vm2, %v933_v35, 0  ;;  %v1197_v57 = vshrl.u32 %v4806_v29, 16 }
 0x14e   : > { %v938_v56 = vshrl.u32 %v824_v43, 16  ;;  %v4814_v58 = vsel %vm1256_vm4, %v1296_v30, %v1297_v36  ;;  %v1204_v14 = vshll.u32 %v1013_v37, 16  ;;  %v941_v12 = vshll.u32 %v824_v43, 16 }
 0x14f   : > { %v4818_v4 = vsel %vm1015_vm3, %v1190_v24, %v1194_v40  ;;  %v1201_v2 = vrot.slane %v1199_v23, 1  ;;  %v1299_v52 = vrot.slane %v4787_v38, 1  ;;  %v1300_v46 = vrot.slane %v1012_v48, 1 }
 0x150   : > { %2349 = vmatmul.mubr.bf16.gmra.mxu1 %v4686_v32  ;;  %v4821_v5 = vrot.slane %v938_v56, 7  ;;  %v1206_v16 = vrot.slane %v1204_v14, 1  ;;  %v1302_v48 = vrot.slane %v4806_v29, 1  ;;  %v1303_v40 = vrot.slane %v1013_v37, 1  ;;  %v3906_v56 = vld [vmem:[%s5743_s4 + $0x470] ss:$8 sps:$4 sm:$0xff]  }
 0x151   : > { %2358 = vmatprep.mubr.bf16.mxu1 %v4757_v45  ;;  %2542 = vmatmul.mubr.bf16.gmra.mxu0 %v4753_v7  ;;  %v1202_v35 = vor.u32 %v1201_v2, %v1197_v57  ;;  %v4833_v43 = vsel %vm1256_vm4, %v1299_v52, %v1300_v46  ;;  %v3911_v57 = vld [vmem:[%s5743_s4 + $0x464] ss:$8 sps:$4 sm:$0xff]   ;;  %v3909_v37 = vld [vmem:[%s5743_s4 + $0x460] ss:$8 sps:$4 sm:$0xff]   ;;  %v3920_v14 = vld [vmem:[%s5743_s4 + $0x434] ss:$8 sps:$4 sm:$0xff]  }
 0x152   : > { %2551 = vmatprep.mubr.bf16.mxu0 %v4742_v6  ;;  %v943_v30 = vor.u32 %v941_v12, %v4821_v5  ;;  %v4845_v23 = vsel %vm1256_vm4, %v1302_v48, %v1303_v40  ;;  %v3917_v2 = vld [vmem:[%s5743_s4 + $0x444] ss:$8 sps:$4 sm:$0xff]  }
 0x153   : > { %v4830_v36 = vsel %vm1015_vm3, %v1202_v35, %v1206_v16  ;;  %v3923_v12 = vld [vmem:[%s5743_s4 + $0x424] ss:$8 sps:$4 sm:$0xff]   ;;  %v3926_v35 = vld [vmem:[%s5743_s4 + $0x414] ss:$8 sps:$4 sm:$0xff]  }
 0x154   : > { %v4839_v24 = vsel %vm4204_vm2, 0, %v943_v30  ;;  %v3929_v16 = vld [vmem:[%s5743_s4 + $0x404] ss:$8 sps:$4 sm:$0xff]  }
 0x155   : > { %v1322_v15 = vshrl.u32 %v4839_v24, 16 }
 0x158   : > { %2359 = vmatmul.mubr.bf16.gmra.mxu1 %v4720_v22 }
 0x159   : > { %2368 = vmatprep.mubr.bf16.mxu1 %v4778_v27  ;;  %2552 = vmatmul.mubr.bf16.gmra.mxu0 %v4774_v0 }
 0x15a   : > { %2561 = vmatprep.mubr.bf16.mxu0 %v4764_v61 }
 0x160   : > { %2369 = vmatmul.mubr.bf16.gmra.mxu1 %v4742_v6 }
 0x161   : > { %2378 = vmatprep.mubr.bf16.mxu1 %v4796_v60  ;;  %2562 = vmatmul.mubr.bf16.gmra.mxu0 %v4799_v18 }
 0x162   : > { %2571 = vmatprep.mubr.bf16.mxu0 %v4787_v38 }
 0x168   : > { %2379 = vmatmul.mubr.bf16.gmra.mxu1 %v4764_v61 }
 0x169   : > { %2388 = vmatprep.mubr.bf16.mxu1 %v4818_v4  ;;  %2572 = vmatmul.mubr.bf16.gmra.mxu0 %v4814_v58 }
 0x16a   : > { %2581 = vmatprep.mubr.bf16.mxu0 %v4806_v29 }
 0x170   : > { %2389 = vmatmul.mubr.bf16.gmra.mxu1 %v4787_v38 }
 0x171   : > { %2398 = vmatprep.mubr.bf16.mxu1 %v4830_v36  ;;  %2582 = vmatmul.mubr.bf16.gmra.mxu0 %v4833_v43 }
 0x172   : > { %2591 = vmatprep.mubr.bf16.mxu0 %v4839_v24 }
 0x178   : > { %2399 = vmatmul.mubr.bf16.gmra.mxu1 %v4806_v29 }
 0x179   : > { %2592 = vmatmul.mubr.bf16.gmra.mxu0 %v4845_v23  ;;  %2634 = vmatprep.mubr.bf16.mxu1 %v4431_v42  ;;  %v3914_v42 = vld [vmem:[%s5743_s4 + $0x454] ss:$8 sps:$4 sm:$0xff]  }
 0x17a   : > { %2827 = vmatprep.mubr.bf16.mxu0 %v4428_v41 }
 0x180   : > { %2635 = vmatmul.mubr.bf16.vlgmr.msra.gmra.mxu1 %v4414_v31  ;;  %v3912_v31 = vld [vmem:[%s5743_s4 + $0x450] ss:$8 sps:$4 sm:$0xff]  }
 0x181   : > { %3673 = vmatpush1.bf16.msra.mxu1 %v3906_v56  ;;  %2644 = vmatprep.mubr.bf16.mxu1 %v4471_v10 }
 0x182   : > { %2828 = vmatmul.mubr.bf16.vlgmr.msra.gmra.mxu0 %v4382_v49  ;;  %3666 = vmatprep.subr.bf16.mxu1 %v3911_v57  ;;  %v3915_v49 = vld [vmem:[%s5743_s4 + $0x440] ss:$8 sps:$4 sm:$0xff]  }
 0x183   : > { %2837 = vmatprep.mubr.bf16.mxu0 %v4480_v17  ;;  %2989 = vmatpush1.bf16.msra.mxu0 %v3906_v56 }
 0x184   : > { %2990 = vmatprep.subr.bf16.mxu0 %v3911_v57 }
 0x185   : > { %3674 = vmatpush1.bf16.msra.mxu1 %v3909_v37 }
 0x186   : > { %3667 = vmatprep.subr.bf16.mxu1 %v3914_v42 }
 0x187   : > { %2991 = vmatpush1.bf16.msra.mxu0 %v3909_v37 }
 0x188   : > { %2645 = vmatmul.mubr.bf16.gmra.mxu1 %v4428_v41  ;;  %2992 = vmatprep.subr.bf16.mxu0 %v3914_v42  ;;  %v3918_v41 = vld [vmem:[%s5743_s4 + $0x430] ss:$8 sps:$4 sm:$0xff]  }
 0x189   : > { %2654 = vmatprep.mubr.bf16.mxu1 %v4511_v50  ;;  %3675 = vmatpush1.bf16.msra.mxu1 %v3912_v31 }
 0x18a   : > { %2838 = vmatmul.mubr.bf16.gmra.mxu0 %v4435_v44  ;;  %3668 = vmatprep.subr.bf16.mxu1 %v3917_v2  ;;  %v3921_v44 = vld [vmem:[%s5743_s4 + $0x420] ss:$8 sps:$4 sm:$0xff]  }
 0x18b   : > { %2847 = vmatprep.mubr.bf16.mxu0 %v4519_v55  ;;  %2993 = vmatpush1.bf16.msra.mxu0 %v3912_v31 }
 0x18c   : > { %2994 = vmatprep.subr.bf16.mxu0 %v3917_v2 }
 0x18d   : > { %3676 = vmatpush1.bf16.msra.mxu1 %v3915_v49 }
 0x18e   : > { %3669 = vmatprep.subr.bf16.mxu1 %v3920_v14 }
 0x18f   : > { %2995 = vmatpush1.bf16.msra.mxu0 %v3915_v49 }
 0x190   : > { %2655 = vmatmul.mubr.bf16.gmra.mxu1 %v4480_v17  ;;  %2996 = vmatprep.subr.bf16.mxu0 %v3920_v14  ;;  %v3924_v17 = vld [vmem:[%s5743_s4 + $0x410] ss:$8 sps:$4 sm:$0xff]  }
 0x191   : > { %2664 = vmatprep.mubr.bf16.mxu1 %v4551_v20  ;;  %3677 = vmatpush1.bf16.msra.mxu1 %v3918_v41 }
 0x192   : > { %2848 = vmatmul.mubr.bf16.gmra.mxu0 %v4459_v62  ;;  %3670 = vmatprep.subr.bf16.mxu1 %v3923_v12  ;;  %v3927_v62 = vld [vmem:[%s5743_s4 + $0x400] ss:$8 sps:$4 sm:$0xff]  }
 0x193   : > { %2857 = vmatprep.mubr.bf16.mxu0 %v4561_v25  ;;  %2997 = vmatpush1.bf16.msra.mxu0 %v3918_v41 }
 0x194   : > { %2998 = vmatprep.subr.bf16.mxu0 %v3923_v12 }
 0x195   : > { %3678 = vmatpush1.bf16.msra.mxu1 %v3921_v44 }
 0x196   : > { %3671 = vmatprep.subr.bf16.mxu1 %v3926_v35 }
 0x197   : > { %2999 = vmatpush1.bf16.msra.mxu0 %v3921_v44 }
 0x198   : > { %2665 = vmatmul.mubr.bf16.gmra.mxu1 %v4519_v55  ;;  %3000 = vmatprep.subr.bf16.mxu0 %v3926_v35 }
 0x199   : > { %2674 = vmatprep.mubr.bf16.mxu1 %v4592_v63  ;;  %3679 = vmatpush1.bf16.msra.mxu1 %v3924_v17 }
 0x19a   : > { %2858 = vmatmul.mubr.bf16.gmra.mxu0 %v4489_v26  ;;  %3672 = vmatprep.subr.bf16.mxu1 %v3929_v16  ;;  %v1486_v26 = vlaneseq }
 0x19b   : > { %2867 = vmatprep.mubr.bf16.mxu0 %v4600_v3  ;;  %3001 = vmatpush1.bf16.msra.mxu0 %v3924_v17 }
 0x19c   : > { %3002 = vmatprep.subr.bf16.mxu0 %v3929_v16  ;;  %v1487_v55 = vshrl.u32 %v1486_v26, 7 }
 0x19d   : > { %3680 = vmatpush1.bf16.msra.mxu1 %v3927_v62 }
 0x19f   : > { %3003 = vmatpush1.bf16.msra.mxu0 %v3927_v62 }
 0x1a0   : > { %2675 = vmatmul.mubr.bf16.gmra.mxu1 %v4561_v25  ;;  %v1484_v25 = vld [vmem:[%s5744_s5] sm:$0x3] }
 0x1a1   : > { %2684 = vmatprep.mubr.bf16.mxu1 %v4632_v39 }
 0x1a2   : > { %2868 = vmatmul.mubr.bf16.gmra.mxu0 %v4526_v59  ;;  %v1488_v59 = vsub.s32 0, %v1487_v55 }
 0x1a3   : > { %2877 = vmatprep.mubr.bf16.mxu0 %v4642_v47 }
 0x1a8   : > { %2685 = vmatmul.mubr.bf16.gmra.mxu1 %v4600_v3  ;;  %v4929_v3 = vrot.slane %v1484_v25, %v1488_v59 }
 0x1a9   : > { %2694 = vmatprep.mubr.bf16.mxu1 %v4671_v28 }
 0x1aa   : > { %2878 = vmatmul.mubr.bf16.gmra.mxu0 %v4570_v34  ;;  %v1492_v34 = vsub.s32 1, %v1487_v55 }
 0x1ab   : > { %2887 = vmatprep.mubr.bf16.mxu0 %v4679_v8 }
 0x1b0   : > { %2695 = vmatmul.mubr.bf16.gmra.mxu1 %v4642_v47  ;;  %v2250_v47 = vpop.f32.mrf.mxu1 }
 0x1b1   : > { %2704 = vmatprep.mubr.bf16.mxu1 %v4704_v11  ;;  %v2251_v52 = vadd.f32 %v2250_v47, %v4929_v3 }
 0x1b2   : > { %2888 = vmatmul.mubr.bf16.gmra.mxu0 %v4607_v9  ;;  %v4932_v9 = vrot.slane %v1484_v25, %v1492_v34  ;;  %v2252_v46 = vpop.f32.mrf.mxu1 }
 0x1b3   : > { %2897 = vmatprep.mubr.bf16.mxu0 %v4712_v53 }
 0x1b4   : > { %v2253_v30 = vadd.f32 %v2252_v46, %v4932_v9  ;;  %v2254_v48 = vpop.f32.mrf.mxu1 }
 0x1b5   : > { %v2255_v56 = vadd.f32 %v2254_v48, %v4929_v3 }
 0x1b6   : > { %v4945_v42 = vpop.f32.mrf.mxu1 }
 0x1b8   : > { %2705 = vmatmul.mubr.bf16.gmra.mxu1 %v4679_v8 }
 0x1b9   : > { %2714 = vmatprep.mubr.bf16.mxu1 %v4731_v1 }
 0x1ba   : > { %2898 = vmatmul.mubr.bf16.gmra.mxu0 %v4651_v54 }
 0x1bb   : > { %2907 = vmatprep.mubr.bf16.mxu0 %v4736_v21 }
 0x1c0   : > { %2715 = vmatmul.mubr.bf16.gmra.mxu1 %v4712_v53 }
 0x1c1   : > { %v2443_v8 = vpop.f32.mrf.mxu0  ;;  %2724 = vmatprep.mubr.bf16.mxu1 %v4753_v7 }
 0x1c2   : > { %v4938_v40 = vadd.f32 %v2443_v8, %v2251_v52  ;;  %2908 = vmatmul.mubr.bf16.gmra.mxu0 %v4686_v32 }
 0x1c3   : > { %2917 = vmatprep.mubr.bf16.mxu0 %v4757_v45  ;;  %v2445_v54 = vpop.f32.mrf.mxu0 }
 0x1c4   : > { %v4943_v57 = vadd.f32 %v2445_v54, %v2253_v30 }
 0x1c5   : > { %v2447_v37 = vpop.f32.mrf.mxu0 }
 0x1c6   : > { %v4947_v31 = vadd.f32 %v2447_v37, %v2255_v56 }
 0x1c7   : > { %v4949_v53 = vpop.f32.mrf.mxu0 }
 0x1c8   : > { %v2260_v2 = vpop.f32.mrf.mxu1  ;;  %2725 = vmatmul.mubr.bf16.gmra.mxu1 %v4736_v21 }
 0x1c9   : > { %v2261_v49 = vadd.f32 %v2260_v2, %v4929_v3  ;;  %v2453_v32 = vpop.f32.mrf.mxu0  ;;  %2734 = vmatprep.mubr.bf16.mxu1 %v4774_v0 }
 0x1ca   : > { %2918 = vmatmul.mubr.bf16.gmra.mxu0 %v4720_v22  ;;  %v2262_v14 = vpop.f32.mrf.mxu1 }
 0x1cb   : > { %v4955_v41 = vadd.f32 %v2453_v32, %v2261_v49  ;;  %v2263_v12 = vadd.f32 %v2262_v14, %v4932_v9  ;;  %2927 = vmatprep.mubr.bf16.mxu0 %v4778_v27  ;;  %v2455_v44 = vpop.f32.mrf.mxu0 }
 0x1cc   : > { %v2264_v35 = vpop.f32.mrf.mxu1 }
 0x1cd   : > { %v4959_v17 = vadd.f32 %v2455_v44, %v2263_v12  ;;  %v2265_v21 = vadd.f32 %v2264_v35, %v4929_v3  ;;  %v2457_v16 = vpop.f32.mrf.mxu0 }
 0x1ce   : > { %v2266_v62 = vpop.f32.mrf.mxu1 }
 0x1cf   : > { %v4962_v26 = vadd.f32 %v2457_v16, %v2265_v21  ;;  %v2267_v55 = vadd.f32 %v2266_v62, %v4932_v9  ;;  %v2459_v22 = vpop.f32.mrf.mxu0 }
 0x1d0   : > { %v2270_v59 = vpop.f32.mrf.mxu1  ;;  %2735 = vmatmul.mubr.bf16.gmra.mxu1 %v4757_v45 }
 0x1d1   : > { %v4966_v25 = vadd.f32 %v2459_v22, %v2267_v55  ;;  %v2271_v34 = vadd.f32 %v2270_v59, %v4929_v3  ;;  %v2463_v47 = vpop.f32.mrf.mxu0  ;;  %2744 = vmatprep.mubr.bf16.mxu1 %v4799_v18 }
 0x1d2   : > { %2928 = vmatmul.mubr.bf16.gmra.mxu0 %v4742_v6  ;;  %v2272_v52 = vpop.f32.mrf.mxu1 }
 0x1d3   : > { %v4971_v46 = vadd.f32 %v2463_v47, %v2271_v34  ;;  %v2273_v30 = vadd.f32 %v2272_v52, %v4932_v9  ;;  %2937 = vmatprep.mubr.bf16.mxu0 %v4796_v60  ;;  %v2465_v8 = vpop.f32.mrf.mxu0  ;;  %v1324_v47 = vshll.u32 %v4839_v24, 16 }
 0x1d4   : > { %v2274_v48 = vpop.f32.mrf.mxu1 }
 0x1d5   : > { %v4975_v54 = vadd.f32 %v2465_v8, %v2273_v30  ;;  %v2275_v45 = vadd.f32 %v2274_v48, %v4929_v3  ;;  %v2467_v56 = vpop.f32.mrf.mxu0 }
 0x1d6   : > { %v2276_v37 = vpop.f32.mrf.mxu1 }
 0x1d7   : > { %v4978_v2 = vadd.f32 %v2467_v56, %v2275_v45  ;;  %v2277_v49 = vadd.f32 %v2276_v37, %v4932_v9  ;;  %v2469_v6 = vpop.f32.mrf.mxu0 }
 0x1d8   : > { %v2280_v32 = vpop.f32.mrf.mxu1  ;;  %2745 = vmatmul.mubr.bf16.gmra.mxu1 %v4778_v27 }
 0x1d9   : > { %v4982_v14 = vadd.f32 %v2469_v6, %v2277_v49  ;;  %v2281_v12 = vadd.f32 %v2280_v32, %v4929_v3  ;;  %v2473_v44 = vpop.f32.mrf.mxu0  ;;  %2754 = vmatprep.mubr.bf16.mxu1 %v4814_v58 }
 0x1da   : > { %2938 = vmatmul.mubr.bf16.gmra.mxu0 %v4764_v61  ;;  %v2282_v35 = vpop.f32.mrf.mxu1  ;;  %v1014_v61 = vsel %vm4204_vm2, %v4821_v5, 0  ;;  %v1326_v5 = vrot.slane %v1324_v47, 1 }
 0x1db   : > { %v4987_v21 = vadd.f32 %v2473_v44, %v2281_v12  ;;  %v2283_v16 = vadd.f32 %v2282_v35, %v4932_v9  ;;  %2947 = vmatprep.mubr.bf16.mxu0 %v4818_v4  ;;  %v2475_v62 = vpop.f32.mrf.mxu0  ;;  %v1329_v6 = vshll.u32 %v1014_v61, 16 }
 0x1dc   : > { %v2284_v55 = vpop.f32.mrf.mxu1 }
 0x1dd   : > { %v4991_v22 = vadd.f32 %v2475_v62, %v2283_v16  ;;  %v2285_v27 = vadd.f32 %v2284_v55, %v4929_v3  ;;  %v2477_v59 = vpop.f32.mrf.mxu0 }
 0x1de   : > { %v2286_v34 = vpop.f32.mrf.mxu1 }
 0x1df   : > { %v4998_v52 = vadd.f32 %v2477_v59, %v2285_v27  ;;  %v2287_v30 = vadd.f32 %v2286_v34, %v4932_v9  ;;  %v2479_v8 = vpop.f32.mrf.mxu0  ;;  %v1331_v27 = vrot.slane %v1329_v6, 1 }
 0x1e0   : > { %v2290_v48 = vpop.f32.mrf.mxu1  ;;  %2755 = vmatmul.mubr.bf16.gmra.mxu1 %v4796_v60 }
 0x1e1   : > { %v5002_v45 = vadd.f32 %v2479_v8, %v2287_v30  ;;  %v2291_v56 = vadd.f32 %v2290_v48, %v4929_v3  ;;  %v2483_v37 = vpop.f32.mrf.mxu0  ;;  %2764 = vmatprep.mubr.bf16.mxu1 %v4833_v43 }
 0x1e2   : > { %2948 = vmatmul.mubr.bf16.gmra.mxu0 %v4787_v38  ;;  %v2292_v49 = vpop.f32.mrf.mxu1  ;;  %v1327_v38 = vor.u32 %v1326_v5, %v1322_v15 }
 0x1e3   : > { %v5008_v32 = vadd.f32 %v2483_v37, %v2291_v56  ;;  %v2293_v12 = vadd.f32 %v2292_v49, %v4932_v9  ;;  %2957 = vmatprep.mubr.bf16.mxu0 %v4830_v36  ;;  %v2485_v60 = vpop.f32.mrf.mxu0 }
 0x1e4   : > { %v2294_v44 = vpop.f32.mrf.mxu1  ;;  %v1332_v49 = vsel %vm1015_vm3, %v1327_v38, %v1331_v27 }
 0x1e5   : > { %v5012_v35 = vadd.f32 %v2485_v60, %v2293_v12  ;;  %v2295_v16 = vadd.f32 %v2294_v44, %v4929_v3  ;;  %v2487_v62 = vpop.f32.mrf.mxu0  ;;  %v1337_v60 = vrot.slane %v1014_v61, 1 }
 0x1e6   : > { %v2296_v55 = vpop.f32.mrf.mxu1 }
 0x1e7   : > { %v5015_v59 = vadd.f32 %v2487_v62, %v2295_v16  ;;  %v2297_v34 = vadd.f32 %v2296_v55, %v4932_v9  ;;  %v2489_v47 = vpop.f32.mrf.mxu0 }
 0x1e8   : > { %v2300_v30 = vpop.f32.mrf.mxu1  ;;  %2765 = vmatmul.mubr.bf16.gmra.mxu1 %v4818_v4  ;;  %v1336_v4 = vrot.slane %v4839_v24, 1 }
 0x1e9   : > { %v5019_v8 = vadd.f32 %v2489_v47, %v2297_v34  ;;  %v2301_v48 = vadd.f32 %v2300_v30, %v4929_v3  ;;  %v2493_v56 = vpop.f32.mrf.mxu0  ;;  %2774 = vmatprep.mubr.bf16.mxu1 %v4845_v23 }
 0x1ea   : > { %2958 = vmatmul.mubr.bf16.gmra.mxu0 %v4806_v29  ;;  %v2302_v37 = vpop.f32.mrf.mxu1  ;;  %v5037_v47 = vsel %vm1256_vm4, %v1336_v4, %v1337_v60 }
 0x1eb   : > { %v5025_v15 = vadd.f32 %v2493_v56, %v2301_v48  ;;  %v2303_v5 = vadd.f32 %v2302_v37, %v4932_v9  ;;  %2967 = vmatprep.mubr.bf16.mxu0 %v1332_v49  ;;  %v2495_v6 = vpop.f32.mrf.mxu0 }
 0x1ec   : > { %v2304_v12 = vpop.f32.mrf.mxu1 }
 0x1ed   : > { %v5029_v44 = vadd.f32 %v2495_v6, %v2303_v5  ;;  %v2305_v16 = vadd.f32 %v2304_v12, %v4929_v3  ;;  %v2497_v62 = vpop.f32.mrf.mxu0 }
 0x1ee   : > { %v2306_v55 = vpop.f32.mrf.mxu1 }
 0x1ef   : > { %v5032_v29 = vadd.f32 %v2497_v62, %v2305_v16  ;;  %v2307_v38 = vadd.f32 %v2306_v55, %v4932_v9  ;;  %v2499_v27 = vpop.f32.mrf.mxu0 }
 0x1f0   : > { %v2310_v34 = vpop.f32.mrf.mxu1  ;;  %2775 = vmatmul.mubr.bf16.gmra.mxu1 %v4830_v36 }
 0x1f1   : > { %v5039_v30 = vadd.f32 %v2499_v27, %v2307_v38  ;;  %v2311_v61 = vadd.f32 %v2310_v34, %v4929_v3  ;;  %v2503_v48 = vpop.f32.mrf.mxu0  ;;  %2784 = vmatprep.mubr.bf16.mxu1 %v5037_v47 }
 0x1f2   : > { %2968 = vmatmul.mubr.bf16.gmra.mxu0 %v4839_v24  ;;  %v2312_v56 = vpop.f32.mrf.mxu1 }
 0x1f3   : > { %v5044_v37 = vadd.f32 %v2503_v48, %v2311_v61  ;;  %v2313_v5 = vadd.f32 %v2312_v56, %v4932_v9  ;;  %v2505_v6 = vpop.f32.mrf.mxu0  ;;  %2977 = vmatprep.mubr.bf16.mxu0 %v4247_v33 }
 0x1f4   : > { %v2314_v36 = vpop.f32.mrf.mxu1 }
 0x1f5   : > { %v5048_v12 = vadd.f32 %v2505_v6, %v2313_v5  ;;  %v2315_v4 = vadd.f32 %v2314_v36, %v4929_v3  ;;  %v2507_v60 = vpop.f32.mrf.mxu0 }
 0x1f6   : > { %v2316_v16 = vpop.f32.mrf.mxu1 }
 0x1f7   : > { %v5051_v62 = vadd.f32 %v2507_v60, %v2315_v4  ;;  %v2317_v55 = vadd.f32 %v2316_v16, %v4932_v9  ;;  %v2509_v24 = vpop.f32.mrf.mxu0 }
 0x1f8   : > { %v2320_v38 = vpop.f32.mrf.mxu1  ;;  %2785 = vmatmul.mubr.bf16.gmra.mxu1 %v1332_v49 }
 0x1f9   : > { %v5054_v27 = vadd.f32 %v2509_v24, %v2317_v55  ;;  %v2321_v34 = vadd.f32 %v2320_v38, %v4929_v3  ;;  %v2513_v61 = vpop.f32.mrf.mxu0  ;;  %3080 = vmatprep.mubr.bf16.mxu1 %v5746_v13 }
 0x1fa   : > { %2978 = vmatmul.mubr.bf16.gmra.mxu0 %v4219_v19  ;;  %v2322_v33 = vpop.f32.mrf.mxu1 }
 0x1fb   : > { %5766 = vst [vmem:[#allocation2_spill] sm:$0xff] %v5054_v27  ;;  %v5059_v48 = vadd.f32 %v2513_v61, %v2321_v34  ;;  %v2323_v56 = vadd.f32 %v2322_v33, %v4932_v9  ;;  %v2515_v5 = vpop.f32.mrf.mxu0  ;;  %3020 = vmatprep.mubr.bf16.mxu0 %v5746_v13 }
 0x1fc   : > { %v2324_v6 = vpop.f32.mrf.mxu1 }
 0x1fd   : > { %5767 = vst [vmem:[#allocation3_spill] sm:$0xff] %v5059_v48  ;;  %v5063_v49 = vadd.f32 %v2515_v5, %v2323_v56  ;;  %v2325_v36 = vadd.f32 %v2324_v6, %v4929_v3  ;;  %v2517_v4 = vpop.f32.mrf.mxu0 }
 0x1fe   : > { %v2326_v60 = vpop.f32.mrf.mxu1 }
 0x1ff   : > { %5768 = vst [vmem:[#allocation4_spill] sm:$0xff] %v5063_v49  ;;  %v5066_v16 = vadd.f32 %v2517_v4, %v2325_v36  ;;  %v2327_v19 = vadd.f32 %v2326_v60, %v4932_v9  ;;  %v2519_v55 = vpop.f32.mrf.mxu0 }
 0x200   : > { %v2330_v24 = vpop.f32.mrf.mxu1  ;;  %3081 = vmatmul.mubr.bf16.vlgmr.msra.gmra.mxu1 %v4704_v11 }
 0x201   : > { %5769 = vst [vmem:[#allocation5_spill] sm:$0xff] %v5066_v16  ;;  %v5071_v38 = vadd.f32 %v2519_v55, %v2327_v19  ;;  %v2331_v34 = vadd.f32 %v2330_v24, %v4929_v3  ;;  %v2523_v61 = vpop.f32.mrf.mxu0  ;;  %3090 = vmatprep.mubr.bf16.mxu1 %v5746_v13 }
 0x202   : > { %3021 = vmatmul.mubr.bf16.vlgmr.msra.gmra.mxu0 %v4471_v10  ;;  %v2332_v33 = vpop.f32.mrf.mxu1 }
 0x203   : > { %5770 = vst [vmem:[#allocation6_spill] sm:$0xff] %v5071_v38  ;;  %v5076_v56 = vadd.f32 %v2523_v61, %v2331_v34  ;;  %v2333_v5 = vadd.f32 %v2332_v33, %v4932_v9  ;;  %v2525_v6 = vpop.f32.mrf.mxu0  ;;  %3030 = vmatprep.mubr.bf16.mxu0 %v5746_v13  ;;  %v273_v34 = vld [vmem:[%s5085_s11] sm:$0xff]  ;;  %v274_v61 = vld [vmem:[%s5085_s11 + $0x8] sm:$0xff] }
 0x204   : > { %v2334_v11 = vpop.f32.mrf.mxu1 }
 0x205   : > { %5771 = vst [vmem:[#allocation7_spill] sm:$0xff] %v5076_v56  ;;  %v5087_v36 = vadd.f32 %v2525_v6, %v2333_v5  ;;  %v2335_v10 = vadd.f32 %v2334_v11, %v4929_v3  ;;  %v2527_v4 = vpop.f32.mrf.mxu0 }
 0x206   : > { %v2336_v60 = vpop.f32.mrf.mxu1 }
 0x207   : > { %5772 = vst [vmem:[#allocation8_spill] sm:$0xff] %v5087_v36  ;;  %v5090_v19 = vadd.f32 %v2527_v4, %v2335_v10  ;;  %v2337_v55 = vadd.f32 %v2336_v60, %v4932_v9  ;;  %v2529_v24 = vpop.f32.mrf.mxu0  ;;  %v5775_v36 = vmov 0   ;;  %v305_v10 = vadd.f32 %v274_v61, %v273_v34 }
 0x208   : > { %v2340_v33 = vpop.f32.mrf.mxu1  ;;  %3091 = vmatmul.mubr.bf16.gmra.mxu1 %v4731_v1  ;;  %v275_v1 = vld [vmem:[%s5085_s11 + $0x10] sm:$0xff] }
 0x209   : > { %5773 = vst [vmem:[#allocation9_spill] sm:$0xff] %v5090_v19  ;;  %v5096_v13 = vadd.f32 %v2529_v24, %v2337_v55  ;;  %v2341_v5 = vadd.f32 %v2340_v33, %v4929_v3  ;;  %v2533_v6 = vpop.f32.mrf.mxu0  ;;  %3100 = vmatprep.mubr.bf16.mxu1 %v5775_v36  ;;  %v343_v55 = vmul.f32 %v273_v34, %v273_v34 }
 0x20a   : > { %3031 = vmatmul.mubr.bf16.gmra.mxu0 %v4511_v50  ;;  %v2342_v11 = vpop.f32.mrf.mxu1  ;;  %v344_v24 = vmul.f32 %v274_v61, %v274_v61  ;;  %v306_v16 = vadd.f32 %v305_v10, %v275_v1 }
 0x20b   : > { %5774 = vst [vmem:[#allocation10_spill] sm:$0xff] %v5096_v13  ;;  %v5101_v4 = vadd.f32 %v2533_v6, %v2341_v5  ;;  %v2343_v60 = vadd.f32 %v2342_v11, %v4932_v9  ;;  %v2535_v19 = vpop.f32.mrf.mxu0  ;;  %3040 = vmatprep.mubr.bf16.mxu0 %v5775_v36  ;;  %v276_v11 = vld [vmem:[%s5085_s11 + $0x18] sm:$0xff] }
 0x20c   : > { %v2344_v13 = vpop.f32.mrf.mxu1  ;;  %v375_v48 = vadd.f32 %v344_v24, %v343_v55 }
 0x20d   : > { %5776 = vst [vmem:[#allocation11_spill] sm:$0xff] %v5101_v4  ;;  %v5106_v33 = vadd.f32 %v2535_v19, %v2343_v60  ;;  %v2345_v56 = vadd.f32 %v2344_v13, %v4929_v3  ;;  %v2537_v38 = vpop.f32.mrf.mxu0  ;;  %v345_v4 = vmul.f32 %v275_v1, %v275_v1  ;;  %v346_v1 = vmul.f32 %v276_v11, %v276_v11 }
 0x20e   : > { %v2346_v50 = vpop.f32.mrf.mxu1 }
 0x20f   : > { %v5109_v49 = vadd.f32 %v2537_v38, %v2345_v56  ;;  %v2347_v5 = vadd.f32 %v2346_v50, %v4932_v9  ;;  %v2539_v6 = vpop.f32.mrf.mxu0  ;;  %v307_v56 = vadd.f32 %v306_v16, %v276_v11  ;;  %v376_v55 = vadd.f32 %v375_v48, %v345_v4 }
 0x210   : > { %v2350_v27 = vpop.f32.mrf.mxu1  ;;  %3101 = vmatmul.mubr.bf16.gmra.mxu1 %v4753_v7  ;;  %v277_v7 = vld [vmem:[%s5085_s11 + $0x20] sm:$0xff] }
 0x211   : > { %5777 = vst [vmem:[#allocation12_spill] sm:$0xff] %v5109_v49  ;;  %v5114_v34 = vadd.f32 %v2539_v6, %v2347_v5  ;;  %v2351_v19 = vadd.f32 %v2350_v27, %v4929_v3  ;;  %v2543_v13 = vpop.f32.mrf.mxu0  ;;  %3110 = vmatprep.mubr.bf16.mxu1 %v5775_v36  ;;  %v308_v6 = vadd.f32 %v307_v56, %v277_v7 }
 0x212   : > { %3041 = vmatmul.mubr.bf16.gmra.mxu0 %v4551_v20  ;;  %v2352_v38 = vpop.f32.mrf.mxu1 }
 0x213   : > { %5778 = vst [vmem:[#allocation13_spill] sm:$0xff] %v5114_v34  ;;  %v5119_v61 = vadd.f32 %v2543_v13, %v2351_v19  ;;  %v2353_v10 = vadd.f32 %v2352_v38, %v4932_v9  ;;  %v2545_v60 = vpop.f32.mrf.mxu0  ;;  %3050 = vmatprep.mubr.bf16.mxu0 %v5775_v36  ;;  %v278_v38 = vld [vmem:[%s5085_s11 + $0x28] sm:$0xff]  ;;  %v377_v34 = vadd.f32 %v376_v55, %v346_v1 }
 0x214   : > { %v2354_v24 = vpop.f32.mrf.mxu1  ;;  %v348_v55 = vmul.f32 %v278_v38, %v278_v38 }
 0x215   : > { %5779 = vst [vmem:[#allocation14_spill] sm:$0xff] %v5119_v61  ;;  %v5124_v27 = vadd.f32 %v2545_v60, %v2353_v10  ;;  %v2355_v50 = vadd.f32 %v2354_v24, %v4929_v3  ;;  %v2547_v5 = vpop.f32.mrf.mxu0  ;;  %v347_v61 = vmul.f32 %v277_v7, %v277_v7  ;;  %v309_v10 = vadd.f32 %v308_v6, %v278_v38 }
 0x216   : > { %v2356_v20 = vpop.f32.mrf.mxu1 }
 0x217   : > { %v5127_v16 = vadd.f32 %v2547_v5, %v2355_v50  ;;  %v2357_v19 = vadd.f32 %v2356_v20, %v4932_v9  ;;  %v2549_v13 = vpop.f32.mrf.mxu0  ;;  %v378_v24 = vadd.f32 %v377_v34, %v347_v61 }
 0x218   : > { %v2360_v49 = vpop.f32.mrf.mxu1  ;;  %3111 = vmatmul.mubr.bf16.gmra.mxu1 %v4774_v0  ;;  %v279_v0 = vld [vmem:[%s5085_s11 + $0x30] sm:$0xff] }
 0x219   : > { %v5132_v48 = vadd.f32 %v2549_v13, %v2357_v19  ;;  %v2361_v4 = vadd.f32 %v2360_v49, %v4929_v3  ;;  %v2553_v11 = vpop.f32.mrf.mxu0  ;;  %3120 = vmatprep.mubr.bf16.mxu1 %v5775_v36  ;;  %v310_v19 = vadd.f32 %v309_v10, %v279_v0 }
 0x21a   : > { %3051 = vmatmul.mubr.bf16.gmra.mxu0 %v4592_v63  ;;  %v2362_v56 = vpop.f32.mrf.mxu1 }
 0x21b   : > { %5780 = vst [vmem:[#allocation15_spill] sm:$0xff] %v5132_v48  ;;  %v5137_v60 = vadd.f32 %v2553_v11, %v2361_v4  ;;  %v2363_v7 = vadd.f32 %v2362_v56, %v4932_v9  ;;  %v2555_v1 = vpop.f32.mrf.mxu0  ;;  %3060 = vmatprep.mubr.bf16.mxu0 %v5775_v36  ;;  %v280_v11 = vld [vmem:[%s5085_s11 + $0x38] sm:$0xff]  ;;  %v349_v56 = vmul.f32 %v279_v0, %v279_v0 }
 0x21c   : > { %v2364_v50 = vpop.f32.mrf.mxu1 }
 0x21d   : > { %5781 = vst [vmem:[#allocation16_spill] sm:$0xff] %v5137_v60  ;;  %v5142_v49 = vadd.f32 %v2555_v1, %v2363_v7  ;;  %v2365_v5 = vadd.f32 %v2364_v50, %v4929_v3  ;;  %v2557_v20 = vpop.f32.mrf.mxu0  ;;  %v379_v60 = vadd.f32 %v378_v24, %v348_v55  ;;  %v311_v7 = vadd.f32 %v310_v19, %v280_v11 }
 0x21e   : > { %v2366_v63 = vpop.f32.mrf.mxu1  ;;  %v350_v24 = vmul.f32 %v280_v11, %v280_v11 }
 0x21f   : > { %v5145_v6 = vadd.f32 %v2557_v20, %v2365_v5  ;;  %v2367_v13 = vadd.f32 %v2366_v63, %v4932_v9  ;;  %v2559_v4 = vpop.f32.mrf.mxu0  ;;  %v380_v50 = vadd.f32 %v379_v60, %v349_v56 }
 0x220   : > { %v2370_v48 = vpop.f32.mrf.mxu1  ;;  %3121 = vmatmul.mubr.bf16.gmra.mxu1 %v4799_v18  ;;  %v281_v18 = vld [vmem:[%s5085_s11 + $0x40] sm:$0xff] }
 0x221   : > { %v5150_v34 = vadd.f32 %v2559_v4, %v2367_v13  ;;  %v2371_v61 = vadd.f32 %v2370_v48, %v4929_v3  ;;  %v2563_v38 = vpop.f32.mrf.mxu0  ;;  %3130 = vmatprep.mubr.bf16.mxu1 %v5775_v36  ;;  %v312_v13 = vadd.f32 %v311_v7, %v281_v18 }
 0x222   : > { %3061 = vmatmul.mubr.bf16.gmra.mxu0 %v4632_v39  ;;  %v2372_v10 = vpop.f32.mrf.mxu1 }
 0x223   : > { %5782 = vst [vmem:[#allocation17_spill] sm:$0xff] %v5150_v34  ;;  %v5155_v1 = vadd.f32 %v2563_v38, %v2371_v61  ;;  %v2373_v0 = vadd.f32 %v2372_v10, %v4932_v9  ;;  %v2565_v55 = vpop.f32.mrf.mxu0  ;;  %3070 = vmatprep.mubr.bf16.mxu0 %v5775_v36  ;;  %v282_v38 = vld [vmem:[%s5085_s11 + $0x48] sm:$0xff]  ;;  %v351_v10 = vmul.f32 %v281_v18, %v281_v18 }
 0x224   : > { %v2374_v5 = vpop.f32.mrf.mxu1 }
 0x225   : > { %5783 = vst [vmem:[#allocation18_spill] sm:$0xff] %v5155_v1  ;;  %v5160_v48 = vadd.f32 %v2565_v55, %v2373_v0  ;;  %v2375_v20 = vadd.f32 %v2374_v5, %v4929_v3  ;;  %v2567_v63 = vpop.f32.mrf.mxu0  ;;  %v381_v1 = vadd.f32 %v380_v50, %v350_v24  ;;  %v313_v0 = vadd.f32 %v312_v13, %v282_v38  ;;  %v283_v50 = vld [vmem:[%s5085_s11 + $0x50] sm:$0xff] }
 0x226   : > { %v2376_v39 = vpop.f32.mrf.mxu1  ;;  %v352_v5 = vmul.f32 %v282_v38, %v282_v38 }
 0x227   : > { %v5163_v19 = vadd.f32 %v2567_v63, %v2375_v20  ;;  %v2377_v4 = vadd.f32 %v2376_v39, %v4932_v9  ;;  %v2569_v61 = vpop.f32.mrf.mxu0 }
 0x228   : > { %v2380_v34 = vpop.f32.mrf.mxu1  ;;  %3131 = vmatmul.mubr.bf16.gmra.mxu1 %v4814_v58  ;;  %v382_v58 = vadd.f32 %v381_v1, %v351_v10 }
 0x229   : > { %v5168_v60 = vadd.f32 %v2569_v61, %v2377_v4  ;;  %v2381_v11 = vadd.f32 %v2380_v34, %v4929_v3  ;;  %v2573_v56 = vpop.f32.mrf.mxu0  ;;  %3140 = vmatprep.mubr.bf16.mxu1 %v5775_v36  ;;  %v314_v61 = vadd.f32 %v313_v0, %v283_v50 }
 0x22a   : > { %3071 = vmatmul.mubr.bf16.gmra.mxu0 %v4671_v28  ;;  %v2382_v7 = vpop.f32.mrf.mxu1 }
 0x22b   : > { %5784 = vst [vmem:[#allocation19_spill] sm:$0xff] %v5168_v60  ;;  %v5173_v55 = vadd.f32 %v2573_v56, %v2381_v11  ;;  %v2383_v18 = vadd.f32 %v2382_v7, %v4932_v9  ;;  %v2575_v24 = vpop.f32.mrf.mxu0  ;;  %v284_v56 = vld [vmem:[%s5085_s11 + $0x58] sm:$0xff]  ;;  %v353_v7 = vmul.f32 %v283_v50, %v283_v50  ;;  %v5193_v50 = vld [vmem:[%s5085_s11 + $0x60] sm:$0xff] }
 0x22c   : > { %v2384_v20 = vpop.f32.mrf.mxu1  ;;  %5786 = vst [vmem:[#allocation21_spill] sm:$0xff] %v5193_v50 }
 0x22d   : > { %5785 = vst [vmem:[#allocation20_spill] sm:$0xff] %v5173_v55  ;;  %v5177_v63 = vadd.f32 %v2575_v24, %v2383_v18  ;;  %v2385_v34 = vadd.f32 %v2384_v20, %v4929_v3  ;;  %v2577_v39 = vpop.f32.mrf.mxu0  ;;  %v383_v55 = vadd.f32 %v382_v58, %v352_v5  ;;  %v315_v18 = vadd.f32 %v314_v61, %v284_v56 }
 0x22e   : > { %v2386_v4 = vpop.f32.mrf.mxu1  ;;  %v354_v5 = vmul.f32 %v284_v56, %v284_v56 }
 0x22f   : > { %v5180_v28 = vadd.f32 %v2577_v39, %v2385_v34  ;;  %v2387_v13 = vadd.f32 %v2386_v4, %v4932_v9  ;;  %v2579_v11 = vpop.f32.mrf.mxu0  ;;  %v384_v58 = vadd.f32 %v383_v55, %v353_v7  ;;  %v355_v55 = vmul.f32 %v5193_v50, %v5193_v50 }
 0x230   : > { %v2390_v60 = vpop.f32.mrf.mxu1  ;;  %3141 = vmatmul.mubr.bf16.gmra.mxu1 %v4833_v43 }
 0x231   : > { %v5185_v1 = vadd.f32 %v2579_v11, %v2387_v13  ;;  %v2391_v38 = vadd.f32 %v2390_v60, %v4929_v3  ;;  %v2583_v10 = vpop.f32.mrf.mxu0  ;;  %3150 = vmatprep.mubr.bf16.mxu1 %v5775_v36  ;;  %v316_v11 = vadd.f32 %v315_v18, %v5193_v50  ;;  %v385_v56 = vadd.f32 %v384_v58, %v354_v5  ;;  %v5217_v5 = vld [vmem:[%s5085_s11 + $0x70] sm:$0xff] }
 0x232   : > { %v2392_v0 = vpop.f32.mrf.mxu1 }
 0x233   : > { %v5189_v24 = vadd.f32 %v2583_v10, %v2391_v38  ;;  %v2393_v20 = vadd.f32 %v2392_v0, %v4932_v9  ;;  %v2585_v34 = vpop.f32.mrf.mxu0  ;;  %v5203_v0 = vld [vmem:[%s5085_s11 + $0x68] sm:$0xff]  ;;  %v386_v58 = vadd.f32 %v385_v56, %v355_v55  ;;  %v357_v55 = vmul.f32 %v5217_v5, %v5217_v5 }
 0x234   : > { %v2394_v43 = vpop.f32.mrf.mxu1 }
 0x235   : > { %v5195_v39 = vadd.f32 %v2585_v34, %v2393_v20  ;;  %v2395_v60 = vadd.f32 %v2394_v43, %v4929_v3  ;;  %v2587_v4 = vpop.f32.mrf.mxu0 }
 0x236   : > { %v2396_v13 = vpop.f32.mrf.mxu1 }
 0x237   : > { %v5199_v61 = vadd.f32 %v2587_v4, %v2395_v60  ;;  %v2397_v38 = vadd.f32 %v2396_v13, %v4932_v9  ;;  %v2589_v10 = vpop.f32.mrf.mxu0  ;;  %v317_v60 = vadd.f32 %v316_v11, %v5203_v0 }
 0x238   : > { %v2400_v7 = vpop.f32.mrf.mxu1  ;;  %3151 = vmatmul.mubr.bf16.gmra.mxu1 %v4845_v23  ;;  %v356_v23 = vmul.f32 %v5203_v0, %v5203_v0 }
 0x239   : > { %5787 = vst [vmem:[#allocation22_spill] sm:$0xff] %v5199_v61  ;;  %v5208_v20 = vadd.f32 %v2589_v10, %v2397_v38  ;;  %v2401_v34 = vadd.f32 %v2400_v7, %v4929_v3  ;;  %v2593_v18 = vpop.f32.mrf.mxu0  ;;  %3160 = vmatprep.mubr.bf16.mxu1 %v5775_v36  ;;  %v318_v11 = vadd.f32 %v317_v60, %v5217_v5 }
 0x23a   : > { %v2402_v43 = vpop.f32.mrf.mxu1  ;;  %v387_v56 = vadd.f32 %v386_v58, %v356_v23  ;;  %v5245_v58 = vld [vmem:[%s5085_s11 + $0x80] sm:$0xff] }
 0x23b   : > { %5788 = vst [vmem:[#allocation23_spill] sm:$0xff] %v5208_v20  ;;  %v5213_v4 = vadd.f32 %v2593_v18, %v2401_v34  ;;  %v2403_v13 = vadd.f32 %v2402_v43, %v4932_v9  ;;  %v2595_v50 = vpop.f32.mrf.mxu0 }
 0x23c   : > { %v2404_v38 = vpop.f32.mrf.mxu1 }
 0x23d   : > { %5789 = vst [vmem:[#allocation24_spill] sm:$0xff] %v5213_v4  ;;  %v5221_v10 = vadd.f32 %v2595_v50, %v2403_v13  ;;  %v2405_v7 = vadd.f32 %v2404_v38, %v4929_v3  ;;  %v2597_v20 = vpop.f32.mrf.mxu0  ;;  %v5229_v4 = vld [vmem:[%s5085_s11 + $0x78] sm:$0xff] }
 0x23e   : > { %v2406_v61 = vpop.f32.mrf.mxu1  ;;  %5790 = vst [vmem:[#allocation25_spill] sm:$0xff] %v5229_v4  ;;  %v319_v38 = vadd.f32 %v318_v11, %v5229_v4 }
 0x23f   : > { %v5225_v34 = vadd.f32 %v2597_v20, %v2405_v7  ;;  %v2407_v18 = vadd.f32 %v2406_v61, %v4932_v9  ;;  %v2599_v43 = vpop.f32.mrf.mxu0  ;;  %v2257_v61 = vadd.f32 %v4945_v42, %v4932_v9 }
 0x240   : > { %v2636_v50 = vpop.f32.mrf.mxu1  ;;  %3161 = vmatmul.mubr.bf16.gmra.mxu1 %v5037_v47  ;;  %v358_v47 = vmul.f32 %v5229_v4, %v5229_v4 }
 0x241   : > { %v5234_v3 = vadd.f32 %v2599_v43, %v2407_v18  ;;  %v2637_v13 = vadd.f32 %v2636_v50, %v4938_v40  ;;  %3170 = vmatprep.mubr.bf16.mxu1 %v5775_v36  ;;  %v388_v40 = vadd.f32 %v387_v56, %v357_v55  ;;  %v2450_v43 = vadd.f32 %v4949_v53, %v2257_v61 }
 0x242   : > { %v2829_v20 = vpop.f32.mrf.mxu0  ;;  %v2638_v60 = vpop.f32.mrf.mxu1  ;;  %v359_v55 = vmul.f32 %v5245_v58, %v5245_v58 }
 0x243   : > { %v5241_v7 = vadd.f32 %v2829_v20, %v2637_v13  ;;  %v2639_v23 = vadd.f32 %v2638_v60, %v4943_v57  ;;  %v320_v13 = vadd.f32 %v319_v38, %v5245_v58  ;;  %v5257_v60 = vld [vmem:[%s5085_s11 + $0x88] sm:$0xff]  ;;  %v389_v56 = vadd.f32 %v388_v40, %v358_v47 }
 0x244   : > { %v2831_v18 = vpop.f32.mrf.mxu0  ;;  %v2640_v36 = vpop.f32.mrf.mxu1  ;;  %v360_v47 = vmul.f32 %v5257_v60, %v5257_v60 }
 0x245   : > { %v5250_v9 = vadd.f32 %v2831_v18, %v2639_v23  ;;  %v2641_v42 = vadd.f32 %v2640_v36, %v4947_v31  ;;  %v321_v18 = vadd.f32 %v320_v13, %v5257_v60  ;;  %v390_v40 = vadd.f32 %v389_v56, %v359_v55 }
 0x246   : > { %v2833_v11 = vpop.f32.mrf.mxu0  ;;  %v2642_v50 = vpop.f32.mrf.mxu1 }
 0x247   : > { %v5254_v57 = vadd.f32 %v2833_v11, %v2641_v42  ;;  %v2643_v20 = vadd.f32 %v2642_v50, %v2450_v43  ;;  %v5270_v42 = vld [vmem:[%s5085_s11 + $0x90] sm:$0xff]  ;;  %v391_v56 = vadd.f32 %v390_v40, %v360_v47 }
 0x248   : > { %v2835_v4 = vpop.f32.mrf.mxu0  ;;  %v2646_v53 = vpop.f32.mrf.mxu1  ;;  %3171 = vmatmul.mubr.bf16.gmra.mxu1 %v4385_v51  ;;  %5791 = vst [vmem:[#allocation26_spill] sm:$0xff] %v5270_v42  ;;  %v322_v13 = vadd.f32 %v321_v18, %v5270_v42  ;;  %v361_v55 = vmul.f32 %v5270_v42, %v5270_v42 }
 0x249   : > { %v5262_v61 = vadd.f32 %v2835_v4, %v2643_v20  ;;  %v2647_v31 = vadd.f32 %v2646_v53, %v4955_v41 }
 0x24a   : > { %v2839_v23 = vpop.f32.mrf.mxu0  ;;  %v2648_v38 = vpop.f32.mrf.mxu1  ;;  %v392_v40 = vadd.f32 %v391_v56, %v361_v55 }
 0x24b   : > { %v5266_v36 = vadd.f32 %v2839_v23, %v2647_v31  ;;  %v2649_v43 = vadd.f32 %v2648_v38, %v4959_v17  ;;  %v5282_v31 = vld [vmem:[%s5085_s11 + $0x98] sm:$0xff] }
 0x24c   : > { %v2841_v51 = vpop.f32.mrf.mxu0  ;;  %v2650_v4 = vpop.f32.mrf.mxu1  ;;  %5792 = vst [vmem:[#allocation27_spill] sm:$0xff] %v5282_v31  ;;  %v323_v18 = vadd.f32 %v322_v13, %v5282_v31  ;;  %v362_v47 = vmul.f32 %v5282_v31, %v5282_v31 }
 0x24d   : > { %v5274_v11 = vadd.f32 %v2841_v51, %v2649_v43  ;;  %v2651_v41 = vadd.f32 %v2650_v4, %v4962_v26 }
 0x24e   : > { %v2843_v50 = vpop.f32.mrf.mxu0  ;;  %v2652_v20 = vpop.f32.mrf.mxu1  ;;  %v393_v56 = vadd.f32 %v392_v40, %v362_v47 }
 0x24f   : > { %v5278_v53 = vadd.f32 %v2843_v50, %v2651_v41  ;;  %v2653_v17 = vadd.f32 %v2652_v20, %v4966_v25  ;;  %v5294_v50 = vld [vmem:[%s5085_s11 + $0xa0] sm:$0xff] }
 0x250   : > { %v2845_v23 = vpop.f32.mrf.mxu0  ;;  %v2656_v38 = vpop.f32.mrf.mxu1  ;;  %5793 = vst [vmem:[#allocation28_spill] sm:$0xff] %v5294_v50  ;;  %v324_v13 = vadd.f32 %v323_v18, %v5294_v50  ;;  %v363_v55 = vmul.f32 %v5294_v50, %v5294_v50 }
 0x251   : > { %v5286_v43 = vadd.f32 %v2845_v23, %v2653_v17  ;;  %v2657_v26 = vadd.f32 %v2656_v38, %v4971_v46 }
 0x252   : > { %v2849_v51 = vpop.f32.mrf.mxu0  ;;  %v2658_v4 = vpop.f32.mrf.mxu1  ;;  %v394_v40 = vadd.f32 %v393_v56, %v363_v55 }
 0x253   : > { %v5290_v41 = vadd.f32 %v2849_v51, %v2657_v26  ;;  %v2659_v25 = vadd.f32 %v2658_v4, %v4975_v54  ;;  %v5306_v51 = vld [vmem:[%s5085_s11 + $0xa8] sm:$0xff] }
 0x254   : > { %v2851_v20 = vpop.f32.mrf.mxu0  ;;  %v2660_v17 = vpop.f32.mrf.mxu1  ;;  %5794 = vst [vmem:[#allocation29_spill] sm:$0xff] %v5306_v51  ;;  %v325_v18 = vadd.f32 %v324_v13, %v5306_v51  ;;  %v364_v47 = vmul.f32 %v5306_v51, %v5306_v51 }
 0x255   : > { %v5298_v23 = vadd.f32 %v2851_v20, %v2659_v25  ;;  %v2661_v46 = vadd.f32 %v2660_v17, %v4978_v2 }
 0x256   : > { %v2853_v38 = vpop.f32.mrf.mxu0  ;;  %v2662_v42 = vpop.f32.mrf.mxu1  ;;  %v395_v56 = vadd.f32 %v394_v40, %v364_v47 }
 0x257   : > { %v5302_v26 = vadd.f32 %v2853_v38, %v2661_v46  ;;  %v2663_v54 = vadd.f32 %v2662_v42, %v4982_v14  ;;  %v5318_v42 = vld [vmem:[%s5085_s11 + $0xb0] sm:$0xff] }
 0x258   : > { %v2855_v4 = vpop.f32.mrf.mxu0  ;;  %v2666_v25 = vpop.f32.mrf.mxu1  ;;  %5797 = vst [vmem:[#allocation32_spill] sm:$0xff] %v5318_v42  ;;  %v326_v13 = vadd.f32 %v325_v18, %v5318_v42  ;;  %v365_v55 = vmul.f32 %v5318_v42, %v5318_v42 }
 0x259   : > { %v5310_v20 = vadd.f32 %v2855_v4, %v2663_v54  ;;  %v2667_v2 = vadd.f32 %v2666_v25, %v4987_v21 }
 0x25a   : > { %v2859_v17 = vpop.f32.mrf.mxu0  ;;  %v2668_v31 = vpop.f32.mrf.mxu1  ;;  %v396_v40 = vadd.f32 %v395_v56, %v365_v55 }
 0x25b   : > { %5795 = vst [vmem:[#allocation30_spill] sm:$0xff] %v5310_v20  ;;  %v5314_v46 = vadd.f32 %v2859_v17, %v2667_v2  ;;  %v2669_v14 = vadd.f32 %v2668_v31, %v4991_v22  ;;  %v5330_v31 = vld [vmem:[%s5085_s11 + $0xb8] sm:$0xff] }
 0x25c   : > { %v2861_v38 = vpop.f32.mrf.mxu0  ;;  %v2670_v54 = vpop.f32.mrf.mxu1  ;;  %5800 = vst [vmem:[#allocation35_spill] sm:$0xff] %v5330_v31  ;;  %v327_v18 = vadd.f32 %v326_v13, %v5330_v31  ;;  %v366_v47 = vmul.f32 %v5330_v31, %v5330_v31 }
 0x25d   : > { %5796 = vst [vmem:[#allocation31_spill] sm:$0xff] %v5314_v46  ;;  %v5322_v4 = vadd.f32 %v2861_v38, %v2669_v14  ;;  %v2671_v21 = vadd.f32 %v2670_v54, %v4998_v52 }
 0x25e   : > { %v2863_v25 = vpop.f32.mrf.mxu0  ;;  %v2672_v50 = vpop.f32.mrf.mxu1  ;;  %v397_v56 = vadd.f32 %v396_v40, %v366_v47 }
 0x25f   : > { %5798 = vst [vmem:[#allocation33_spill] sm:$0xff] %v5322_v4  ;;  %v5326_v2 = vadd.f32 %v2863_v25, %v2671_v21  ;;  %v2673_v22 = vadd.f32 %v2672_v50, %v5002_v45  ;;  %v5342_v50 = vld [vmem:[%s5085_s11 + $0xc0] sm:$0xff] }
 0x260   : > { %v2865_v17 = vpop.f32.mrf.mxu0  ;;  %v2676_v14 = vpop.f32.mrf.mxu1  ;;  %5803 = vst [vmem:[#allocation38_spill] sm:$0xff] %v5342_v50  ;;  %v328_v13 = vadd.f32 %v327_v18, %v5342_v50  ;;  %v367_v55 = vmul.f32 %v5342_v50, %v5342_v50 }
 0x261   : > { %5799 = vst [vmem:[#allocation34_spill] sm:$0xff] %v5326_v2  ;;  %v5334_v38 = vadd.f32 %v2865_v17, %v2673_v22  ;;  %v2677_v52 = vadd.f32 %v2676_v14, %v5008_v32 }
 0x262   : > { %v2869_v54 = vpop.f32.mrf.mxu0  ;;  %v2678_v51 = vpop.f32.mrf.mxu1  ;;  %v398_v40 = vadd.f32 %v397_v56, %v367_v55 }
 0x263   : > { %5801 = vst [vmem:[#allocation36_spill] sm:$0xff] %v5334_v38  ;;  %v5338_v21 = vadd.f32 %v2869_v54, %v2677_v52  ;;  %v2679_v45 = vadd.f32 %v2678_v51, %v5012_v35  ;;  %v5354_v51 = vld [vmem:[%s5085_s11 + $0xc8] sm:$0xff]  ;;  %v5826_v38 = vld [vmem:[#allocation10_spill] sm:$0xff] }
 0x264   : > { %v2871_v25 = vpop.f32.mrf.mxu0  ;;  %v2680_v22 = vpop.f32.mrf.mxu1  ;;  %5806 = vst [vmem:[#allocation41_spill] sm:$0xff] %v5354_v51  ;;  %v329_v18 = vadd.f32 %v328_v13, %v5354_v51  ;;  %v368_v47 = vmul.f32 %v5354_v51, %v5354_v51 }
 0x265   : > { %5802 = vst [vmem:[#allocation37_spill] sm:$0xff] %v5338_v21  ;;  %v5346_v17 = vadd.f32 %v2871_v25, %v2679_v45  ;;  %v2681_v32 = vadd.f32 %v2680_v22, %v5015_v59 }
 0x266   : > { %v2873_v14 = vpop.f32.mrf.mxu0  ;;  %v2682_v42 = vpop.f32.mrf.mxu1  ;;  %v399_v56 = vadd.f32 %v398_v40, %v368_v47 }
 0x267   : > { %5804 = vst [vmem:[#allocation39_spill] sm:$0xff] %v5346_v17  ;;  %v5350_v52 = vadd.f32 %v2873_v14, %v2681_v32  ;;  %v2683_v35 = vadd.f32 %v2682_v42, %v5019_v8  ;;  %v5366_v42 = vld [vmem:[%s5085_s11 + $0xd0] sm:$0xff] }
 0x268   : > { %v2875_v54 = vpop.f32.mrf.mxu0  ;;  %v2686_v45 = vpop.f32.mrf.mxu1  ;;  %5809 = vst [vmem:[#allocation44_spill] sm:$0xff] %v5366_v42  ;;  %v330_v13 = vadd.f32 %v329_v18, %v5366_v42  ;;  %v369_v55 = vmul.f32 %v5366_v42, %v5366_v42 }
 0x269   : > { %5805 = vst [vmem:[#allocation40_spill] sm:$0xff] %v5350_v52  ;;  %v5358_v25 = vadd.f32 %v2875_v54, %v2683_v35  ;;  %v2687_v59 = vadd.f32 %v2686_v45, %v5025_v15 }
 0x26a   : > { %v2879_v22 = vpop.f32.mrf.mxu0  ;;  %v2688_v31 = vpop.f32.mrf.mxu1  ;;  %v400_v40 = vadd.f32 %v399_v56, %v369_v55 }
 0x26b   : > { %5807 = vst [vmem:[#allocation42_spill] sm:$0xff] %v5358_v25  ;;  %v5362_v32 = vadd.f32 %v2879_v22, %v2687_v59  ;;  %v2689_v8 = vadd.f32 %v2688_v31, %v5029_v44  ;;  %v5378_v31 = vld [vmem:[%s5085_s11 + $0xd8] sm:$0xff] }
 0x26c   : > { %v2881_v14 = vpop.f32.mrf.mxu0  ;;  %v2690_v35 = vpop.f32.mrf.mxu1  ;;  %5812 = vst [vmem:[#allocation47_spill] sm:$0xff] %v5378_v31  ;;  %v331_v18 = vadd.f32 %v330_v13, %v5378_v31  ;;  %v370_v47 = vmul.f32 %v5378_v31, %v5378_v31 }
 0x26d   : > { %5808 = vst [vmem:[#allocation43_spill] sm:$0xff] %v5362_v32  ;;  %v5370_v54 = vadd.f32 %v2881_v14, %v2689_v8  ;;  %v2691_v15 = vadd.f32 %v2690_v35, %v5032_v29 }
 0x26e   : > { %v2883_v45 = vpop.f32.mrf.mxu0  ;;  %v2692_v50 = vpop.f32.mrf.mxu1  ;;  %v401_v56 = vadd.f32 %v400_v40, %v370_v47 }
 0x26f   : > { %5810 = vst [vmem:[#allocation45_spill] sm:$0xff] %v5370_v54  ;;  %v5374_v59 = vadd.f32 %v2883_v45, %v2691_v15  ;;  %v2693_v44 = vadd.f32 %v2692_v50, %v5039_v30  ;;  %v5390_v50 = vld [vmem:[%s5085_s11 + $0xe0] sm:$0xff] }
 0x270   : > { %v2885_v22 = vpop.f32.mrf.mxu0  ;;  %v2696_v8 = vpop.f32.mrf.mxu1  ;;  %5814 = vst [vmem:[#allocation49_spill] sm:$0xff] %v5390_v50  ;;  %v332_v13 = vadd.f32 %v331_v18, %v5390_v50  ;;  %v371_v55 = vmul.f32 %v5390_v50, %v5390_v50 }
 0x271   : > { %5811 = vst [vmem:[#allocation46_spill] sm:$0xff] %v5374_v59  ;;  %v5382_v14 = vadd.f32 %v2885_v22, %v2693_v44  ;;  %v2697_v29 = vadd.f32 %v2696_v8, %v5044_v37 }
 0x272   : > { %v2889_v35 = vpop.f32.mrf.mxu0  ;;  %v2698_v51 = vpop.f32.mrf.mxu1  ;;  %v402_v40 = vadd.f32 %v401_v56, %v371_v55 }
 0x273   : > { %5813 = vst [vmem:[#allocation48_spill] sm:$0xff] %v5382_v14  ;;  %v5386_v15 = vadd.f32 %v2889_v35, %v2697_v29  ;;  %v2699_v30 = vadd.f32 %v2698_v51, %v5048_v12  ;;  %v5815_v12 = vld [vmem:[#allocation2_spill] sm:$0xff]  ;;  %v5402_v35 = vld [vmem:[%s5085_s11 + $0xe8] sm:$0xff] }
 0x274   : > { %v2891_v45 = vpop.f32.mrf.mxu0  ;;  %v2700_v44 = vpop.f32.mrf.mxu1  ;;  %5816 = vst [vmem:[#allocation2_spill] sm:$0xff] %v5402_v35  ;;  %v333_v18 = vadd.f32 %v332_v13, %v5402_v35  ;;  %v372_v47 = vmul.f32 %v5402_v35, %v5402_v35 }
 0x275   : > { %v5394_v22 = vadd.f32 %v2891_v45, %v2699_v30  ;;  %v2701_v37 = vadd.f32 %v2700_v44, %v5051_v62  ;;  %v5817_v62 = vld [vmem:[#allocation3_spill] sm:$0xff] }
 0x276   : > { %v2893_v8 = vpop.f32.mrf.mxu0  ;;  %v2702_v42 = vpop.f32.mrf.mxu1  ;;  %v403_v55 = vadd.f32 %v402_v40, %v372_v47 }
 0x277   : > { %v5398_v29 = vadd.f32 %v2893_v8, %v2701_v37  ;;  %v2703_v51 = vadd.f32 %v2702_v42, %v5815_v12  ;;  %v5818_v42 = vld [vmem:[#allocation4_spill] sm:$0xff] }
 0x278   : > { %v2895_v31 = vpop.f32.mrf.mxu0  ;;  %v2706_v30 = vpop.f32.mrf.mxu1  ;;  %v5414_v12 = vld [vmem:[%s5085_s11 + $0xf0] sm:$0xff] }
 0x279   : > { %v5406_v45 = vadd.f32 %v2895_v31, %v2703_v51  ;;  %v2707_v44 = vadd.f32 %v2706_v30, %v5817_v62  ;;  %5819 = vst [vmem:[#allocation3_spill] sm:$0xff] %v5414_v12  ;;  %v5820_v30 = vld [vmem:[#allocation5_spill] sm:$0xff]  ;;  %v334_v13 = vadd.f32 %v333_v18, %v5414_v12  ;;  %v373_v35 = vmul.f32 %v5414_v12, %v5414_v12 }
 0x27a   : > { %v2899_v14 = vpop.f32.mrf.mxu0  ;;  %v2708_v59 = vpop.f32.mrf.mxu1 }
 0x27b   : > { %v5410_v37 = vadd.f32 %v2899_v14, %v2707_v44  ;;  %v2709_v8 = vadd.f32 %v2708_v59, %v5818_v42  ;;  %v5821_v44 = vld [vmem:[#allocation6_spill] sm:$0xff]  ;;  %v5426_v42 = vld [vmem:[%s5085_s11 + $0xf8] sm:$0xff]  ;;  %v404_v17 = vadd.f32 %v403_v55, %v373_v35 }
 0x27c   : > { %v2901_v50 = vpop.f32.mrf.mxu0  ;;  %v2710_v31 = vpop.f32.mrf.mxu1  ;;  %5822 = vst [vmem:[#allocation4_spill] sm:$0xff] %v5426_v42  ;;  %v335_v18 = vadd.f32 %v334_v13, %v5426_v42 }
 0x27d   : > { %v5418_v51 = vadd.f32 %v2901_v50, %v2709_v8  ;;  %v2711_v62 = vadd.f32 %v2710_v31, %v5820_v30  ;;  %v5823_v8 = vld [vmem:[#allocation7_spill] sm:$0xff] }
 0x27e   : > { %v2903_v54 = vpop.f32.mrf.mxu0  ;;  %v2712_v32 = vpop.f32.mrf.mxu1 }
 0x27f   : > { %v5422_v14 = vadd.f32 %v2903_v54, %v2711_v62  ;;  %v2713_v59 = vadd.f32 %v2712_v32, %v5821_v44  ;;  %v5824_v62 = vld [vmem:[#allocation8_spill] sm:$0xff]  ;;  %v374_v44 = vmul.f32 %v5426_v42, %v5426_v42  ;;  %v5827_v42 = vld [vmem:[#allocation11_spill] sm:$0xff] }
 0x280   : > { %v2905_v56 = vpop.f32.mrf.mxu0  ;;  %v2716_v25 = vpop.f32.mrf.mxu1 }
 0x281   : > { %v5430_v50 = vadd.f32 %v2905_v56, %v2713_v59  ;;  %v2717_v31 = vadd.f32 %v2716_v25, %v5823_v8  ;;  %v5825_v59 = vld [vmem:[#allocation9_spill] sm:$0xff] }
 0x282   : > { %v2909_v30 = vpop.f32.mrf.mxu0  ;;  %v2718_v52 = vpop.f32.mrf.mxu1 }
 0x283   : > { %v5434_v54 = vadd.f32 %v2909_v30, %v2717_v31  ;;  %v2719_v32 = vadd.f32 %v2718_v52, %v5824_v62  ;;  %v336_v31 = vrot.slane %v335_v18, 4  ;;  %v405_v30 = vadd.f32 %v404_v17, %v374_v44 }
 0x284   : > { %v2911_v12 = vpop.f32.mrf.mxu0  ;;  %v2720_v47 = vpop.f32.mrf.mxu1 }
 0x285   : > { %v5439_v40 = vadd.f32 %v2911_v12, %v2719_v32  ;;  %v2721_v56 = vadd.f32 %v2720_v47, %v5825_v59  ;;  %v337_v47 = vadd.f32 %v336_v31, %v335_v18  ;;  %v406_v59 = vrot.slane %v405_v30, 4 }
 0x286   : > { %v2913_v21 = vpop.f32.mrf.mxu0  ;;  %v2722_v25 = vpop.f32.mrf.mxu1 }
 0x287   : > { %v5442_v8 = vadd.f32 %v2913_v21, %v2721_v56  ;;  %v2723_v13 = vadd.f32 %v2722_v25, %v5826_v38  ;;  %v5829_v38 = vld [vmem:[#allocation12_spill] sm:$0xff]  ;;  %v407_v20 = vadd.f32 %v406_v59, %v405_v30 }
 0x288   : > { %v2915_v2 = vpop.f32.mrf.mxu0  ;;  %v2726_v52 = vpop.f32.mrf.mxu1 }
 0x289   : > { %v5445_v62 = vadd.f32 %v2915_v2, %v2723_v13  ;;  %v2727_v35 = vadd.f32 %v2726_v52, %v5827_v42  ;;  %v5831_v13 = vld [vmem:[#allocation13_spill] sm:$0xff]  ;;  %v338_v52 = vrot.slane %v337_v47, 2 }
 0x28a   : > { %v2919_v55 = vpop.f32.mrf.mxu0  ;;  %v2728_v4 = vpop.f32.mrf.mxu1 }
 0x28b   : > { %v5448_v12 = vadd.f32 %v2919_v55, %v2727_v35  ;;  %v2729_v32 = vadd.f32 %v2728_v4, %v5106_v33  ;;  %v5832_v33 = vld [vmem:[#allocation14_spill] sm:$0xff] }
 0x28c   : > { %v2921_v21 = vpop.f32.mrf.mxu0  ;;  %v2730_v56 = vpop.f32.mrf.mxu1 }
 0x28d   : > { %5828 = vst [vmem:[#allocation5_spill] sm:$0xff] %v5448_v12  ;;  %v5451_v46 = vadd.f32 %v2921_v21, %v2729_v32  ;;  %v2731_v17 = vadd.f32 %v2730_v56, %v5829_v38  ;;  %v339_v56 = vadd.f32 %v338_v52, %v337_v47  ;;  %v408_v38 = vrot.slane %v407_v20, 2 }
 0x28e   : > { %v2923_v44 = vpop.f32.mrf.mxu0  ;;  %v2732_v25 = vpop.f32.mrf.mxu1 }
 0x28f   : > { %v5454_v2 = vadd.f32 %v2923_v44, %v2731_v17  ;;  %v2733_v42 = vadd.f32 %v2732_v25, %v5831_v13 }
 0x290   : > { %v2925_v35 = vpop.f32.mrf.mxu0  ;;  %v2736_v55 = vpop.f32.mrf.mxu1 }
 0x291   : > { %5830 = vst [vmem:[#allocation6_spill] sm:$0xff] %v5454_v2  ;;  %v5457_v12 = vadd.f32 %v2925_v35, %v2733_v42  ;;  %v2737_v4 = vadd.f32 %v2736_v55, %v5832_v33  ;;  %v5835_v42 = vld [vmem:[#allocation15_spill] sm:$0xff]  ;;  %v340_v55 = vrot.slane %v339_v56, 1  ;;  %v409_v33 = vadd.f32 %v408_v38, %v407_v20 }
 0x292   : > { %v2929_v18 = vpop.f32.mrf.mxu0  ;;  %v2738_v31 = vpop.f32.mrf.mxu1 }
 0x293   : > { %v5460_v32 = vadd.f32 %v2929_v18, %v2737_v4  ;;  %v2739_v21 = vadd.f32 %v2738_v31, %v5124_v27  ;;  %v5836_v27 = vld [vmem:[#allocation16_spill] sm:$0xff] }
 0x294   : > { %v2931_v17 = vpop.f32.mrf.mxu0  ;;  %v2740_v44 = vpop.f32.mrf.mxu1 }
 0x295   : > { %5833 = vst [vmem:[#allocation7_spill] sm:$0xff] %v5460_v32  ;;  %v5463_v2 = vadd.f32 %v2931_v17, %v2739_v21  ;;  %v2741_v30 = vadd.f32 %v2740_v44, %v5127_v16  ;;  %v341_v17 = vadd.f32 %v340_v55, %v339_v56  ;;  %v410_v44 = vrot.slane %v409_v33, 1  ;;  %v5840_v56 = vld [vmem:[#allocation18_spill] sm:$0xff] }
 0x296   : > { %v2933_v59 = vpop.f32.mrf.mxu0  ;;  %v2742_v25 = vpop.f32.mrf.mxu1 }
 0x297   : > { %v5466_v13 = vadd.f32 %v2933_v59, %v2741_v30  ;;  %v2743_v35 = vadd.f32 %v2742_v25, %v5835_v42 }
 0x298   : > { %v2935_v4 = vpop.f32.mrf.mxu0  ;;  %v2746_v18 = vpop.f32.mrf.mxu1 }
 0x299   : > { %5834 = vst [vmem:[#allocation8_spill] sm:$0xff] %v5466_v13  ;;  %v5469_v32 = vadd.f32 %v2935_v4, %v2743_v35  ;;  %v2747_v47 = vadd.f32 %v2746_v18, %v5836_v27  ;;  %v5838_v35 = vld [vmem:[#allocation17_spill] sm:$0xff]  ;;  %v5481_v18 = vmul.f32 0.00390625, %v341_v17  ;;  %v411_v27 = vadd.f32 %v410_v44, %v409_v33 }
 0x29a   : > { %v2939_v52 = vpop.f32.mrf.mxu0  ;;  %v2748_v31 = vpop.f32.mrf.mxu1 }
 0x29b   : > { %v5472_v21 = vadd.f32 %v2939_v52, %v2747_v47  ;;  %v2749_v16 = vadd.f32 %v2748_v31, %v5142_v49 }
 0x29c   : > { %v2941_v30 = vpop.f32.mrf.mxu0  ;;  %v2750_v59 = vpop.f32.mrf.mxu1 }
 0x29d   : > { %v5475_v13 = vadd.f32 %v2941_v30, %v2749_v16  ;;  %v2751_v20 = vadd.f32 %v2750_v59, %v5145_v6  ;;  %v412_v59 = vmul.f32 0.00390625, %v411_v27  ;;  %v5843_v27 = vld [vmem:[#allocation20_spill] sm:$0xff] }
 0x29e   : > { %v2943_v38 = vpop.f32.mrf.mxu0  ;;  %v2752_v25 = vpop.f32.mrf.mxu1 }
 0x29f   : > { %v5478_v42 = vadd.f32 %v2943_v38, %v2751_v20  ;;  %v2753_v4 = vadd.f32 %v2752_v25, %v5838_v35  ;;  %v413_v20 = vmul.f32 %v5481_v18, %v5481_v18 }
 0x2a0   : > { %v2945_v47 = vpop.f32.mrf.mxu0  ;;  %v2756_v52 = vpop.f32.mrf.mxu1 }
 0x2a1   : > { %5837 = vst [vmem:[#allocation9_spill] sm:$0xff] %v5478_v42  ;;  %v5483_v49 = vadd.f32 %v2945_v47, %v2753_v4  ;;  %v2757_v55 = vadd.f32 %v2756_v52, %v5840_v56  ;;  %v5842_v47 = vld [vmem:[#allocation19_spill] sm:$0xff]  ;;  %v414_v56 = vsub.f32 %v412_v59, %v413_v20 }
 0x2a2   : > { %v2949_v31 = vpop.f32.mrf.mxu0  ;;  %v2758_v16 = vpop.f32.mrf.mxu1 }
 0x2a3   : > { %5839 = vst [vmem:[#allocation10_spill] sm:$0xff] %v5483_v49  ;;  %v5486_v30 = vadd.f32 %v2949_v31, %v2757_v55  ;;  %v2759_v6 = vadd.f32 %v2758_v16, %v5160_v48 }
 0x2a4   : > { %v2951_v38 = vpop.f32.mrf.mxu0  ;;  %v2760_v17 = vpop.f32.mrf.mxu1 }
 0x2a5   : > { %5841 = vst [vmem:[#allocation11_spill] sm:$0xff] %v5486_v30  ;;  %v5491_v25 = vadd.f32 %v2951_v38, %v2759_v6  ;;  %v2761_v33 = vadd.f32 %v2760_v17, %v5163_v19  ;;  %v415_v19 = vadd.f32 1e-05, %v414_v56 }
 0x2a6   : > { %v2953_v44 = vpop.f32.mrf.mxu0  ;;  %v2762_v35 = vpop.f32.mrf.mxu1 }
 0x2a7   : > { %v5494_v4 = vadd.f32 %v2953_v44, %v2761_v33  ;;  %v2763_v52 = vadd.f32 %v2762_v35, %v5842_v47  ;;  %3930 = vrsqrt.f32 %v415_v19 }
 0x2a8   : > { %v2955_v55 = vpop.f32.mrf.mxu0  ;;  %v2766_v31 = vpop.f32.mrf.mxu1 }
 0x2a9   : > { %v5497_v48 = vadd.f32 %v2955_v55, %v2763_v52  ;;  %v2767_v16 = vadd.f32 %v2766_v31, %v5843_v27 }
 0x2aa   : > { %v2959_v30 = vpop.f32.mrf.mxu0  ;;  %v2768_v49 = vpop.f32.mrf.mxu1 }
 0x2ab   : > { %v5500_v42 = vadd.f32 %v2959_v30, %v2767_v16  ;;  %v2769_v6 = vadd.f32 %v2768_v49, %v5177_v63 }
 0x2ac   : > { %v2961_v38 = vpop.f32.mrf.mxu0  ;;  %v2770_v17 = vpop.f32.mrf.mxu1 }
 0x2ad   : > { %v5503_v33 = vadd.f32 %v2961_v38, %v2769_v6  ;;  %v2771_v44 = vadd.f32 %v2770_v17, %v5180_v28  ;;  %v5844_v38 = vld [vmem:[#allocation22_spill] sm:$0xff] }
 0x2ae   : > { %v2963_v59 = vpop.f32.mrf.mxu0  ;;  %v2772_v20 = vpop.f32.mrf.mxu1 }
 0x2af   : > { %v5506_v35 = vadd.f32 %v2963_v59, %v2771_v44  ;;  %v2773_v47 = vadd.f32 %v2772_v20, %v5185_v1  ;;  %v5845_v59 = vld [vmem:[#allocation23_spill] sm:$0xff] }
 0x2b0   : > { %v2965_v52 = vpop.f32.mrf.mxu0  ;;  %v2776_v55 = vpop.f32.mrf.mxu1 }
 0x2b1   : > { %v5509_v30 = vadd.f32 %v2965_v52, %v2773_v47  ;;  %v2777_v63 = vadd.f32 %v2776_v55, %v5189_v24  ;;  %v5846_v55 = vld [vmem:[#allocation24_spill] sm:$0xff] }
 0x2b2   : > { %v2969_v49 = vpop.f32.mrf.mxu0  ;;  %v2778_v56 = vpop.f32.mrf.mxu1 }
 0x2b3   : > { %v5512_v31 = vadd.f32 %v2969_v49, %v2777_v63  ;;  %v2779_v27 = vadd.f32 %v2778_v56, %v5195_v39 }
 0x2b4   : > { %v2971_v28 = vpop.f32.mrf.mxu0  ;;  %v2780_v16 = vpop.f32.mrf.mxu1 }
 0x2b5   : > { %v5515_v6 = vadd.f32 %v2971_v28, %v2779_v27  ;;  %v2781_v17 = vadd.f32 %v2780_v16, %v5844_v38  ;;  %v5847_v28 = vld [vmem:[#allocation21_spill] sm:$0xff]  ;;  %v5529_v38 = vpop.eup %3930 }
 0x2b6   : > { %v2973_v1 = vpop.f32.mrf.mxu0  ;;  %v2782_v19 = vpop.f32.mrf.mxu1  ;;  %v3193_v16 = vsub.f32 %v5847_v28, %v5481_v18 }
 0x2b7   : > { %v5518_v44 = vadd.f32 %v2973_v1, %v2781_v17  ;;  %v2783_v20 = vadd.f32 %v2782_v19, %v5845_v59 }
 0x2b8   : > { %v2975_v24 = vpop.f32.mrf.mxu0  ;;  %v2786_v47 = vpop.f32.mrf.mxu1 }
 0x2b9   : > { %v5521_v52 = vadd.f32 %v2975_v24, %v2783_v20  ;;  %v2787_v63 = vadd.f32 %v2786_v47, %v5846_v55  ;;  %v3932_v20 = vld [vmem:[%s5085_s11] sm:$0xff] }
 0x2ba   : > { %v2979_v39 = vpop.f32.mrf.mxu0  ;;  %v2788_v49 = vpop.f32.mrf.mxu1  ;;  %v3181_v24 = vsub.f32 %v3932_v20, %v5481_v18 }
 0x2bb   : > { %v5524_v56 = vadd.f32 %v2979_v39, %v2787_v63  ;;  %v2789_v27 = vadd.f32 %v2788_v49, %v5221_v10  ;;  %v3225_v39 = vmul.f32 %v5529_v38, %v3193_v16  ;;  %v3194_v49 = vsub.f32 %v5203_v0, %v5481_v18 }
 0x2bc   : > { %v2981_v17 = vpop.f32.mrf.mxu0  ;;  %v2790_v1 = vpop.f32.mrf.mxu1  ;;  %v3195_v16 = vsub.f32 %v5217_v5, %v5481_v18 }
 0x2bd   : > { %v5531_v19 = vadd.f32 %v2981_v17, %v2789_v27  ;;  %v2791_v59 = vadd.f32 %v2790_v1, %v5225_v34  ;;  %v3933_v17 = vld [vmem:[%s5085_s11 + $0x8] sm:$0xff] }
 0x2be   : > { %v2983_v47 = vpop.f32.mrf.mxu0  ;;  %v2792_v55 = vpop.f32.mrf.mxu1  ;;  %v3182_v34 = vsub.f32 %v3933_v17, %v5481_v18 }
 0x2bf   : > { %5848 = vst [vmem:[#allocation12_spill] sm:$0xff] %v5531_v19  ;;  %v5536_v63 = vadd.f32 %v2983_v47, %v2791_v59  ;;  %v2793_v10 = vadd.f32 %v2792_v55, %v5234_v3  ;;  %v3213_v59 = vmul.f32 %v5529_v38, %v3181_v24  ;;  %v3226_v19 = vmul.f32 %v5529_v38, %v3194_v49 }
 0x2c0   : > { %v2985_v28 = vpop.f32.mrf.mxu0  ;;  %v3082_v27 = vpop.f32.mrf.mxu1 }
 0x2c1   : > { %5849 = vst [vmem:[#allocation13_spill] sm:$0xff] %v5536_v63  ;;  %v5544_v1 = vadd.f32 %v2985_v28, %v2793_v10  ;;  %v3083_v20 = vadd.f32 %v3082_v27, %v5386_v15  ;;  %v3214_v10 = vmul.f32 %v5529_v38, %v3182_v34  ;;  %v3934_v28 = vld [vmem:[%s5085_s11 + $0x10] sm:$0xff] }
 0x2c2   : > { %v3022_v47 = vpop.f32.mrf.mxu0  ;;  %v3084_v3 = vpop.f32.mrf.mxu1  ;;  %v3183_v5 = vsub.f32 %v3934_v28, %v5481_v18 }
 0x2c3   : > { %5850 = vst [vmem:[#allocation14_spill] sm:$0xff] %v5544_v1  ;;  %v3257_v55 = vmul.f32 %v3225_v39, %v3083_v20  ;;  %v3023_v0 = vadd.f32 %v3022_v47, %v5241_v7  ;;  %v3085_v63 = vadd.f32 %v3084_v3, %v5394_v22  ;;  %v3227_v20 = vmul.f32 %v5529_v38, %v3195_v16  ;;  %v5851_v47 = vld [vmem:[#allocation25_spill] sm:$0xff] }
 0x2c4   : > { %v3024_v15 = vpop.f32.mrf.mxu0  ;;  %v3086_v24 = vpop.f32.mrf.mxu1  ;;  %v3196_v3 = vsub.f32 %v5851_v47, %v5481_v18 }
 0x2c5   : > { %v3245_v39 = vmul.f32 %v3213_v59, %v3023_v0  ;;  %v3289_v7 = vadd.f32 %v3257_v55, %v3085_v63  ;;  %v3025_v22 = vadd.f32 %v3024_v15, %v5250_v9  ;;  %v3087_v49 = vadd.f32 %v3086_v24, %v5398_v29  ;;  %v3935_v29 = vld [vmem:[%s5085_s11 + $0x18] sm:$0xff] }
 0x2c6   : > { %v3026_v27 = vpop.f32.mrf.mxu0  ;;  %v3088_v17 = vpop.f32.mrf.mxu1  ;;  %v3215_v55 = vmul.f32 %v5529_v38, %v3183_v5  ;;  %v3184_v0 = vsub.f32 %v3935_v29, %v5481_v18 }
 0x2c7   : > { %3321 = vst [vmem:[%s5558_s14 + $0x60] sm:$0xff] %v3289_v7  ;;  %v3277_v34 = vadd.f32 %v3245_v39, %v3025_v22  ;;  %v3258_v1 = vmul.f32 %v3226_v19, %v3087_v49  ;;  %v3027_v28 = vadd.f32 %v3026_v27, %v5254_v57  ;;  %v3089_v63 = vadd.f32 %v3088_v17, %v5406_v45 }
 0x2c8   : > { %v3028_v59 = vpop.f32.mrf.mxu0  ;;  %v3092_v9 = vpop.f32.mrf.mxu1  ;;  %v3228_v45 = vmul.f32 %v5529_v38, %v3196_v3  ;;  %v3197_v7 = vsub.f32 %v5245_v58, %v5481_v18  ;;  %v3216_v27 = vmul.f32 %v5529_v38, %v3184_v0 }
 0x2c9   : > { %3309 = vst [vmem:[%s5558_s14] sm:$0xff] %v3277_v34  ;;  %v3246_v16 = vmul.f32 %v3214_v10, %v3027_v28  ;;  %v3290_v15 = vadd.f32 %v3258_v1, %v3089_v63  ;;  %v3029_v24 = vadd.f32 %v3028_v59, %v5262_v61  ;;  %v3093_v19 = vadd.f32 %v3092_v9, %v5410_v37  ;;  %v3936_v37 = vld [vmem:[%s5085_s11 + $0x20] sm:$0xff] }
 0x2ca   : > { %v3032_v57 = vpop.f32.mrf.mxu0  ;;  %v3094_v39 = vpop.f32.mrf.mxu1  ;;  %v3185_v17 = vsub.f32 %v3936_v37, %v5481_v18  ;;  %v3198_v28 = vsub.f32 %v5257_v60, %v5481_v18 }
 0x2cb   : > { %3322 = vst [vmem:[%s5558_s14 + $0x68] sm:$0xff] %v3290_v15  ;;  %v3278_v5 = vadd.f32 %v3246_v16, %v3029_v24  ;;  %v3259_v22 = vmul.f32 %v3227_v20, %v3093_v19  ;;  %v3033_v49 = vadd.f32 %v3032_v57, %v5266_v36  ;;  %v3095_v1 = vadd.f32 %v3094_v39, %v5418_v51  ;;  %v5852_v39 = vld [vmem:[#allocation26_spill] sm:$0xff] }
 0x2cc   : > { %v3034_v10 = vpop.f32.mrf.mxu0  ;;  %v3096_v61 = vpop.f32.mrf.mxu1  ;;  %v3229_v51 = vmul.f32 %v5529_v38, %v3197_v7  ;;  %v3217_v0 = vmul.f32 %v5529_v38, %v3185_v17 }
 0x2cd   : > { %3310 = vst [vmem:[%s5558_s14 + $0x8] sm:$0xff] %v3278_v5  ;;  %v3247_v47 = vmul.f32 %v3215_v55, %v3033_v49  ;;  %v3291_v3 = vadd.f32 %v3259_v22, %v3095_v1  ;;  %v3035_v58 = vadd.f32 %v3034_v10, %v5274_v11  ;;  %v3097_v20 = vadd.f32 %v3096_v61, %v5422_v14  ;;  %v3937_v14 = vld [vmem:[%s5085_s11 + $0x28] sm:$0xff] }
 0x2ce   : > { %v3036_v36 = vpop.f32.mrf.mxu0  ;;  %v3098_v34 = vpop.f32.mrf.mxu1  ;;  %v3186_v16 = vsub.f32 %v3937_v14, %v5481_v18  ;;  %v5855_v14 = vld [vmem:[#allocation5_spill] sm:$0xff] }
 0x2cf   : > { %3323 = vst [vmem:[%s5558_s14 + $0x70] sm:$0xff] %v3291_v3  ;;  %v3279_v63 = vadd.f32 %v3247_v47, %v3035_v58  ;;  %v3260_v59 = vmul.f32 %v3228_v45, %v3097_v20  ;;  %v3037_v9 = vadd.f32 %v3036_v36, %v5278_v53  ;;  %v3099_v55 = vadd.f32 %v3098_v34, %v5430_v50  ;;  %v5853_v58 = vld [vmem:[#allocation27_spill] sm:$0xff] }
 0x2d0   : > { %v3038_v29 = vpop.f32.mrf.mxu0  ;;  %v3102_v11 = vpop.f32.mrf.mxu1  ;;  %v3230_v50 = vmul.f32 %v5529_v38, %v3198_v28  ;;  %v3199_v45 = vsub.f32 %v5852_v39, %v5481_v18  ;;  %v3218_v10 = vmul.f32 %v5529_v38, %v3186_v16  ;;  %v3200_v20 = vsub.f32 %v5853_v58, %v5481_v18  ;;  %v5861_v58 = vld [vmem:[#allocation34_spill] sm:$0xff] }
 0x2d1   : > { %3311 = vst [vmem:[%s5558_s14 + $0x10] sm:$0xff] %v3279_v63  ;;  %v3248_v15 = vmul.f32 %v3216_v27, %v3037_v9  ;;  %v3292_v24 = vadd.f32 %v3260_v59, %v3099_v55  ;;  %v3039_v60 = vadd.f32 %v3038_v29, %v5286_v43  ;;  %v3103_v19 = vadd.f32 %v3102_v11, %v5434_v54  ;;  %v3938_v54 = vld [vmem:[%s5085_s11 + $0x30] sm:$0xff]  ;;  %v5854_v11 = vld [vmem:[#allocation30_spill] sm:$0xff] }
 0x2d2   : > { %v3042_v53 = vpop.f32.mrf.mxu0  ;;  %v3104_v57 = vpop.f32.mrf.mxu1  ;;  %v3187_v61 = vsub.f32 %v3938_v54, %v5481_v18 }
 0x2d3   : > { %3324 = vst [vmem:[%s5558_s14 + $0x78] sm:$0xff] %v3292_v24  ;;  %v3280_v7 = vadd.f32 %v3248_v15, %v3039_v60  ;;  %v3261_v5 = vmul.f32 %v3229_v51, %v3103_v19  ;;  %v3043_v22 = vadd.f32 %v3042_v53, %v5290_v41  ;;  %v3105_v49 = vadd.f32 %v3104_v57, %v5439_v40  ;;  %v5856_v24 = vld [vmem:[#allocation28_spill] sm:$0xff]  ;;  %v5857_v57 = vld [vmem:[#allocation31_spill] sm:$0xff] }
 0x2d4   : > { %v3044_v1 = vpop.f32.mrf.mxu0  ;;  %v3106_v43 = vpop.f32.mrf.mxu1  ;;  %v3231_v40 = vmul.f32 %v5529_v38, %v3199_v45  ;;  %v3219_v59 = vmul.f32 %v5529_v38, %v3187_v61  ;;  %v3201_v60 = vsub.f32 %v5856_v24, %v5481_v18  ;;  %v5859_v61 = vld [vmem:[#allocation6_spill] sm:$0xff]  ;;  %v5865_v24 = vld [vmem:[#allocation37_spill] sm:$0xff] }
 0x2d5   : > { %3312 = vst [vmem:[%s5558_s14 + $0x18] sm:$0xff] %v3280_v7  ;;  %v3249_v27 = vmul.f32 %v3217_v0, %v3043_v22  ;;  %v3293_v37 = vadd.f32 %v3261_v5, %v3105_v49  ;;  %v3045_v17 = vadd.f32 %v3044_v1, %v5298_v23  ;;  %v3107_v47 = vadd.f32 %v3106_v43, %v5442_v8  ;;  %v3939_v8 = vld [vmem:[%s5085_s11 + $0x38] sm:$0xff]  ;;  %v3940_v22 = vld [vmem:[%s5085_s11 + $0x40] sm:$0xff] }
 0x2d6   : > { %v3046_v41 = vpop.f32.mrf.mxu0  ;;  %v3108_v3 = vpop.f32.mrf.mxu1  ;;  %v3188_v9 = vsub.f32 %v3939_v8, %v5481_v18  ;;  %v3189_v49 = vsub.f32 %v3940_v22, %v5481_v18  ;;  %v5866_v22 = vld [vmem:[#allocation39_spill] sm:$0xff] }
 0x2d7   : > { %3325 = vst [vmem:[%s5558_s14 + $0x80] sm:$0xff] %v3293_v37  ;;  %v3281_v36 = vadd.f32 %v3249_v27, %v3045_v17  ;;  %v3262_v34 = vmul.f32 %v3230_v50, %v3107_v47  ;;  %v3047_v51 = vadd.f32 %v3046_v41, %v5302_v26  ;;  %v3109_v28 = vadd.f32 %v3108_v3, %v5445_v62  ;;  %v5860_v47 = vld [vmem:[#allocation29_spill] sm:$0xff] }
 0x2d8   : > { %v3048_v63 = vpop.f32.mrf.mxu0  ;;  %v3112_v23 = vpop.f32.mrf.mxu1  ;;  %v3232_v62 = vmul.f32 %v5529_v38, %v3200_v20  ;;  %v3220_v5 = vmul.f32 %v5529_v38, %v3188_v9  ;;  %v3202_v41 = vsub.f32 %v5860_v47, %v5481_v18  ;;  %v5862_v9 = vld [vmem:[#allocation36_spill] sm:$0xff] }
 0x2d9   : > { %3313 = vst [vmem:[%s5558_s14 + $0x20] sm:$0xff] %v3281_v36  ;;  %v3250_v55 = vmul.f32 %v3218_v10, %v3047_v51  ;;  %v3294_v29 = vadd.f32 %v3262_v34, %v3109_v28  ;;  %v3049_v0 = vadd.f32 %v3048_v63, %v5854_v11  ;;  %v3113_v16 = vadd.f32 %v3112_v23, %v5855_v14  ;;  %v5858_v10 = vld [vmem:[#allocation33_spill] sm:$0xff]  ;;  %v3941_v63 = vld [vmem:[%s5085_s11 + $0x48] sm:$0xff] }
 0x2da   : > { %v3052_v26 = vpop.f32.mrf.mxu0  ;;  %v3114_v15 = vpop.f32.mrf.mxu1  ;;  %v3221_v28 = vmul.f32 %v5529_v38, %v3189_v49  ;;  %v3190_v23 = vsub.f32 %v3941_v63, %v5481_v18 }
 0x2db   : > { %3326 = vst [vmem:[%s5558_s14 + $0x88] sm:$0xff] %v3294_v29  ;;  %v3282_v19 = vadd.f32 %v3250_v55, %v3049_v0  ;;  %v3263_v53 = vmul.f32 %v3231_v40, %v3113_v16  ;;  %v3053_v50 = vadd.f32 %v3052_v26, %v5857_v57  ;;  %v3115_v39 = vadd.f32 %v3114_v15, %v5451_v46  ;;  %v5863_v29 = vld [vmem:[#allocation7_spill] sm:$0xff]  ;;  %v5864_v16 = vld [vmem:[#allocation32_spill] sm:$0xff] }
 0x2dc   : > { %v3054_v45 = vpop.f32.mrf.mxu0  ;;  %v3116_v7 = vpop.f32.mrf.mxu1  ;;  %v3233_v46 = vmul.f32 %v5529_v38, %v3201_v60  ;;  %v3203_v26 = vsub.f32 %v5864_v16, %v5481_v18 }
 0x2dd   : > { %3314 = vst [vmem:[%s5558_s14 + $0x28] sm:$0xff] %v3282_v19  ;;  %v3251_v1 = vmul.f32 %v3219_v59, %v3053_v50  ;;  %v3295_v43 = vadd.f32 %v3263_v53, %v3115_v39  ;;  %v3055_v54 = vadd.f32 %v3054_v45, %v5858_v10  ;;  %v3117_v27 = vadd.f32 %v3116_v7, %v5859_v61  ;;  %v3942_v39 = vld [vmem:[%s5085_s11 + $0x50] sm:$0xff]  ;;  %v5868_v61 = vld [vmem:[#allocation35_spill] sm:$0xff] }
 0x2de   : > { %v3056_v37 = vpop.f32.mrf.mxu0  ;;  %v3118_v17 = vpop.f32.mrf.mxu1  ;;  %v3222_v50 = vmul.f32 %v5529_v38, %v3190_v23  ;;  %v3191_v45 = vsub.f32 %v3942_v39, %v5481_v18 }
 0x2df   : > { %3327 = vst [vmem:[%s5558_s14 + $0x90] sm:$0xff] %v3295_v43  ;;  %v3283_v3 = vadd.f32 %v3251_v1, %v3055_v54  ;;  %v3264_v40 = vmul.f32 %v3232_v62, %v3117_v27  ;;  %v3057_v20 = vadd.f32 %v3056_v37, %v5861_v58  ;;  %v3119_v36 = vadd.f32 %v3118_v17, %v5457_v12  ;;  %v5867_v1 = vld [vmem:[#allocation8_spill] sm:$0xff] }
 0x2e0   : > { %v3058_v34 = vpop.f32.mrf.mxu0  ;;  %v3122_v51 = vpop.f32.mrf.mxu1  ;;  %v3234_v12 = vmul.f32 %v5529_v38, %v3202_v41  ;;  %v3204_v27 = vsub.f32 %v5868_v61, %v5481_v18  ;;  %v3223_v58 = vmul.f32 %v5529_v38, %v3191_v45  ;;  %v5875_v45 = vld [vmem:[#allocation41_spill] sm:$0xff] }
 0x2e1   : > { %3315 = vst [vmem:[%s5558_s14 + $0x30] sm:$0xff] %v3283_v3  ;;  %v3252_v59 = vmul.f32 %v3220_v5, %v3057_v20  ;;  %v3296_v8 = vadd.f32 %v3264_v40, %v3119_v36  ;;  %v3059_v55 = vadd.f32 %v3058_v34, %v5862_v9  ;;  %v3123_v11 = vadd.f32 %v3122_v51, %v5863_v29  ;;  %v3943_v20 = vld [vmem:[%s5085_s11 + $0x58] sm:$0xff] }
 0x2e2   : > { %v3062_v0 = vpop.f32.mrf.mxu0  ;;  %v3124_v14 = vpop.f32.mrf.mxu1  ;;  %v3192_v36 = vsub.f32 %v3943_v20, %v5481_v18  ;;  %v3236_v9 = vmul.f32 %v5529_v38, %v3204_v27  ;;  %v5878_v27 = vld [vmem:[#allocation48_spill] sm:$0xff] }
 0x2e3   : > { %3328 = vst [vmem:[%s5558_s14 + $0x98] sm:$0xff] %v3296_v8  ;;  %v3284_v15 = vadd.f32 %v3252_v59, %v3059_v55  ;;  %v3265_v62 = vmul.f32 %v3233_v46, %v3123_v11  ;;  %v3063_v60 = vadd.f32 %v3062_v0, %v5865_v24  ;;  %v3125_v19 = vadd.f32 %v3124_v14, %v5463_v2  ;;  %v5869_v46 = vld [vmem:[#allocation40_spill] sm:$0xff]  ;;  %v5872_v0 = vld [vmem:[#allocation43_spill] sm:$0xff]  ;;  %v5873_v24 = vld [vmem:[#allocation45_spill] sm:$0xff] }
 0x2e4   : > { %v3064_v53 = vpop.f32.mrf.mxu0  ;;  %v3126_v57 = vpop.f32.mrf.mxu1  ;;  %v3235_v2 = vmul.f32 %v5529_v38, %v3203_v26  ;;  %v5880_v20 = vld [vmem:[#allocation44_spill] sm:$0xff] }
 0x2e5   : > { %3316 = vst [vmem:[%s5558_s14 + $0x38] sm:$0xff] %v3284_v15  ;;  %v3253_v7 = vmul.f32 %v3221_v28, %v3063_v60  ;;  %v3297_v5 = vadd.f32 %v3265_v62, %v3125_v19  ;;  %v3065_v49 = vadd.f32 %v3064_v53, %v5866_v22  ;;  %v3127_v43 = vadd.f32 %v3126_v57, %v5867_v1  ;;  %v5870_v28 = vld [vmem:[#allocation42_spill] sm:$0xff]  ;;  %v5874_v19 = vld [vmem:[#allocation9_spill] sm:$0xff] }
 0x2e6   : > { %v3066_v10 = vpop.f32.mrf.mxu0  ;;  %v3128_v54 = vpop.f32.mrf.mxu1  ;;  %v3224_v15 = vmul.f32 %v5529_v38, %v3192_v36  ;;  %v5876_v22 = vld [vmem:[#allocation46_spill] sm:$0xff]  ;;  %v3207_v36 = vsub.f32 %v5880_v20, %v5481_v18 }
 0x2e7   : > { %3329 = vst [vmem:[%s5558_s14 + $0xa0] sm:$0xff] %v3297_v5  ;;  %v3285_v37 = vadd.f32 %v3253_v7, %v3065_v49  ;;  %v3266_v17 = vmul.f32 %v3234_v12, %v3127_v43  ;;  %v3067_v47 = vadd.f32 %v3066_v10, %v5869_v46  ;;  %v3129_v41 = vadd.f32 %v3128_v54, %v5469_v32  ;;  %v5871_v32 = vld [vmem:[#allocation38_spill] sm:$0xff] }
 0x2e8   : > { %v3068_v3 = vpop.f32.mrf.mxu0  ;;  %v3132_v40 = vpop.f32.mrf.mxu1  ;;  %v3205_v55 = vsub.f32 %v5871_v32, %v5481_v18  ;;  %v5877_v1 = vld [vmem:[#allocation10_spill] sm:$0xff] }
 0x2e9   : > { %3317 = vst [vmem:[%s5558_s14 + $0x40] sm:$0xff] %v3285_v37  ;;  %v3254_v34 = vmul.f32 %v3222_v50, %v3067_v47  ;;  %v3298_v51 = vadd.f32 %v3266_v17, %v3129_v41  ;;  %v3069_v63 = vadd.f32 %v3068_v3, %v5870_v28  ;;  %v3133_v23 = vadd.f32 %v3132_v40, %v5472_v21  ;;  %v5879_v17 = vld [vmem:[#allocation11_spill] sm:$0xff] }
 0x2ea   : > { %v3072_v59 = vpop.f32.mrf.mxu0  ;;  %v3134_v8 = vpop.f32.mrf.mxu1  ;;  %v3237_v39 = vmul.f32 %v5529_v38, %v3205_v55 }
 0x2eb   : > { %3330 = vst [vmem:[%s5558_s14 + $0xa8] sm:$0xff] %v3298_v51  ;;  %v3286_v29 = vadd.f32 %v3254_v34, %v3069_v63  ;;  %v3267_v11 = vmul.f32 %v3235_v2, %v3133_v23  ;;  %v3073_v14 = vadd.f32 %v3072_v59, %v5872_v0  ;;  %v3135_v12 = vadd.f32 %v3134_v8, %v5475_v13 }
 0x2ec   : > { %v3074_v16 = vpop.f32.mrf.mxu0  ;;  %v3136_v26 = vpop.f32.mrf.mxu1  ;;  %v3206_v13 = vsub.f32 %v5875_v45, %v5481_v18  ;;  %v3239_v8 = vmul.f32 %v5529_v38, %v3207_v36 }
 0x2ed   : > { %3318 = vst [vmem:[%s5558_s14 + $0x48] sm:$0xff] %v3286_v29  ;;  %v3255_v21 = vmul.f32 %v3223_v58, %v3073_v14  ;;  %v3299_v62 = vadd.f32 %v3267_v11, %v3135_v12  ;;  %v3075_v60 = vadd.f32 %v3074_v16, %v5873_v24  ;;  %v3137_v53 = vadd.f32 %v3136_v26, %v5874_v19 }
 0x2ee   : > { %v3076_v57 = vpop.f32.mrf.mxu0  ;;  %v3138_v50 = vpop.f32.mrf.mxu1  ;;  %v3238_v41 = vmul.f32 %v5529_v38, %v3206_v13 }
 0x2ef   : > { %3331 = vst [vmem:[%s5558_s14 + $0xb0] sm:$0xff] %v3299_v62  ;;  %v3287_v7 = vadd.f32 %v3255_v21, %v3075_v60  ;;  %v3268_v5 = vmul.f32 %v3236_v9, %v3137_v53  ;;  %v3077_v49 = vadd.f32 %v3076_v57, %v5876_v22  ;;  %v3139_v43 = vadd.f32 %v3138_v50, %v5877_v1  ;;  %v5881_v9 = vld [vmem:[#allocation47_spill] sm:$0xff] }
 0x2f0   : > { %v3078_v10 = vpop.f32.mrf.mxu0  ;;  %v3142_v54 = vpop.f32.mrf.mxu1 }
 0x2f1   : > { %3319 = vst [vmem:[%s5558_s14 + $0x50] sm:$0xff] %v3287_v7  ;;  %v3256_v2 = vmul.f32 %v3224_v15, %v3077_v49  ;;  %v3300_v61 = vadd.f32 %v3268_v5, %v3139_v43  ;;  %v3079_v37 = vadd.f32 %v3078_v10, %v5878_v27  ;;  %v3143_v46 = vadd.f32 %v3142_v54, %v5879_v17 }
 0x2f2   : > { %v3144_v47 = vpop.f32.mrf.mxu1 }
 0x2f3   : > { %3332 = vst [vmem:[%s5558_s14 + $0xb8] sm:$0xff] %v3300_v61  ;;  %v3288_v3 = vadd.f32 %v3256_v2, %v3079_v37  ;;  %v3269_v40 = vmul.f32 %v3237_v39, %v3143_v46  ;;  %v3145_v58 = vadd.f32 %v3144_v47, %v5491_v25  ;;  %v3208_v25 = vsub.f32 %v5881_v9, %v5481_v18 }
 0x2f4   : > { %v3146_v34 = vpop.f32.mrf.mxu1 }
 0x2f5   : > { %3320 = vst [vmem:[%s5558_s14 + $0x58] sm:$0xff] %v3288_v3  ;;  %v3301_v51 = vadd.f32 %v3269_v40, %v3145_v58  ;;  %v3147_v28 = vadd.f32 %v3146_v34, %v5494_v4  ;;  %v3240_v14 = vmul.f32 %v5529_v38, %v3208_v25 }
 0x2f6   : > { %v3148_v63 = vpop.f32.mrf.mxu1 }
 0x2f7   : > { %3333 = vst [vmem:[%s5558_s14 + $0xc0] sm:$0xff] %v3301_v51  ;;  %v3270_v23 = vmul.f32 %v3238_v41, %v3147_v28  ;;  %v3149_v59 = vadd.f32 %v3148_v63, %v5497_v48  ;;  %v5882_v48 = vld [vmem:[#allocation49_spill] sm:$0xff] }
 0x2f8   : > { %v3152_v32 = vpop.f32.mrf.mxu1  ;;  %v3209_v12 = vsub.f32 %v5882_v48, %v5481_v18 }
 0x2f9   : > { %v3302_v55 = vadd.f32 %v3270_v23, %v3149_v59  ;;  %v3153_v29 = vadd.f32 %v3152_v32, %v5500_v42 }
 0x2fa   : > { %v3154_v11 = vpop.f32.mrf.mxu1  ;;  %v3241_v24 = vmul.f32 %v5529_v38, %v3209_v12 }
 0x2fb   : > { %3334 = vst [vmem:[%s5558_s14 + $0xc8] sm:$0xff] %v3302_v55  ;;  %v3271_v0 = vmul.f32 %v3239_v8, %v3153_v29  ;;  %v3155_v4 = vadd.f32 %v3154_v11, %v5503_v33  ;;  %v5883_v33 = vld [vmem:[#allocation2_spill] sm:$0xff] }
 0x2fc   : > { %v3156_v16 = vpop.f32.mrf.mxu1  ;;  %v3210_v60 = vsub.f32 %v5883_v33, %v5481_v18 }
 0x2fd   : > { %v3303_v26 = vadd.f32 %v3271_v0, %v3155_v4  ;;  %v3157_v15 = vadd.f32 %v3156_v16, %v5506_v35 }
 0x2fe   : > { %v3158_v21 = vpop.f32.mrf.mxu1  ;;  %v3242_v45 = vmul.f32 %v5529_v38, %v3210_v60 }
 0x2ff   : > { %3335 = vst [vmem:[%s5558_s14 + $0xd0] sm:$0xff] %v3303_v26  ;;  %v3272_v62 = vmul.f32 %v3240_v14, %v3157_v15  ;;  %v3159_v42 = vadd.f32 %v3158_v21, %v5509_v30  ;;  %v5884_v30 = vld [vmem:[#allocation3_spill] sm:$0xff] }
 0x300   : > { %v3162_v19 = vpop.f32.mrf.mxu1  ;;  %v3211_v13 = vsub.f32 %v5884_v30, %v5481_v18 }
 0x301   : > { %v3304_v53 = vadd.f32 %v3272_v62, %v3159_v42  ;;  %v3163_v57 = vadd.f32 %v3162_v19, %v5512_v31 }
 0x302   : > { %v3164_v50 = vpop.f32.mrf.mxu1  ;;  %v3243_v43 = vmul.f32 %v5529_v38, %v3211_v13 }
 0x303   : > { %3336 = vst [vmem:[%s5558_s14 + $0xd8] sm:$0xff] %v3304_v53  ;;  %v3273_v39 = vmul.f32 %v3241_v24, %v3163_v57  ;;  %v3165_v35 = vadd.f32 %v3164_v50, %v5515_v6  ;;  %v5885_v6 = vld [vmem:[#allocation4_spill] sm:$0xff] }
 0x304   : > { %v3166_v7 = vpop.f32.mrf.mxu1  ;;  %v3212_v10 = vsub.f32 %v5885_v6, %v5481_v18  ;;  %v5888_v18 = vld [vmem:[#allocation14_spill] sm:$0xff] }
 0x305   : > { %v3305_v5 = vadd.f32 %v3273_v39, %v3165_v35  ;;  %v3167_v22 = vadd.f32 %v3166_v7, %v5518_v44  ;;  %v5886_v44 = vld [vmem:[#allocation12_spill] sm:$0xff] }
 0x306   : > { %v3168_v49 = vpop.f32.mrf.mxu1  ;;  %v3244_v46 = vmul.f32 %v5529_v38, %v3212_v10 }
 0x307   : > { %3337 = vst [vmem:[%s5558_s14 + $0xe0] sm:$0xff] %v3305_v5  ;;  %v3274_v1 = vmul.f32 %v3242_v45, %v3167_v22  ;;  %v3169_v31 = vadd.f32 %v3168_v49, %v5521_v52  ;;  %v5887_v52 = vld [vmem:[#allocation13_spill] sm:$0xff] }
 0x308   : > { %v3172_v54 = vpop.f32.mrf.mxu1 }
 0x309   : > { %v3306_v2 = vadd.f32 %v3274_v1, %v3169_v31  ;;  %v3173_v61 = vadd.f32 %v3172_v54, %v5524_v56 }
 0x30a   : > { %v3174_v27 = vpop.f32.mrf.mxu1 }
 0x30b   : > { %3338 = vst [vmem:[%s5558_s14 + $0xe8] sm:$0xff] %v3306_v2  ;;  %v3275_v37 = vmul.f32 %v3243_v43, %v3173_v61  ;;  %v3175_v17 = vadd.f32 %v3174_v27, %v5886_v44 }
 0x30c   : > { %v3176_v47 = vpop.f32.mrf.mxu1 }
 0x30d   : > { %v3307_v41 = vadd.f32 %v3275_v37, %v3175_v17  ;;  %v3177_v3 = vadd.f32 %v3176_v47, %v5887_v52 }
 0x30e   : > { %v3178_v40 = vpop.f32.mrf.mxu1 }
 0x30f   : > { %3339 = vst [vmem:[%s5558_s14 + $0xf0] sm:$0xff] %v3307_v41  ;;  %v3276_v58 = vmul.f32 %v3244_v46, %v3177_v3  ;;  %v3179_v20 = vadd.f32 %v3178_v40, %v5888_v18 }
 0x311   : > { %v3308_v36 = vadd.f32 %v3276_v58, %v3179_v20 }
 0x313   : > { %3340 = vst [vmem:[%s5558_s14 + $0xf8] sm:$0xff] %v3308_v36 }
 0x314 PF: > { %s16_s21 = sadd.s32 1, %s3950_s21  }
 0x315   : > { %p13_p4 = scmp.ge.s32.totalorder %s16_s21, 4  }
 0x317   :  { %15 = sbr.rel (!%p13_p4) target bundleno = 1 (0x1), region = 77 }

</bundles_post_ra>
